<compile_context>
chip_gen: v6e
topology: v6e:2x2x1
jax: 0.10.0
libtpu: 0.0.40
codegen_flags: <defaults>
</compile_context>

<pallas_src>
import math
import functools

import jax
import jax.numpy as jnp
from jax.experimental import pallas as pl
from jax.experimental.pallas import tpu as pltpu

# ----------------------------- config (small, lane-dense) --------------------
VOCAB = 100
MAX_POS = 512
HIDDEN = 128                      # multiple of the 128-lane vreg width
HEADS = 2
DHEAD = HIDDEN // HEADS           # 64
LAYERS = 2
INTERMEDIATE = 512                # multiple of 128
NUM_LABELS = 3
CLS_PAD = 128                     # classifier output padded to a full lane width
LN_EPS = 1e-12
ATTN_SCALE = 1.0 / math.sqrt(DHEAD)

VMEM_SPEC = pl.BlockSpec(memory_space=pltpu.MemorySpace.VMEM)


# ------------------------------ in-kernel helpers -----------------------------
def _ln(x, g, b):
    """LayerNorm over the last dim, f32 math."""
    mu = jnp.mean(x, axis=-1, keepdims=True)
    var = jnp.mean(jnp.square(x - mu), axis=-1, keepdims=True)
    return (x - mu) * jax.lax.rsqrt(var + LN_EPS) * g + b


def _bf16_dot(a_f32, w_ref, b_ref):
    """bf16 MXU matmul with f32 accumulation + f32 bias add."""
    y = jnp.dot(a_f32.astype(jnp.bfloat16), w_ref[...],
                preferred_element_type=jnp.float32)
    return y + b_ref[...]


# ------------------------- fused encoder-layer kernel -------------------------
def _encoder_layer_kernel(x_ref, mask_ref,
                          wqkv_ref, bqkv_ref, wo_ref, bo_ref,
                          ln1g_ref, ln1b_ref,
                          w1_ref, b1_ref, w2_ref, b2_ref,
                          ln2g_ref, ln2b_ref,
                          o_ref):
    # x: (1, S, H) f32 for one batch element; mask: (1, 1, S) additive mask.
    x = x_ref[0]                                    # (S, H) f32
    mask_add = mask_ref[0]                          # (1, S) f32

    # ---- fused Q|K|V projection: one wide (S, 3H) matmul on the MXU ----------
    qkv = _bf16_dot(x, wqkv_ref, bqkv_ref)          # (S, 3H) f32

    # ---- per-head attention, everything VMEM-resident ------------------------
    ctx_heads = []
    for h in range(HEADS):                          # static unroll (2 heads)
        q = qkv[:, h * DHEAD:(h + 1) * DHEAD]
        k = qkv[:, HIDDEN + h * DHEAD:HIDDEN + (h + 1) * DHEAD]
        v = qkv[:, 2 * HIDDEN + h * DHEAD:2 * HIDDEN + (h + 1) * DHEAD]
        # q @ k^T via dot_general (contract last dims), bf16 in / f32 acc
        s = jax.lax.dot_general(
            q.astype(jnp.bfloat16), k.astype(jnp.bfloat16),
            (((1,), (1,)), ((), ())),
            preferred_element_type=jnp.float32) * ATTN_SCALE + mask_add
        s = s - jnp.max(s, axis=-1, keepdims=True)
        p = jnp.exp(s)
        # normalization via EUP approx reciprocal (frees the VALU divide)
        p = p * pl.reciprocal(jnp.sum(p, axis=-1, keepdims=True), approx=True)
        ctx_heads.append(
            jnp.dot(p.astype(jnp.bfloat16), v.astype(jnp.bfloat16),
                    preferred_element_type=jnp.float32))       # (S, DHEAD)
    ctx = jnp.concatenate(ctx_heads, axis=-1)                    # (S, H)

    # ---- attention output proj + residual + LN --------------------------------
    attn_out = _bf16_dot(ctx, wo_ref, bo_ref)
    h1 = _ln(x + attn_out, ln1g_ref[...], ln1b_ref[...])

    # ---- FFN + residual + LN ---------------------------------------------------
    ffn = _bf16_dot(h1, w1_ref, b1_ref)
    # TODO(synk): HF BERT uses exact erf-GELU; tanh approximation used here.
    ffn = jax.nn.gelu(ffn, approximate=True)
    ffn = _bf16_dot(ffn, w2_ref, b2_ref)
    h2 = _ln(h1 + ffn, ln2g_ref[...], ln2b_ref[...])

    o_ref[0] = h2


def encoder_layer(x, mask_add, p):
    """x: (B, S, H) f32, mask_add: (B, 1, S) f32 -> (B, S, H) f32."""
    B, S, H = x.shape

    def full_spec(a):
        # weight / bias / LN params: whole-array block, resident across the grid
        return pl.BlockSpec(a.shape, lambda b, _nd=a.ndim: (0,) * _nd)

    args = (x, mask_add,
            p["wqkv"], p["bqkv"], p["wo"], p["bo"],
            p["ln1_g"], p["ln1_b"],
            p["w1"], p["b1"], p["w2"], p["b2"],
            p["ln2_g"], p["ln2_b"])

    in_specs = [pl.BlockSpec((1, S, H), lambda b: (b, 0, 0)),
                pl.BlockSpec((1, 1, S), lambda b: (b, 0, 0))]
    in_specs += [full_spec(a) for a in args[2:]]

    return pl.pallas_call(
        _encoder_layer_kernel,
        out_shape=jax.ShapeDtypeStruct((B, S, H), jnp.float32),
        grid=(B,),
        in_specs=in_specs,
        out_specs=pl.BlockSpec((1, S, H), lambda b: (b, 0, 0)),
        compiler_params=pltpu.CompilerParams(
            dimension_semantics=("parallel",)),
    )(*args)


# ------------------------------ embedding LayerNorm ---------------------------
def _layernorm_kernel(x_ref, g_ref, b_ref, o_ref):
    o_ref[...] = _ln(x_ref[...], g_ref[...], b_ref[...])


def layernorm(x, g, b):
    """x: (M, H) f32, g/b: (1, H) f32 -> (M, H) f32."""
    M, H = x.shape
    return pl.pallas_call(
        _layernorm_kernel,
        out_shape=jax.ShapeDtypeStruct((M, H), jnp.float32),
        in_specs=[VMEM_SPEC, VMEM_SPEC, VMEM_SPEC],
        out_specs=VMEM_SPEC,
    )(x, g, b)


# --------------------- fused mean-pool + classifier head ----------------------
def _pool_head_kernel(h_ref, w_ref, b_ref, o_ref):
    pooled = jnp.mean(h_ref[...], axis=1)                        # (B, H) f32
    o_ref[...] = jnp.dot(pooled.astype(jnp.bfloat16), w_ref[...],
                         preferred_element_type=jnp.float32) + b_ref[...]


def pool_head(h, w_pad, b_pad):
    """h: (B, S, H) f32, w_pad: (H, CLS_PAD) bf16, b_pad: (1, CLS_PAD) f32."""
    B = h.shape[0]
    return pl.pallas_call(
        _pool_head_kernel,
        out_shape=jax.ShapeDtypeStruct((B, CLS_PAD), jnp.float32),
        in_specs=[VMEM_SPEC, VMEM_SPEC, VMEM_SPEC],
        out_specs=VMEM_SPEC,
    )(h, w_pad, b_pad)


# ------------------------------ params & forward ------------------------------
def init_params(key):
    keys = iter(jax.random.split(key, 8 + 8 * LAYERS))

    def w(k, din, dout):
        return 0.02 * jax.random.normal(k, (din, dout), jnp.float32)

    params = {
        "word_emb": 0.02 * jax.random.normal(next(keys), (VOCAB, HIDDEN), jnp.float32),
        "pos_emb": 0.02 * jax.random.normal(next(keys), (MAX_POS, HIDDEN), jnp.float32),
        "type_emb": 0.02 * jax.random.normal(next(keys), (2, HIDDEN), jnp.float32),
        "emb_ln_g": jnp.ones((1, HIDDEN), jnp.float32),
        "emb_ln_b": jnp.zeros((1, HIDDEN), jnp.float32),
        "layers": [],
    }
    for _ in range(LAYERS):
        wq = w(next(keys), HIDDEN, HIDDEN)
        wk = w(next(keys), HIDDEN, HIDDEN)
        wv = w(next(keys), HIDDEN, HIDDEN)
        wo = w(next(keys), HIDDEN, HIDDEN)
        w1 = w(next(keys), HIDDEN, INTERMEDIATE)
        w2 = w(next(keys), INTERMEDIATE, HIDDEN)
        params["layers"].append(dict(
            # Q|K|V fused into one (H, 3H) bf16 weight -> one wide MXU pass.
            wqkv=jnp.concatenate([wq, wk, wv], axis=1).astype(jnp.bfloat16),
            bqkv=jnp.zeros((1, 3 * HIDDEN), jnp.float32),
            wo=wo.astype(jnp.bfloat16),
            bo=jnp.zeros((1, HIDDEN), jnp.float32),
            ln1_g=jnp.ones((1, HIDDEN), jnp.float32),
            ln1_b=jnp.zeros((1, HIDDEN), jnp.float32),
            w1=w1.astype(jnp.bfloat16),
            b1=jnp.zeros((1, INTERMEDIATE), jnp.float32),
            w2=w2.astype(jnp.bfloat16),
            b2=jnp.zeros((1, HIDDEN), jnp.float32),
            ln2_g=jnp.ones((1, HIDDEN), jnp.float32),
            ln2_b=jnp.zeros((1, HIDDEN), jnp.float32),
        ))
    # classifier head (the module's self.l1 = nn.Linear(hidden, num_labels)),
    # padded to a 128-lane output; the real 3 logits are sliced outside.
    cls_w = w(next(keys), HIDDEN, NUM_LABELS)
    cls_b = jnp.zeros((NUM_LABELS,), jnp.float32)
    params["cls_w_pad"] = (jnp.zeros((HIDDEN, CLS_PAD), jnp.float32)
                           .at[:, :NUM_LABELS].set(cls_w)).astype(jnp.bfloat16)
    params["cls_b_pad"] = (jnp.zeros((1, CLS_PAD), jnp.float32)
                           .at[:, :NUM_LABELS].set(cls_b))
    return params


def model_forward(params, input_ids, attention_masks):
    """Mirrors Model.forward: BERT -> hidden_states[-2] -> mean(dim=1)
    -> Dropout(0.3) (identity in eval) -> Linear(hidden, num_labels)."""
    B, S = input_ids.shape

    # embeddings (lookup = glue, LayerNorm = Pallas)
    emb = (params["word_emb"][input_ids]
           + params["pos_emb"][:S][None, :, :]
           + params["type_emb"][0][None, None, :])
    x = layernorm(emb.reshape(B * S, HIDDEN),
                  params["emb_ln_g"], params["emb_ln_b"]).reshape(B, S, HIDDEN)

    # HF-style additive attention mask, broadcast inside the kernel
    mask_add = ((1.0 - attention_masks.astype(jnp.float32)) * -10000.0
                ).reshape(B, 1, S)

    hidden_states = [x]                 # outputs[2] in HF: all hidden states
    for layer_params in params["layers"]:
        x = encoder_layer(x, mask_add, layer_params)
        hidden_states.append(x)

    h = hidden_states[-2]               # second-to-last hidden state (B, S, H)
    logits_padded = pool_head(h, params["cls_w_pad"], params["cls_b_pad"])
    return logits_padded[:, :NUM_LABELS]


# ---------------------------------- main --------------------------------------
if __name__ == "__main__":
    BATCH, SEQ = 2, 128
    key = jax.random.PRNGKey(0)
    k_param, k_ids = jax.random.split(key)

    params = init_params(k_param)
    input_ids = jax.random.randint(k_ids, (BATCH, SEQ), 0, VOCAB, dtype=jnp.int32)
    attention_masks = jnp.ones((BATCH, SEQ), dtype=jnp.int32)

    logits = jax.jit(model_forward)(params, input_ids, attention_masks)
    jax.block_until_ready(logits)
    assert logits.shape == (BATCH, NUM_LABELS)
    assert bool(jnp.all(jnp.isfinite(logits)))
    print("KERNEL_OK")
</pallas_src>

<mosaic_0001>
module attributes {stable_mosaic.version = 11 : i64} {
  func.func @_layernorm_kernel(%arg0: memref<256x128xf32, #tpu.memory_space<vmem>>, %arg1: memref<1x128xf32, #tpu.memory_space<vmem>>, %arg2: memref<1x128xf32, #tpu.memory_space<vmem>>, %arg3: memref<256x128xf32, #tpu.memory_space<vmem>>) attributes {dimension_semantics = [], scalar_prefetch = 0 : i64, scratch_operands = 0 : i64, tpu.core_type = #tpu.core_type<tc>} {
    %c0 = arith.constant 0 : index
    %c0_0 = arith.constant 0 : index
    %0 = vector.load %arg0[%c0, %c0_0] : memref<256x128xf32, #tpu.memory_space<vmem>>, vector<256x128xf32>
    %c0_1 = arith.constant 0 : index
    %c0_2 = arith.constant 0 : index
    %1 = vector.load %arg1[%c0_1, %c0_2] : memref<1x128xf32, #tpu.memory_space<vmem>>, vector<1x128xf32>
    %c0_3 = arith.constant 0 : index
    %c0_4 = arith.constant 0 : index
    %2 = vector.load %arg2[%c0_3, %c0_4] : memref<1x128xf32, #tpu.memory_space<vmem>>, vector<1x128xf32>
    %cst = arith.constant dense<0.000000e+00> : vector<256xf32>
    %3 = vector.multi_reduction <add>, %0, %cst [1] : vector<256x128xf32> to vector<256xf32>
    %4 = vector.shape_cast %3 : vector<256xf32> to vector<256x1xf32>
    %cst_5 = arith.constant 1.280000e+02 : f32
    %5 = vector.broadcast %cst_5 : f32 to vector<256x1xf32>
    %6 = arith.divf %4, %5 : vector<256x1xf32>
    %7 = vector.broadcast %6 : vector<256x1xf32> to vector<256x128xf32>
    %8 = arith.subf %0, %7 : vector<256x128xf32>
    %9 = arith.mulf %8, %8 : vector<256x128xf32>
    %cst_6 = arith.constant dense<0.000000e+00> : vector<256xf32>
    %10 = vector.multi_reduction <add>, %9, %cst_6 [1] : vector<256x128xf32> to vector<256xf32>
    %11 = vector.shape_cast %10 : vector<256xf32> to vector<256x1xf32>
    %cst_7 = arith.constant 1.280000e+02 : f32
    %12 = vector.broadcast %cst_7 : f32 to vector<256x1xf32>
    %13 = arith.divf %11, %12 : vector<256x1xf32>
    %14 = vector.broadcast %6 : vector<256x1xf32> to vector<256x128xf32>
    %15 = arith.subf %0, %14 : vector<256x128xf32>
    %cst_8 = arith.constant 9.99999996E-13 : f32
    %16 = vector.broadcast %cst_8 : f32 to vector<256x1xf32>
    %17 = arith.addf %13, %16 : vector<256x1xf32>
    %18 = math.rsqrt %17 : vector<256x1xf32>
    %19 = vector.broadcast %18 : vector<256x1xf32> to vector<256x128xf32>
    %20 = arith.mulf %15, %19 : vector<256x128xf32>
    %21 = vector.broadcast %1 : vector<1x128xf32> to vector<256x128xf32>
    %22 = arith.mulf %20, %21 : vector<256x128xf32>
    %23 = vector.broadcast %2 : vector<1x128xf32> to vector<256x128xf32>
    %24 = arith.addf %22, %23 : vector<256x128xf32>
    %c0_9 = arith.constant 0 : index
    %c0_10 = arith.constant 0 : index
    %25 = vector.load %arg3[%c0_9, %c0_10] : memref<256x128xf32, #tpu.memory_space<vmem>>, vector<256x128xf32>
    tpu.vector_store %arg3[%c0_9, %c0_10], %24 {strides = array<i32>} : memref<256x128xf32, #tpu.memory_space<vmem>>, vector<256x128xf32>,
    return
  }
}

module attributes {stable_mosaic.version = 11 : i64} {
  func.func @_pool_head_kernel(%arg0: memref<2x128x128xf32, #tpu.memory_space<vmem>>, %arg1: memref<128x128xbf16, #tpu.memory_space<vmem>>, %arg2: memref<1x128xf32, #tpu.memory_space<vmem>>, %arg3: memref<2x128xf32, #tpu.memory_space<vmem>>) attributes {dimension_semantics = [], scalar_prefetch = 0 : i64, scratch_operands = 0 : i64, tpu.core_type = #tpu.core_type<tc>} {
    %c0 = arith.constant 0 : index
    %c0_0 = arith.constant 0 : index
    %c0_1 = arith.constant 0 : index
    %0 = vector.load %arg0[%c0, %c0_0, %c0_1] : memref<2x128x128xf32, #tpu.memory_space<vmem>>, vector<2x128x128xf32>
    %cst = arith.constant dense<0.000000e+00> : vector<2x128xf32>
    %1 = vector.multi_reduction <add>, %0, %cst [1] : vector<2x128x128xf32> to vector<2x128xf32>
    %cst_2 = arith.constant 1.280000e+02 : f32
    %2 = vector.broadcast %cst_2 : f32 to vector<2x128xf32>
    %3 = arith.divf %1, %2 : vector<2x128xf32>
    %4 = arith.truncf %3 : vector<2x128xf32> to vector<2x128xbf16>
    %c0_3 = arith.constant 0 : index
    %c0_4 = arith.constant 0 : index
    %5 = vector.load %arg1[%c0_3, %c0_4] : memref<128x128xbf16, #tpu.memory_space<vmem>>, vector<128x128xbf16>
    %cst_5 = arith.constant dense<0.000000e+00> : vector<2x128xf32>
    %6 = tpu.matmul %4, %5, %cst_5 {dimension_numbers = #tpu.dot_dimension_numbers<[1], [0], [0], [1], [0, 0, 1, 1], [], []>} : vector<2x128xbf16>, vector<128x128xbf16>, vector<2x128xf32> -> vector<2x128xf32>
    %c0_6 = arith.constant 0 : index
    %c0_7 = arith.constant 0 : index
    %7 = vector.load %arg2[%c0_6, %c0_7] : memref<1x128xf32, #tpu.memory_space<vmem>>, vector<1x128xf32>
    %8 = vector.broadcast %7 : vector<1x128xf32> to vector<2x128xf32>
    %9 = arith.addf %6, %8 : vector<2x128xf32>
    %c0_8 = arith.constant 0 : index
    %c0_9 = arith.constant 0 : index
    %10 = vector.load %arg3[%c0_8, %c0_9] : memref<2x128xf32, #tpu.memory_space<vmem>>, vector<2x128xf32>
    tpu.vector_store %arg3[%c0_8, %c0_9], %9 {strides = array<i32>} : memref<2x128xf32, #tpu.memory_space<vmem>>, vector<2x128xf32>,
    return
  }
}

module attributes {stable_mosaic.version = 11 : i64} {
  func.func @_encoder_layer_kernel(%arg0: i32, %arg1: memref<1x128x128xf32, #tpu.memory_space<vmem>>, %arg2: memref<1x1x128xf32, #tpu.memory_space<vmem>>, %arg3: memref<128x384xbf16, #tpu.memory_space<vmem>>, %arg4: memref<1x384xf32, #tpu.memory_space<vmem>>, %arg5: memref<128x128xbf16, #tpu.memory_space<vmem>>, %arg6: memref<1x128xf32, #tpu.memory_space<vmem>>, %arg7: memref<1x128xf32, #tpu.memory_space<vmem>>, %arg8: memref<1x128xf32, #tpu.memory_space<vmem>>, %arg9: memref<128x512xbf16, #tpu.memory_space<vmem>>, %arg10: memref<1x512xf32, #tpu.memory_space<vmem>>, %arg11: memref<512x128xbf16, #tpu.memory_space<vmem>>, %arg12: memref<1x128xf32, #tpu.memory_space<vmem>>, %arg13: memref<1x128xf32, #tpu.memory_space<vmem>>, %arg14: memref<1x128xf32, #tpu.memory_space<vmem>>, %arg15: memref<1x128x128xf32, #tpu.memory_space<vmem>>) attributes {dimension_semantics = [#tpu.dimension_semantics<parallel>], iteration_bounds = array<i64: 2>, scalar_prefetch = 0 : i64, scratch_operands = 0 : i64, tpu.core_type = #tpu.core_type<tc>, window_params = [{transform_indices = @transform_0, window_bounds = array<i64: 1, 128, 128>}, {transform_indices = @transform_1, window_bounds = array<i64: 1, 1, 128>}, {pipeline_mode = #tpu.pipeline_mode<synchronous>, transform_indices = @transform_2, window_bounds = array<i64: 128, 384>}, {pipeline_mode = #tpu.pipeline_mode<synchronous>, transform_indices = @transform_3, window_bounds = array<i64: 1, 384>}, {pipeline_mode = #tpu.pipeline_mode<synchronous>, transform_indices = @transform_4, window_bounds = array<i64: 128, 128>}, {pipeline_mode = #tpu.pipeline_mode<synchronous>, transform_indices = @transform_5, window_bounds = array<i64: 1, 128>}, {pipeline_mode = #tpu.pipeline_mode<synchronous>, transform_indices = @transform_6, window_bounds = array<i64: 1, 128>}, {pipeline_mode = #tpu.pipeline_mode<synchronous>, transform_indices = @transform_7, window_bounds = array<i64: 1, 128>}, {pipeline_mode = #tpu.pipeline_mode<synchronous>, transform_indices = @transform_8, window_bounds = array<i64: 128, 512>}, {pipeline_mode = #tpu.pipeline_mode<synchronous>, transform_indices = @transform_9, window_bounds = array<i64: 1, 512>}, {pipeline_mode = #tpu.pipeline_mode<synchronous>, transform_indices = @transform_10, window_bounds = array<i64: 512, 128>}, {pipeline_mode = #tpu.pipeline_mode<synchronous>, transform_indices = @transform_11, window_bounds = array<i64: 1, 128>}, {pipeline_mode = #tpu.pipeline_mode<synchronous>, transform_indices = @transform_12, window_bounds = array<i64: 1, 128>}, {pipeline_mode = #tpu.pipeline_mode<synchronous>, transform_indices = @transform_13, window_bounds = array<i64: 1, 128>}, {transform_indices = @transform_14, window_bounds = array<i64: 1, 128, 128>}]} {
    %c0 = arith.constant 0 : index
    %c0_0 = arith.constant 0 : index
    %c0_1 = arith.constant 0 : index
    %0 = vector.load %arg1[%c0, %c0_0, %c0_1] : memref<1x128x128xf32, #tpu.memory_space<vmem>>, vector<1x128x128xf32>
    %1 = vector.shape_cast %0 : vector<1x128x128xf32> to vector<128x128xf32>
    %c0_2 = arith.constant 0 : index
    %c0_3 = arith.constant 0 : index
    %c0_4 = arith.constant 0 : index
    %2 = vector.load %arg2[%c0_2, %c0_3, %c0_4] : memref<1x1x128xf32, #tpu.memory_space<vmem>>, vector<1x1x128xf32>
    %3 = vector.shape_cast %2 : vector<1x1x128xf32> to vector<1x128xf32>
    %4 = arith.truncf %1 : vector<128x128xf32> to vector<128x128xbf16>
    %c0_5 = arith.constant 0 : index
    %c0_6 = arith.constant 0 : index
    %5 = vector.load %arg3[%c0_5, %c0_6] : memref<128x384xbf16, #tpu.memory_space<vmem>>, vector<128x384xbf16>
    %cst = arith.constant dense<0.000000e+00> : vector<128x384xf32>
    %6 = tpu.matmul %4, %5, %cst {dimension_numbers = #tpu.dot_dimension_numbers<[1], [0], [0], [1], [0, 0, 1, 1], [], []>} : vector<128x128xbf16>, vector<128x384xbf16>, vector<128x384xf32> -> vector<128x384xf32>
    %c0_7 = arith.constant 0 : index
    %c0_8 = arith.constant 0 : index
    %7 = vector.load %arg4[%c0_7, %c0_8] : memref<1x384xf32, #tpu.memory_space<vmem>>, vector<1x384xf32>
    %8 = vector.broadcast %7 : vector<1x384xf32> to vector<128x384xf32>
    %9 = arith.addf %6, %8 : vector<128x384xf32>
    %10 = vector.extract_strided_slice %9 {offsets = [0, 0], sizes = [128, 64], strides = [1, 1]} : vector<128x384xf32> to vector<128x64xf32>
    %11 = vector.extract_strided_slice %9 {offsets = [0, 128], sizes = [128, 64], strides = [1, 1]} : vector<128x384xf32> to vector<128x64xf32>
    %12 = vector.extract_strided_slice %9 {offsets = [0, 256], sizes = [128, 64], strides = [1, 1]} : vector<128x384xf32> to vector<128x64xf32>
    %13 = arith.truncf %10 : vector<128x64xf32> to vector<128x64xbf16>
    %14 = arith.truncf %11 : vector<128x64xf32> to vector<128x64xbf16>
    %cst_9 = arith.constant dense<0.000000e+00> : vector<128x128xf32>
    %15 = tpu.matmul %13, %14, %cst_9 {dimension_numbers = #tpu.dot_dimension_numbers<[1], [1], [0], [0], [0, 0, 1, 0], [], []>} : vector<128x64xbf16>, vector<128x64xbf16>, vector<128x128xf32> -> vector<128x128xf32>
    %cst_10 = arith.constant 1.250000e-01 : f32
    %16 = vector.broadcast %cst_10 : f32 to vector<128x128xf32>
    %17 = arith.mulf %15, %16 : vector<128x128xf32>
    %18 = vector.broadcast %3 : vector<1x128xf32> to vector<128x128xf32>
    %19 = arith.addf %17, %18 : vector<128x128xf32>
    %cst_11 = arith.constant dense<0xFF800000> : vector<128xf32>
    %20 = vector.multi_reduction <maximumf>, %19, %cst_11 [1] : vector<128x128xf32> to vector<128xf32>
    %21 = vector.shape_cast %20 : vector<128xf32> to vector<128x1xf32>
    %22 = vector.broadcast %21 : vector<128x1xf32> to vector<128x128xf32>
    %23 = arith.subf %19, %22 : vector<128x128xf32>
    %24 = math.exp %23 : vector<128x128xf32>
    %cst_12 = arith.constant dense<0.000000e+00> : vector<128xf32>
    %25 = vector.multi_reduction <add>, %24, %cst_12 [1] : vector<128x128xf32> to vector<128xf32>
    %26 = vector.shape_cast %25 : vector<128xf32> to vector<128x1xf32>
    %27 = tpu.reciprocal %26 {approx = true} : vector<128x1xf32> -> vector<128x1xf32>
    %28 = vector.broadcast %27 : vector<128x1xf32> to vector<128x128xf32>
    %29 = arith.mulf %24, %28 : vector<128x128xf32>
    %30 = arith.truncf %29 : vector<128x128xf32> to vector<128x128xbf16>
    %31 = arith.truncf %12 : vector<128x64xf32> to vector<128x64xbf16>
    %cst_13 = arith.constant dense<0.000000e+00> : vector<128x64xf32>
    %32 = tpu.matmul %30, %31, %cst_13 {dimension_numbers = #tpu.dot_dimension_numbers<[1], [0], [0], [1], [0, 0, 1, 1], [], []>} : vector<128x128xbf16>, vector<128x64xbf16>, vector<128x64xf32> -> vector<128x64xf32>
    %33 = vector.extract_strided_slice %9 {offsets = [0, 64], sizes = [128, 64], strides = [1, 1]} : vector<128x384xf32> to vector<128x64xf32>
    %34 = vector.extract_strided_slice %9 {offsets = [0, 192], sizes = [128, 64], strides = [1, 1]} : vector<128x384xf32> to vector<128x64xf32>
    %35 = vector.extract_strided_slice %9 {offsets = [0, 320], sizes = [128, 64], strides = [1, 1]} : vector<128x384xf32> to vector<128x64xf32>
    %36 = arith.truncf %33 : vector<128x64xf32> to vector<128x64xbf16>
    %37 = arith.truncf %34 : vector<128x64xf32> to vector<128x64xbf16>
    %cst_14 = arith.constant dense<0.000000e+00> : vector<128x128xf32>
    %38 = tpu.matmul %36, %37, %cst_14 {dimension_numbers = #tpu.dot_dimension_numbers<[1], [1], [0], [0], [0, 0, 1, 0], [], []>} : vector<128x64xbf16>, vector<128x64xbf16>, vector<128x128xf32> -> vector<128x128xf32>
    %cst_15 = arith.constant 1.250000e-01 : f32
    %39 = vector.broadcast %cst_15 : f32 to vector<128x128xf32>
    %40 = arith.mulf %38, %39 : vector<128x128xf32>
    %41 = vector.broadcast %3 : vector<1x128xf32> to vector<128x128xf32>
    %42 = arith.addf %40, %41 : vector<128x128xf32>
    %cst_16 = arith.constant dense<0xFF800000> : vector<128xf32>
    %43 = vector.multi_reduction <maximumf>, %42, %cst_16 [1] : vector<128x128xf32> to vector<128xf32>
    %44 = vector.shape_cast %43 : vector<128xf32> to vector<128x1xf32>
    %45 = vector.broadcast %44 : vector<128x1xf32> to vector<128x128xf32>
    %46 = arith.subf %42, %45 : vector<128x128xf32>
    %47 = math.exp %46 : vector<128x128xf32>
    %cst_17 = arith.constant dense<0.000000e+00> : vector<128xf32>
    %48 = vector.multi_reduction <add>, %47, %cst_17 [1] : vector<128x128xf32> to vector<128xf32>
    %49 = vector.shape_cast %48 : vector<128xf32> to vector<128x1xf32>
    %50 = tpu.reciprocal %49 {approx = true} : vector<128x1xf32> -> vector<128x1xf32>
    %51 = vector.broadcast %50 : vector<128x1xf32> to vector<128x128xf32>
    %52 = arith.mulf %47, %51 : vector<128x128xf32>
    %53 = arith.truncf %52 : vector<128x128xf32> to vector<128x128xbf16>
    %54 = arith.truncf %35 : vector<128x64xf32> to vector<128x64xbf16>
    %cst_18 = arith.constant dense<0.000000e+00> : vector<128x64xf32>
    %55 = tpu.matmul %53, %54, %cst_18 {dimension_numbers = #tpu.dot_dimension_numbers<[1], [0], [0], [1], [0, 0, 1, 1], [], []>} : vector<128x128xbf16>, vector<128x64xbf16>, vector<128x64xf32> -> vector<128x64xf32>
    %56 = tpu.concatenate %32, %55 in 1 : vector<128x64xf32>, vector<128x64xf32> -> vector<128x128xf32>
    %57 = arith.truncf %56 : vector<128x128xf32> to vector<128x128xbf16>
    %c0_19 = arith.constant 0 : index
    %c0_20 = arith.constant 0 : index
    %58 = vector.load %arg5[%c0_19, %c0_20] : memref<128x128xbf16, #tpu.memory_space<vmem>>, vector<128x128xbf16>
    %cst_21 = arith.constant dense<0.000000e+00> : vector<128x128xf32>
    %59 = tpu.matmul %57, %58, %cst_21 {dimension_numbers = #tpu.dot_dimension_numbers<[1], [0], [0], [1], [0, 0, 1, 1], [], []>} : vector<128x128xbf16>, vector<128x128xbf16>, vector<128x128xf32> -> vector<128x128xf32>
    %c0_22 = arith.constant 0 : index
    %c0_23 = arith.constant 0 : index
    %60 = vector.load %arg6[%c0_22, %c0_23] : memref<1x128xf32, #tpu.memory_space<vmem>>, vector<1x128xf32>
    %61 = vector.broadcast %60 : vector<1x128xf32> to vector<128x128xf32>
    %62 = arith.addf %59, %61 : vector<128x128xf32>
    %63 = arith.addf %1, %62 : vector<128x128xf32>
    %c0_24 = arith.constant 0 : index
    %c0_25 = arith.constant 0 : index
    %64 = vector.load %arg7[%c0_24, %c0_25] : memref<1x128xf32, #tpu.memory_space<vmem>>, vector<1x128xf32>
    %c0_26 = arith.constant 0 : index
    %c0_27 = arith.constant 0 : index
    %65 = vector.load %arg8[%c0_26, %c0_27] : memref<1x128xf32, #tpu.memory_space<vmem>>, vector<1x128xf32>
    %cst_28 = arith.constant dense<0.000000e+00> : vector<128xf32>
    %66 = vector.multi_reduction <add>, %63, %cst_28 [1] : vector<128x128xf32> to vector<128xf32>
    %67 = vector.shape_cast %66 : vector<128xf32> to vector<128x1xf32>
    %cst_29 = arith.constant 1.280000e+02 : f32
    %68 = vector.broadcast %cst_29 : f32 to vector<128x1xf32>
    %69 = arith.divf %67, %68 : vector<128x1xf32>
    %70 = vector.broadcast %69 : vector<128x1xf32> to vector<128x128xf32>
    %71 = arith.subf %63, %70 : vector<128x128xf32>
    %72 = arith.mulf %71, %71 : vector<128x128xf32>
    %cst_30 = arith.constant dense<0.000000e+00> : vector<128xf32>
    %73 = vector.multi_reduction <add>, %72, %cst_30 [1] : vector<128x128xf32> to vector<128xf32>
    %74 = vector.shape_cast %73 : vector<128xf32> to vector<128x1xf32>
    %cst_31 = arith.constant 1.280000e+02 : f32
    %75 = vector.broadcast %cst_31 : f32 to vector<128x1xf32>
    %76 = arith.divf %74, %75 : vector<128x1xf32>
    %77 = vector.broadcast %69 : vector<128x1xf32> to vector<128x128xf32>
    %78 = arith.subf %63, %77 : vector<128x128xf32>
    %cst_32 = arith.constant 9.99999996E-13 : f32
    %79 = vector.broadcast %cst_32 : f32 to vector<128x1xf32>
    %80 = arith.addf %76, %79 : vector<128x1xf32>
    %81 = math.rsqrt %80 : vector<128x1xf32>
    %82 = vector.broadcast %81 : vector<128x1xf32> to vector<128x128xf32>
    %83 = arith.mulf %78, %82 : vector<128x128xf32>
    %84 = vector.broadcast %64 : vector<1x128xf32> to vector<128x128xf32>
    %85 = arith.mulf %83, %84 : vector<128x128xf32>
    %86 = vector.broadcast %65 : vector<1x128xf32> to vector<128x128xf32>
    %87 = arith.addf %85, %86 : vector<128x128xf32>
    %88 = arith.truncf %87 : vector<128x128xf32> to vector<128x128xbf16>
    %c0_33 = arith.constant 0 : index
    %c0_34 = arith.constant 0 : index
    %89 = vector.load %arg9[%c0_33, %c0_34] : memref<128x512xbf16, #tpu.memory_space<vmem>>, vector<128x512xbf16>
    %cst_35 = arith.constant dense<0.000000e+00> : vector<128x512xf32>
    %90 = tpu.matmul %88, %89, %cst_35 {dimension_numbers = #tpu.dot_dimension_numbers<[1], [0], [0], [1], [0, 0, 1, 1], [], []>} : vector<128x128xbf16>, vector<128x512xbf16>, vector<128x512xf32> -> vector<128x512xf32>
    %c0_36 = arith.constant 0 : index
    %c0_37 = arith.constant 0 : index
    %91 = vector.load %arg10[%c0_36, %c0_37] : memref<1x512xf32, #tpu.memory_space<vmem>>, vector<1x512xf32>
    %92 = vector.broadcast %91 : vector<1x512xf32> to vector<128x512xf32>
    %93 = arith.addf %90, %92 : vector<128x512xf32>
    %94 = arith.mulf %93, %93 : vector<128x512xf32>
    %95 = arith.mulf %93, %94 : vector<128x512xf32>
    %cst_38 = arith.constant 4.471500e-02 : f32
    %96 = vector.broadcast %cst_38 : f32 to vector<128x512xf32>
    %97 = arith.mulf %96, %95 : vector<128x512xf32>
    %98 = arith.addf %93, %97 : vector<128x512xf32>
    %cst_39 = arith.constant 0.797884583 : f32
    %99 = vector.broadcast %cst_39 : f32 to vector<128x512xf32>
    %100 = arith.mulf %99, %98 : vector<128x512xf32>
    %101 = math.tanh %100 : vector<128x512xf32>
    %cst_40 = arith.constant 1.000000e+00 : f32
    %102 = vector.broadcast %cst_40 : f32 to vector<128x512xf32>
    %103 = arith.addf %102, %101 : vector<128x512xf32>
    %cst_41 = arith.constant 5.000000e-01 : f32
    %104 = vector.broadcast %cst_41 : f32 to vector<128x512xf32>
    %105 = arith.mulf %104, %103 : vector<128x512xf32>
    %106 = arith.mulf %93, %105 : vector<128x512xf32>
    %107 = arith.truncf %106 : vector<128x512xf32> to vector<128x512xbf16>
    %c0_42 = arith.constant 0 : index
    %c0_43 = arith.constant 0 : index
    %108 = vector.load %arg11[%c0_42, %c0_43] : memref<512x128xbf16, #tpu.memory_space<vmem>>, vector<512x128xbf16>
    %cst_44 = arith.constant dense<0.000000e+00> : vector<128x128xf32>
    %109 = tpu.matmul %107, %108, %cst_44 {dimension_numbers = #tpu.dot_dimension_numbers<[1], [0], [0], [1], [0, 0, 1, 1], [], []>} : vector<128x512xbf16>, vector<512x128xbf16>, vector<128x128xf32> -> vector<128x128xf32>
    %c0_45 = arith.constant 0 : index
    %c0_46 = arith.constant 0 : index
    %110 = vector.load %arg12[%c0_45, %c0_46] : memref<1x128xf32, #tpu.memory_space<vmem>>, vector<1x128xf32>
    %111 = vector.broadcast %110 : vector<1x128xf32> to vector<128x128xf32>
    %112 = arith.addf %109, %111 : vector<128x128xf32>
    %113 = arith.addf %87, %112 : vector<128x128xf32>
    %c0_47 = arith.constant 0 : index
    %c0_48 = arith.constant 0 : index
    %114 = vector.load %arg13[%c0_47, %c0_48] : memref<1x128xf32, #tpu.memory_space<vmem>>, vector<1x128xf32>
    %c0_49 = arith.constant 0 : index
    %c0_50 = arith.constant 0 : index
    %115 = vector.load %arg14[%c0_49, %c0_50] : memref<1x128xf32, #tpu.memory_space<vmem>>, vector<1x128xf32>
    %cst_51 = arith.constant dense<0.000000e+00> : vector<128xf32>
    %116 = vector.multi_reduction <add>, %113, %cst_51 [1] : vector<128x128xf32> to vector<128xf32>
    %117 = vector.shape_cast %116 : vector<128xf32> to vector<128x1xf32>
    %cst_52 = arith.constant 1.280000e+02 : f32
    %118 = vector.broadcast %cst_52 : f32 to vector<128x1xf32>
    %119 = arith.divf %117, %118 : vector<128x1xf32>
    %120 = vector.broadcast %119 : vector<128x1xf32> to vector<128x128xf32>
    %121 = arith.subf %113, %120 : vector<128x128xf32>
    %122 = arith.mulf %121, %121 : vector<128x128xf32>
    %cst_53 = arith.constant dense<0.000000e+00> : vector<128xf32>
    %123 = vector.multi_reduction <add>, %122, %cst_53 [1] : vector<128x128xf32> to vector<128xf32>
    %124 = vector.shape_cast %123 : vector<128xf32> to vector<128x1xf32>
    %cst_54 = arith.constant 1.280000e+02 : f32
    %125 = vector.broadcast %cst_54 : f32 to vector<128x1xf32>
    %126 = arith.divf %124, %125 : vector<128x1xf32>
    %127 = vector.broadcast %119 : vector<128x1xf32> to vector<128x128xf32>
    %128 = arith.subf %113, %127 : vector<128x128xf32>
    %cst_55 = arith.constant 9.99999996E-13 : f32
    %129 = vector.broadcast %cst_55 : f32 to vector<128x1xf32>
    %130 = arith.addf %126, %129 : vector<128x1xf32>
    %131 = math.rsqrt %130 : vector<128x1xf32>
    %132 = vector.broadcast %131 : vector<128x1xf32> to vector<128x128xf32>
    %133 = arith.mulf %128, %132 : vector<128x128xf32>
    %134 = vector.broadcast %114 : vector<1x128xf32> to vector<128x128xf32>
    %135 = arith.mulf %133, %134 : vector<128x128xf32>
    %136 = vector.broadcast %115 : vector<1x128xf32> to vector<128x128xf32>
    %137 = arith.addf %135, %136 : vector<128x128xf32>
    %c0_56 = arith.constant 0 : index
    %c0_57 = arith.constant 0 : index
    %c0_58 = arith.constant 0 : index
    %138 = vector.load %arg15[%c0_56, %c0_57, %c0_58] : memref<1x128x128xf32, #tpu.memory_space<vmem>>, vector<1x128x128xf32>
    %139 = vector.shape_cast %138 : vector<1x128x128xf32> to vector<128x128xf32>
    %140 = vector.shape_cast %137 : vector<128x128xf32> to vector<1x128x128xf32>
    tpu.vector_store %arg15[%c0_56, %c0_57, %c0_58], %140 {strides = array<i32>} : memref<1x128x128xf32, #tpu.memory_space<vmem>>, vector<1x128x128xf32>,
    return
  }
  func.func @transform_0(%arg0: i32) -> (i32, i32, i32) {
    %c0_i32 = arith.constant 0 : i32
    %c0_i32_0 = arith.constant 0 : i32
    %c0_i32_1 = arith.constant 0 : i32
    return %arg0, %c0_i32, %c0_i32_0 : i32, i32, i32
  }
  func.func @transform_1(%arg0: i32) -> (i32, i32, i32) {
    %c0_i32 = arith.constant 0 : i32
    %c0_i32_0 = arith.constant 0 : i32
    %c0_i32_1 = arith.constant 0 : i32
    return %arg0, %c0_i32, %c0_i32_0 : i32, i32, i32
  }
  func.func @transform_2(%arg0: i32) -> (i32, i32) {
    %c0_i32 = arith.constant 0 : i32
    %c0_i32_0 = arith.constant 0 : i32
    %c0_i32_1 = arith.constant 0 : i32
    return %c0_i32, %c0_i32_0 : i32, i32
  }
  func.func @transform_3(%arg0: i32) -> (i32, i32) {
    %c0_i32 = arith.constant 0 : i32
    %c0_i32_0 = arith.constant 0 : i32
    %c0_i32_1 = arith.constant 0 : i32
    return %c0_i32, %c0_i32_0 : i32, i32
  }
  func.func @transform_4(%arg0: i32) -> (i32, i32) {
    %c0_i32 = arith.constant 0 : i32
    %c0_i32_0 = arith.constant 0 : i32
    %c0_i32_1 = arith.constant 0 : i32
    return %c0_i32, %c0_i32_0 : i32, i32
  }
  func.func @transform_5(%arg0: i32) -> (i32, i32) {
    %c0_i32 = arith.constant 0 : i32
    %c0_i32_0 = arith.constant 0 : i32
    %c0_i32_1 = arith.constant 0 : i32
    return %c0_i32, %c0_i32_0 : i32, i32
  }
  func.func @transform_6(%arg0: i32) -> (i32, i32) {
    %c0_i32 = arith.constant 0 : i32
    %c0_i32_0 = arith.constant 0 : i32
    %c0_i32_1 = arith.constant 0 : i32
    return %c0_i32, %c0_i32_0 : i32, i32
  }
  func.func @transform_7(%arg0: i32) -> (i32, i32) {
    %c0_i32 = arith.constant 0 : i32
    %c0_i32_0 = arith.constant 0 : i32
    %c0_i32_1 = arith.constant 0 : i32
    return %c0_i32, %c0_i32_0 : i32, i32
  }
  func.func @transform_8(%arg0: i32) -> (i32, i32) {
    %c0_i32 = arith.constant 0 : i32
    %c0_i32_0 = arith.constant 0 : i32
    %c0_i32_1 = arith.constant 0 : i32
    return %c0_i32, %c0_i32_0 : i32, i32
  }
  func.func @transform_9(%arg0: i32) -> (i32, i32) {
    %c0_i32 = arith.constant 0 : i32
    %c0_i32_0 = arith.constant 0 : i32
    %c0_i32_1 = arith.constant 0 : i32
    return %c0_i32, %c0_i32_0 : i32, i32
  }
  func.func @transform_10(%arg0: i32) -> (i32, i32) {
    %c0_i32 = arith.constant 0 : i32
    %c0_i32_0 = arith.constant 0 : i32
    %c0_i32_1 = arith.constant 0 : i32
    return %c0_i32, %c0_i32_0 : i32, i32
  }
  func.func @transform_11(%arg0: i32) -> (i32, i32) {
    %c0_i32 = arith.constant 0 : i32
    %c0_i32_0 = arith.constant 0 : i32
    %c0_i32_1 = arith.constant 0 : i32
    return %c0_i32, %c0_i32_0 : i32, i32
  }
  func.func @transform_12(%arg0: i32) -> (i32, i32) {
    %c0_i32 = arith.constant 0 : i32
    %c0_i32_0 = arith.constant 0 : i32
    %c0_i32_1 = arith.constant 0 : i32
    return %c0_i32, %c0_i32_0 : i32, i32
  }
  func.func @transform_13(%arg0: i32) -> (i32, i32) {
    %c0_i32 = arith.constant 0 : i32
    %c0_i32_0 = arith.constant 0 : i32
    %c0_i32_1 = arith.constant 0 : i32
    return %c0_i32, %c0_i32_0 : i32, i32
  }
  func.func @transform_14(%arg0: i32) -> (i32, i32, i32) {
    %c0_i32 = arith.constant 0 : i32
    %c0_i32_0 = arith.constant 0 : i32
    %c0_i32_1 = arith.constant 0 : i32
    return %arg0, %c0_i32, %c0_i32_0 : i32, i32, i32
  }
}

</mosaic_0001>

<bundles_post_ra>
// kernel: model_forward.3
= control target key start
LH: loop header
LB: loop body
LE: loop exit
PB: predicated region body
PF: predicated region fallthrough
CT: control target
= control target key end

     0   :  { %s1153_s0 = inlined_call_operand.vmem [shape: f32[256,128], index: 0, kind: input, shape index: {}]   ;;  %s1154_s1 = inlined_call_operand.vmem [shape: f32[1,128], index: 1, kind: input, shape index: {}]   ;;  %s1155_s2 = inlined_call_operand.vmem [shape: f32[1,128], index: 2, kind: input, shape index: {}]   ;;  %s1156_s3 = inlined_call_operand.vmem [shape: f32[256,128], index: 3, kind: output, shape index: {}]  }
   0x1   :  { %v602_v0 = vld [vmem:[%s1153_s0] sm:$0xff]  ;;  %v607_v1 = vld [vmem:[%s1153_s0 + $0x10] sm:$0xff]  ;;  %v614_v2 = vld [vmem:[%s1153_s0 + $0x8] sm:$0xff] }
   0x2   :  { %48 = vadd.xlane.f32.xlu0 %v602_v0  ;;  %52 = vadd.xlane.f32.xlu1 %v607_v1  ;;  %v619_v3 = vld [vmem:[%s1153_s0 + $0x18] sm:$0xff]  ;;  %v626_v4 = vld [vmem:[%s1153_s0 + $0x20] sm:$0xff]  ;;  %v631_v5 = vld [vmem:[%s1153_s0 + $0x28] sm:$0xff] }
   0x3   :  { %v638_v6 = vld [vmem:[%s1153_s0 + $0x30] sm:$0xff]  ;;  %v643_v7 = vld [vmem:[%s1153_s0 + $0x38] sm:$0xff]  ;;  %v650_v8 = vld [vmem:[%s1153_s0 + $0x40] sm:$0xff] }
   0x4   :  { %v655_v9 = vld [vmem:[%s1153_s0 + $0x48] sm:$0xff]  ;;  %v662_v10 = vld [vmem:[%s1153_s0 + $0x50] sm:$0xff]  ;;  %v667_v11 = vld [vmem:[%s1153_s0 + $0x58] sm:$0xff] }
   0x5   :  { %v674_v12 = vld [vmem:[%s1153_s0 + $0x60] sm:$0xff]  ;;  %v679_v13 = vld [vmem:[%s1153_s0 + $0x68] sm:$0xff]  ;;  %v686_v14 = vld [vmem:[%s1153_s0 + $0x70] sm:$0xff] }
   0x6   :  { %50 = vadd.xlane.f32.xlu0 %v614_v2  ;;  %54 = vadd.xlane.f32.xlu1 %v619_v3  ;;  %v691_v15 = vld [vmem:[%s1153_s0 + $0x78] sm:$0xff]  ;;  %v698_v16 = vld [vmem:[%s1153_s0 + $0x80] sm:$0xff]  ;;  %v703_v17 = vld [vmem:[%s1153_s0 + $0x88] sm:$0xff] }
   0x7   :  { %v710_v18 = vld [vmem:[%s1153_s0 + $0x90] sm:$0xff]  ;;  %v715_v19 = vld [vmem:[%s1153_s0 + $0x98] sm:$0xff]  ;;  %v722_v20 = vld [vmem:[%s1153_s0 + $0xa0] sm:$0xff] }
   0x8   :  { %v727_v21 = vld [vmem:[%s1153_s0 + $0xa8] sm:$0xff]  ;;  %v734_v22 = vld [vmem:[%s1153_s0 + $0xb0] sm:$0xff]  ;;  %v739_v23 = vld [vmem:[%s1153_s0 + $0xb8] sm:$0xff] }
   0x9   :  { %v746_v24 = vld [vmem:[%s1153_s0 + $0xc0] sm:$0xff]  ;;  %v751_v25 = vld [vmem:[%s1153_s0 + $0xc8] sm:$0xff]  ;;  %v758_v26 = vld [vmem:[%s1153_s0 + $0xd0] sm:$0xff] }
   0xa   :  { %56 = vadd.xlane.f32.xlu0 %v626_v4  ;;  %58 = vadd.xlane.f32.xlu1 %v631_v5  ;;  %v763_v27 = vld [vmem:[%s1153_s0 + $0xd8] sm:$0xff]  ;;  %v770_v28 = vld [vmem:[%s1153_s0 + $0xe0] sm:$0xff]  ;;  %v775_v29 = vld [vmem:[%s1153_s0 + $0xe8] sm:$0xff] }
   0xb   :  { %v782_v30 = vld [vmem:[%s1153_s0 + $0xf0] sm:$0xff]  ;;  %v787_v31 = vld [vmem:[%s1153_s0 + $0xf8] sm:$0xff] }
   0xe   :  { %60 = vadd.xlane.f32.xlu0 %v638_v6  ;;  %62 = vadd.xlane.f32.xlu1 %v643_v7 }
  0x12   :  { %64 = vadd.xlane.f32.xlu0 %v650_v8  ;;  %66 = vadd.xlane.f32.xlu1 %v655_v9 }
  0x16   :  { %68 = vadd.xlane.f32.xlu0 %v662_v10  ;;  %70 = vadd.xlane.f32.xlu1 %v667_v11 }
  0x1a   :  { %72 = vadd.xlane.f32.xlu0 %v674_v12  ;;  %74 = vadd.xlane.f32.xlu1 %v679_v13 }
  0x1e   :  { %76 = vadd.xlane.f32.xlu0 %v686_v14  ;;  %78 = vadd.xlane.f32.xlu1 %v691_v15 }
  0x22   :  { %80 = vadd.xlane.f32.xlu0 %v698_v16  ;;  %82 = vadd.xlane.f32.xlu1 %v703_v17 }
  0x26   :  { %84 = vadd.xlane.f32.xlu0 %v710_v18  ;;  %86 = vadd.xlane.f32.xlu1 %v715_v19 }
  0x2a   :  { %88 = vadd.xlane.f32.xlu0 %v722_v20  ;;  %90 = vadd.xlane.f32.xlu1 %v727_v21 }
  0x2e   :  { %92 = vadd.xlane.f32.xlu0 %v734_v22  ;;  %94 = vadd.xlane.f32.xlu1 %v739_v23 }
  0x32   :  { %96 = vadd.xlane.f32.xlu0 %v746_v24  ;;  %98 = vadd.xlane.f32.xlu1 %v751_v25 }
  0x36   :  { %100 = vadd.xlane.f32.xlu0 %v758_v26  ;;  %102 = vadd.xlane.f32.xlu1 %v763_v27 }
  0x3a   :  { %104 = vadd.xlane.f32.xlu0 %v770_v28  ;;  %106 = vadd.xlane.f32.xlu1 %v775_v29 }
  0x3e   :  { %108 = vadd.xlane.f32.xlu0 %v782_v30  ;;  %110 = vadd.xlane.f32.xlu1 %v787_v31 }
  0x8b   :  { %v49_v32 = vpop.xlane.xlu0 %48  ;;  %v53_v33 = vpop.xlane.xlu1 %52 }
  0x8c   :  { %v113_v34 = vmul.f32 0.0078125, %v49_v32  ;;  %v115_v35 = vmul.f32 0.0078125, %v53_v33 }
  0x8e   :  { %v792_v36 = vsub.f32 %v602_v0, %v113_v34  ;;  %v795_v37 = vsub.f32 %v607_v1, %v115_v35 }
  0x8f   :  { %v51_v38 = vpop.xlane.xlu0 %50  ;;  %v55_v39 = vpop.xlane.xlu1 %54 }
  0x90   :  { %v114_v40 = vmul.f32 0.0078125, %v51_v38  ;;  %v177_v41 = vmul.f32 %v792_v36, %v792_v36  ;;  %v116_v42 = vmul.f32 0.0078125, %v55_v39  ;;  %v179_v45 = vmul.f32 %v795_v37, %v795_v37 }
  0x92   :  { %v800_v43 = vsub.f32 %v614_v2, %v114_v40  ;;  %209 = vadd.xlane.f32.xlu0 %v177_v41  ;;  %v803_v44 = vsub.f32 %v619_v3, %v116_v42 }
  0x93   :  { %v57_v46 = vpop.xlane.xlu0 %56  ;;  %v59_v47 = vpop.xlane.xlu1 %58 }
  0x94   :  { %v117_v48 = vmul.f32 0.0078125, %v57_v46  ;;  %v178_v49 = vmul.f32 %v800_v43, %v800_v43  ;;  %v118_v50 = vmul.f32 0.0078125, %v59_v47  ;;  %v180_v53 = vmul.f32 %v803_v44, %v803_v44 }
  0x96   :  { %v810_v51 = vsub.f32 %v626_v4, %v117_v48  ;;  %213 = vadd.xlane.f32.xlu0 %v179_v45  ;;  %211 = vadd.xlane.f32.xlu1 %v178_v49  ;;  %v813_v52 = vsub.f32 %v631_v5, %v118_v50 }
  0x97   :  { %v61_v54 = vpop.xlane.xlu0 %60  ;;  %v63_v55 = vpop.xlane.xlu1 %62 }
  0x98   :  { %v119_v56 = vmul.f32 0.0078125, %v61_v54  ;;  %v181_v57 = vmul.f32 %v810_v51, %v810_v51  ;;  %v120_v58 = vmul.f32 0.0078125, %v63_v55  ;;  %v182_v61 = vmul.f32 %v813_v52, %v813_v52 }
  0x9a   :  { %v820_v59 = vsub.f32 %v638_v6, %v119_v56  ;;  %215 = vadd.xlane.f32.xlu1 %v180_v53  ;;  %217 = vadd.xlane.f32.xlu0 %v181_v57  ;;  %v823_v60 = vsub.f32 %v643_v7, %v120_v58 }
  0x9b   :  { %v65_v62 = vpop.xlane.xlu0 %64  ;;  %v67_v63 = vpop.xlane.xlu1 %66 }
  0x9c   :  { %v121_v0 = vmul.f32 0.0078125, %v65_v62  ;;  %v183_v1 = vmul.f32 %v820_v59, %v820_v59  ;;  %v122_v2 = vmul.f32 0.0078125, %v67_v63  ;;  %v184_v5 = vmul.f32 %v823_v60, %v823_v60 }
  0x9e   :  { %v830_v3 = vsub.f32 %v650_v8, %v121_v0  ;;  %219 = vadd.xlane.f32.xlu1 %v182_v61  ;;  %221 = vadd.xlane.f32.xlu0 %v183_v1  ;;  %v833_v4 = vsub.f32 %v655_v9, %v122_v2 }
  0x9f   :  { %v69_v6 = vpop.xlane.xlu0 %68  ;;  %v71_v7 = vpop.xlane.xlu1 %70 }
  0xa0   :  { %v123_v32 = vmul.f32 0.0078125, %v69_v6  ;;  %v185_v33 = vmul.f32 %v830_v3, %v830_v3  ;;  %v124_v34 = vmul.f32 0.0078125, %v71_v7  ;;  %v186_v9 = vmul.f32 %v833_v4, %v833_v4 }
  0xa2   :  { %v840_v35 = vsub.f32 %v662_v10, %v123_v32  ;;  %223 = vadd.xlane.f32.xlu1 %v184_v5  ;;  %225 = vadd.xlane.f32.xlu0 %v185_v33  ;;  %v843_v8 = vsub.f32 %v667_v11, %v124_v34 }
  0xa3   :  { %v73_v38 = vpop.xlane.xlu0 %72  ;;  %v75_v39 = vpop.xlane.xlu1 %74 }
  0xa4   :  { %v125_v40 = vmul.f32 0.0078125, %v73_v38  ;;  %v187_v41 = vmul.f32 %v840_v35, %v840_v35  ;;  %v126_v42 = vmul.f32 0.0078125, %v75_v39  ;;  %v188_v11 = vmul.f32 %v843_v8, %v843_v8 }
  0xa6   :  { %v850_v45 = vsub.f32 %v674_v12, %v125_v40  ;;  %227 = vadd.xlane.f32.xlu1 %v186_v9  ;;  %229 = vadd.xlane.f32.xlu0 %v187_v41  ;;  %v853_v10 = vsub.f32 %v679_v13, %v126_v42 }
  0xa7   :  { %v77_v46 = vpop.xlane.xlu0 %76  ;;  %v79_v47 = vpop.xlane.xlu1 %78 }
  0xa8   :  { %v127_v48 = vmul.f32 0.0078125, %v77_v46  ;;  %v189_v49 = vmul.f32 %v850_v45, %v850_v45  ;;  %v128_v50 = vmul.f32 0.0078125, %v79_v47  ;;  %v190_v13 = vmul.f32 %v853_v10, %v853_v10 }
  0xaa   :  { %v860_v53 = vsub.f32 %v686_v14, %v127_v48  ;;  %231 = vadd.xlane.f32.xlu1 %v188_v11  ;;  %233 = vadd.xlane.f32.xlu0 %v189_v49  ;;  %v863_v12 = vsub.f32 %v691_v15, %v128_v50 }
  0xab   :  { %v81_v54 = vpop.xlane.xlu0 %80  ;;  %v83_v55 = vpop.xlane.xlu1 %82 }
  0xac   :  { %v129_v56 = vmul.f32 0.0078125, %v81_v54  ;;  %v191_v57 = vmul.f32 %v860_v53, %v860_v53  ;;  %v130_v58 = vmul.f32 0.0078125, %v83_v55  ;;  %v192_v15 = vmul.f32 %v863_v12, %v863_v12 }
  0xae   :  { %v870_v61 = vsub.f32 %v698_v16, %v129_v56  ;;  %235 = vadd.xlane.f32.xlu1 %v190_v13  ;;  %237 = vadd.xlane.f32.xlu0 %v191_v57  ;;  %v873_v14 = vsub.f32 %v703_v17, %v130_v58 }
  0xaf   :  { %v85_v62 = vpop.xlane.xlu0 %84  ;;  %v87_v63 = vpop.xlane.xlu1 %86 }
  0xb0   :  { %v131_v0 = vmul.f32 0.0078125, %v85_v62  ;;  %v193_v1 = vmul.f32 %v870_v61, %v870_v61  ;;  %v132_v2 = vmul.f32 0.0078125, %v87_v63  ;;  %v194_v17 = vmul.f32 %v873_v14, %v873_v14 }
  0xb2   :  { %v880_v5 = vsub.f32 %v710_v18, %v131_v0  ;;  %239 = vadd.xlane.f32.xlu1 %v192_v15  ;;  %241 = vadd.xlane.f32.xlu0 %v193_v1  ;;  %v883_v16 = vsub.f32 %v715_v19, %v132_v2 }
  0xb3   :  { %v89_v6 = vpop.xlane.xlu0 %88  ;;  %v91_v7 = vpop.xlane.xlu1 %90 }
  0xb4   :  { %v133_v32 = vmul.f32 0.0078125, %v89_v6  ;;  %v195_v33 = vmul.f32 %v880_v5, %v880_v5  ;;  %v134_v34 = vmul.f32 0.0078125, %v91_v7  ;;  %v196_v19 = vmul.f32 %v883_v16, %v883_v16 }
  0xb6   :  { %v890_v9 = vsub.f32 %v722_v20, %v133_v32  ;;  %243 = vadd.xlane.f32.xlu1 %v194_v17  ;;  %245 = vadd.xlane.f32.xlu0 %v195_v33  ;;  %v893_v18 = vsub.f32 %v727_v21, %v134_v34 }
  0xb7   :  { %v93_v38 = vpop.xlane.xlu0 %92  ;;  %v95_v39 = vpop.xlane.xlu1 %94 }
  0xb8   :  { %v135_v40 = vmul.f32 0.0078125, %v93_v38  ;;  %v197_v41 = vmul.f32 %v890_v9, %v890_v9  ;;  %v136_v42 = vmul.f32 0.0078125, %v95_v39  ;;  %v198_v21 = vmul.f32 %v893_v18, %v893_v18 }
  0xba   :  { %v900_v11 = vsub.f32 %v734_v22, %v135_v40  ;;  %247 = vadd.xlane.f32.xlu1 %v196_v19  ;;  %249 = vadd.xlane.f32.xlu0 %v197_v41  ;;  %v903_v20 = vsub.f32 %v739_v23, %v136_v42 }
  0xbb   :  { %v97_v46 = vpop.xlane.xlu0 %96  ;;  %v99_v47 = vpop.xlane.xlu1 %98 }
  0xbc   :  { %v137_v48 = vmul.f32 0.0078125, %v97_v46  ;;  %v199_v49 = vmul.f32 %v900_v11, %v900_v11  ;;  %v138_v50 = vmul.f32 0.0078125, %v99_v47  ;;  %v200_v23 = vmul.f32 %v903_v20, %v903_v20 }
  0xbe   :  { %v910_v13 = vsub.f32 %v746_v24, %v137_v48  ;;  %251 = vadd.xlane.f32.xlu1 %v198_v21  ;;  %253 = vadd.xlane.f32.xlu0 %v199_v49  ;;  %v913_v22 = vsub.f32 %v751_v25, %v138_v50 }
  0xbf   :  { %v101_v54 = vpop.xlane.xlu0 %100  ;;  %v103_v55 = vpop.xlane.xlu1 %102 }
  0xc0   :  { %v139_v56 = vmul.f32 0.0078125, %v101_v54  ;;  %v201_v57 = vmul.f32 %v910_v13, %v910_v13  ;;  %v140_v58 = vmul.f32 0.0078125, %v103_v55  ;;  %v202_v25 = vmul.f32 %v913_v22, %v913_v22 }
  0xc2   :  { %v920_v15 = vsub.f32 %v758_v26, %v139_v56  ;;  %255 = vadd.xlane.f32.xlu1 %v200_v23  ;;  %257 = vadd.xlane.f32.xlu0 %v201_v57  ;;  %v923_v24 = vsub.f32 %v763_v27, %v140_v58 }
  0xc3   :  { %v105_v62 = vpop.xlane.xlu0 %104  ;;  %v107_v63 = vpop.xlane.xlu1 %106 }
  0xc4   :  { %v141_v0 = vmul.f32 0.0078125, %v105_v62  ;;  %v203_v1 = vmul.f32 %v920_v15, %v920_v15  ;;  %v142_v2 = vmul.f32 0.0078125, %v107_v63  ;;  %v204_v27 = vmul.f32 %v923_v24, %v923_v24 }
  0xc6   :  { %v930_v17 = vsub.f32 %v770_v28, %v141_v0  ;;  %259 = vadd.xlane.f32.xlu1 %v202_v25  ;;  %261 = vadd.xlane.f32.xlu0 %v203_v1  ;;  %v933_v26 = vsub.f32 %v775_v29, %v142_v2 }
  0xc7   :  { %v109_v6 = vpop.xlane.xlu0 %108  ;;  %v111_v7 = vpop.xlane.xlu1 %110 }
  0xc8   :  { %v143_v32 = vmul.f32 0.0078125, %v109_v6  ;;  %v205_v33 = vmul.f32 %v930_v17, %v930_v17  ;;  %v144_v34 = vmul.f32 0.0078125, %v111_v7  ;;  %v206_v29 = vmul.f32 %v933_v26, %v933_v26 }
  0xca   :  { %v940_v19 = vsub.f32 %v782_v30, %v143_v32  ;;  %263 = vadd.xlane.f32.xlu1 %v204_v27  ;;  %265 = vadd.xlane.f32.xlu0 %v205_v33  ;;  %v943_v28 = vsub.f32 %v787_v31, %v144_v34  ;;  %v954_v32 = vld [vmem:[%s1154_s1] ss:$0 sm:$0xff] }
  0xcc   :  { %v207_v38 = vmul.f32 %v940_v19, %v940_v19  ;;  %v208_v39 = vmul.f32 %v943_v28, %v943_v28 }
  0xce   :  { %267 = vadd.xlane.f32.xlu1 %v206_v29  ;;  %269 = vadd.xlane.f32.xlu0 %v207_v38  ;;  %v960_v38 = vld [vmem:[%s1155_s2] ss:$0 sm:$0xff] }
  0xd2   :  { %271 = vadd.xlane.f32.xlu1 %v208_v39 }
 0x11b   :  { %v210_v40 = vpop.xlane.xlu0 %209 }
 0x11c   :  { %v273_v30 = vmul.f32 0.0078125, %v210_v40 }
 0x11e   :  { %v305_v41 = vadd.f32 1e-12, %v273_v30 }
 0x11f   :  { %v212_v42 = vpop.xlane.xlu1 %211  ;;  %v214_v21 = vpop.xlane.xlu0 %213 }
 0x120   :  { %515 = vrsqrt.f32 %v305_v41  ;;  %v274_v31 = vmul.f32 0.0078125, %v212_v42  ;;  %v275_v46 = vmul.f32 0.0078125, %v214_v21 }
 0x122   :  { %v306_v47 = vadd.f32 1e-12, %v274_v31  ;;  %v307_v48 = vadd.f32 1e-12, %v275_v46 }
 0x123   :  { %v216_v49 = vpop.xlane.xlu1 %215  ;;  %v218_v50 = vpop.xlane.xlu0 %217 }
 0x124   :  { %517 = vrsqrt.f32 %v306_v47  ;;  %v276_v23 = vmul.f32 0.0078125, %v216_v49  ;;  %v277_v54 = vmul.f32 0.0078125, %v218_v50 }
 0x125   :  { %519 = vrsqrt.f32 %v307_v48 }
 0x126   :  { %v308_v55 = vadd.f32 1e-12, %v276_v23  ;;  %v309_v56 = vadd.f32 1e-12, %v277_v54 }
 0x127   :  { %v220_v57 = vpop.xlane.xlu1 %219  ;;  %v222_v58 = vpop.xlane.xlu0 %221 }
 0x128   :  { %521 = vrsqrt.f32 %v308_v55  ;;  %v278_v25 = vmul.f32 0.0078125, %v220_v57  ;;  %v279_v62 = vmul.f32 0.0078125, %v222_v58 }
 0x129   :  { %523 = vrsqrt.f32 %v309_v56 }
 0x12a   :  { %v310_v63 = vadd.f32 1e-12, %v278_v25  ;;  %v311_v0 = vadd.f32 1e-12, %v279_v62 }
 0x12b   :  { %v224_v1 = vpop.xlane.xlu1 %223  ;;  %v226_v2 = vpop.xlane.xlu0 %225 }
 0x12c   :  { %525 = vrsqrt.f32 %v310_v63  ;;  %v280_v27 = vmul.f32 0.0078125, %v224_v1  ;;  %v281_v6 = vmul.f32 0.0078125, %v226_v2 }
 0x12d   :  { %v516_v7 = vpop.eup %515  ;;  %527 = vrsqrt.f32 %v311_v0 }
 0x12e   :  { %v369_v33 = vmul.f32 %v516_v7, %v792_v36  ;;  %v312_v34 = vadd.f32 1e-12, %v280_v27  ;;  %v313_v29 = vadd.f32 1e-12, %v281_v6 }
 0x12f   :  { %v228_v39 = vpop.xlane.xlu1 %227  ;;  %v230_v40 = vpop.xlane.xlu0 %229 }
 0x130   :  { %v407_v30 = vmul.f32 %v954_v32, %v369_v33  ;;  %529 = vrsqrt.f32 %v312_v34  ;;  %v282_v41 = vmul.f32 0.0078125, %v228_v39  ;;  %v283_v42 = vmul.f32 0.0078125, %v230_v40 }
 0x131   :  { %v518_v21 = vpop.eup %517  ;;  %531 = vrsqrt.f32 %v313_v29 }
 0x132   :  { %v520_v31 = vpop.eup %519  ;;  %v445_v46 = vadd.f32 %v960_v38, %v407_v30  ;;  %v370_v36 = vmul.f32 %v518_v21, %v800_v43  ;;  %v314_v47 = vadd.f32 1e-12, %v282_v41  ;;  %v315_v48 = vadd.f32 1e-12, %v283_v42 }
 0x133   :  { %v371_v49 = vmul.f32 %v520_v31, %v795_v37  ;;  %v232_v50 = vpop.xlane.xlu1 %231  ;;  %v234_v23 = vpop.xlane.xlu0 %233 }
 0x134   :  { %477 = vst [vmem:[%s1156_s3] sm:$0xff] %v445_v46  ;;  %v408_v54 = vmul.f32 %v954_v32, %v370_v36  ;;  %533 = vrsqrt.f32 %v314_v47  ;;  %v284_v55 = vmul.f32 0.0078125, %v232_v50  ;;  %v285_v56 = vmul.f32 0.0078125, %v234_v23 }
 0x135   :  { %v522_v57 = vpop.eup %521  ;;  %v409_v58 = vmul.f32 %v954_v32, %v371_v49  ;;  %535 = vrsqrt.f32 %v315_v48 }
 0x136   :  { %v524_v43 = vpop.eup %523  ;;  %v446_v25 = vadd.f32 %v960_v38, %v408_v54  ;;  %v372_v37 = vmul.f32 %v522_v57, %v803_v44  ;;  %v316_v62 = vadd.f32 1e-12, %v284_v55  ;;  %v317_v63 = vadd.f32 1e-12, %v285_v56 }
 0x137   :  { %v447_v0 = vadd.f32 %v960_v38, %v409_v58  ;;  %v373_v1 = vmul.f32 %v524_v43, %v810_v51  ;;  %v236_v2 = vpop.xlane.xlu1 %235  ;;  %v238_v27 = vpop.xlane.xlu0 %237 }
 0x138   :  { %478 = vst [vmem:[%s1156_s3 + $0x8] sm:$0xff] %v446_v25  ;;  %v410_v6 = vmul.f32 %v954_v32, %v372_v37  ;;  %537 = vrsqrt.f32 %v316_v62  ;;  %v286_v7 = vmul.f32 0.0078125, %v236_v2  ;;  %v287_v33 = vmul.f32 0.0078125, %v238_v27 }
 0x139   :  { %v526_v34 = vpop.eup %525  ;;  %479 = vst [vmem:[%s1156_s3 + $0x10] sm:$0xff] %v447_v0  ;;  %v411_v44 = vmul.f32 %v954_v32, %v373_v1  ;;  %539 = vrsqrt.f32 %v317_v63 }
 0x13a   :  { %v528_v51 = vpop.eup %527  ;;  %v448_v29 = vadd.f32 %v960_v38, %v410_v6  ;;  %v374_v39 = vmul.f32 %v526_v34, %v813_v52  ;;  %v318_v40 = vadd.f32 1e-12, %v286_v7  ;;  %v319_v30 = vadd.f32 1e-12, %v287_v33 }
 0x13b   :  { %v449_v41 = vadd.f32 %v960_v38, %v411_v44  ;;  %v375_v42 = vmul.f32 %v528_v51, %v820_v59  ;;  %v240_v21 = vpop.xlane.xlu1 %239  ;;  %v242_v31 = vpop.xlane.xlu0 %241 }
 0x13c   :  { %480 = vst [vmem:[%s1156_s3 + $0x18] sm:$0xff] %v448_v29  ;;  %v412_v46 = vmul.f32 %v954_v32, %v374_v39  ;;  %541 = vrsqrt.f32 %v318_v40  ;;  %v288_v36 = vmul.f32 0.0078125, %v240_v21  ;;  %v289_v47 = vmul.f32 0.0078125, %v242_v31 }
 0x13d   :  { %v530_v48 = vpop.eup %529  ;;  %481 = vst [vmem:[%s1156_s3 + $0x20] sm:$0xff] %v449_v41  ;;  %v413_v52 = vmul.f32 %v954_v32, %v375_v42  ;;  %543 = vrsqrt.f32 %v319_v30 }
 0x13e   :  { %v532_v59 = vpop.eup %531  ;;  %v450_v49 = vadd.f32 %v960_v38, %v412_v46  ;;  %v376_v50 = vmul.f32 %v530_v48, %v823_v60  ;;  %v320_v23 = vadd.f32 1e-12, %v288_v36  ;;  %v321_v54 = vadd.f32 1e-12, %v289_v47 }
 0x13f   :  { %v451_v55 = vadd.f32 %v960_v38, %v413_v52  ;;  %v377_v56 = vmul.f32 %v532_v59, %v830_v3  ;;  %v244_v57 = vpop.xlane.xlu1 %243  ;;  %v246_v58 = vpop.xlane.xlu0 %245 }
 0x140   :  { %482 = vst [vmem:[%s1156_s3 + $0x28] sm:$0xff] %v450_v49  ;;  %v414_v43 = vmul.f32 %v954_v32, %v376_v50  ;;  %545 = vrsqrt.f32 %v320_v23  ;;  %v290_v25 = vmul.f32 0.0078125, %v244_v57  ;;  %v291_v37 = vmul.f32 0.0078125, %v246_v58 }
 0x141   :  { %v534_v62 = vpop.eup %533  ;;  %483 = vst [vmem:[%s1156_s3 + $0x30] sm:$0xff] %v451_v55  ;;  %v415_v60 = vmul.f32 %v954_v32, %v377_v56  ;;  %547 = vrsqrt.f32 %v321_v54 }
 0x142   :  { %v536_v3 = vpop.eup %535  ;;  %v452_v63 = vadd.f32 %v960_v38, %v414_v43  ;;  %v378_v0 = vmul.f32 %v534_v62, %v833_v4  ;;  %v322_v1 = vadd.f32 1e-12, %v290_v25  ;;  %v323_v2 = vadd.f32 1e-12, %v291_v37 }
 0x143   :  { %v453_v27 = vadd.f32 %v960_v38, %v415_v60  ;;  %v379_v6 = vmul.f32 %v536_v3, %v840_v35  ;;  %v248_v7 = vpop.xlane.xlu1 %247  ;;  %v250_v33 = vpop.xlane.xlu0 %249 }
 0x144   :  { %484 = vst [vmem:[%s1156_s3 + $0x38] sm:$0xff] %v452_v63  ;;  %v416_v34 = vmul.f32 %v954_v32, %v378_v0  ;;  %549 = vrsqrt.f32 %v322_v1  ;;  %v292_v44 = vmul.f32 0.0078125, %v248_v7  ;;  %v293_v51 = vmul.f32 0.0078125, %v250_v33 }
 0x145   :  { %v538_v29 = vpop.eup %537  ;;  %485 = vst [vmem:[%s1156_s3 + $0x40] sm:$0xff] %v453_v27  ;;  %v417_v4 = vmul.f32 %v954_v32, %v379_v6  ;;  %551 = vrsqrt.f32 %v323_v2 }
 0x146   :  { %v540_v35 = vpop.eup %539  ;;  %v454_v39 = vadd.f32 %v960_v38, %v416_v34  ;;  %v380_v40 = vmul.f32 %v538_v29, %v843_v8  ;;  %v324_v30 = vadd.f32 1e-12, %v292_v44  ;;  %v325_v41 = vadd.f32 1e-12, %v293_v51 }
 0x147   :  { %v455_v42 = vadd.f32 %v960_v38, %v417_v4  ;;  %v381_v21 = vmul.f32 %v540_v35, %v850_v45  ;;  %v252_v31 = vpop.xlane.xlu1 %251  ;;  %v254_v46 = vpop.xlane.xlu0 %253 }
 0x148   :  { %486 = vst [vmem:[%s1156_s3 + $0x48] sm:$0xff] %v454_v39  ;;  %v418_v36 = vmul.f32 %v954_v32, %v380_v40  ;;  %553 = vrsqrt.f32 %v324_v30  ;;  %v294_v47 = vmul.f32 0.0078125, %v252_v31  ;;  %v295_v48 = vmul.f32 0.0078125, %v254_v46 }
 0x149   :  { %v542_v52 = vpop.eup %541  ;;  %487 = vst [vmem:[%s1156_s3 + $0x50] sm:$0xff] %v455_v42  ;;  %v419_v8 = vmul.f32 %v954_v32, %v381_v21  ;;  %555 = vrsqrt.f32 %v325_v41 }
 0x14a   :  { %v544_v45 = vpop.eup %543  ;;  %v456_v59 = vadd.f32 %v960_v38, %v418_v36  ;;  %v382_v49 = vmul.f32 %v542_v52, %v853_v10  ;;  %v326_v50 = vadd.f32 1e-12, %v294_v47  ;;  %v327_v23 = vadd.f32 1e-12, %v295_v48 }
 0x14b   :  { %v457_v54 = vadd.f32 %v960_v38, %v419_v8  ;;  %v383_v55 = vmul.f32 %v544_v45, %v860_v53  ;;  %v256_v56 = vpop.xlane.xlu1 %255  ;;  %v258_v57 = vpop.xlane.xlu0 %257 }
 0x14c   :  { %488 = vst [vmem:[%s1156_s3 + $0x58] sm:$0xff] %v456_v59  ;;  %v420_v58 = vmul.f32 %v954_v32, %v382_v49  ;;  %557 = vrsqrt.f32 %v326_v50  ;;  %v296_v43 = vmul.f32 0.0078125, %v256_v56  ;;  %v297_v25 = vmul.f32 0.0078125, %v258_v57 }
 0x14d   :  { %v546_v37 = vpop.eup %545  ;;  %489 = vst [vmem:[%s1156_s3 + $0x60] sm:$0xff] %v457_v54  ;;  %v421_v10 = vmul.f32 %v954_v32, %v383_v55  ;;  %559 = vrsqrt.f32 %v327_v23 }
 0x14e   :  { %v548_v53 = vpop.eup %547  ;;  %v458_v62 = vadd.f32 %v960_v38, %v420_v58  ;;  %v384_v60 = vmul.f32 %v546_v37, %v863_v12  ;;  %v328_v3 = vadd.f32 1e-12, %v296_v43  ;;  %v329_v63 = vadd.f32 1e-12, %v297_v25 }
 0x14f   :  { %v459_v0 = vadd.f32 %v960_v38, %v421_v10  ;;  %v385_v1 = vmul.f32 %v548_v53, %v870_v61  ;;  %v260_v2 = vpop.xlane.xlu1 %259  ;;  %v262_v27 = vpop.xlane.xlu0 %261 }
 0x150   :  { %490 = vst [vmem:[%s1156_s3 + $0x68] sm:$0xff] %v458_v62  ;;  %v422_v6 = vmul.f32 %v954_v32, %v384_v60  ;;  %561 = vrsqrt.f32 %v328_v3  ;;  %v298_v7 = vmul.f32 0.0078125, %v260_v2  ;;  %v299_v33 = vmul.f32 0.0078125, %v262_v27 }
 0x151   :  { %v550_v34 = vpop.eup %549  ;;  %491 = vst [vmem:[%s1156_s3 + $0x70] sm:$0xff] %v459_v0  ;;  %v423_v12 = vmul.f32 %v954_v32, %v385_v1  ;;  %563 = vrsqrt.f32 %v329_v63 }
 0x152   :  { %v552_v61 = vpop.eup %551  ;;  %v460_v44 = vadd.f32 %v960_v38, %v422_v6  ;;  %v386_v51 = vmul.f32 %v550_v34, %v873_v14  ;;  %v330_v29 = vadd.f32 1e-12, %v298_v7  ;;  %v331_v4 = vadd.f32 1e-12, %v299_v33 }
 0x153   :  { %v461_v35 = vadd.f32 %v960_v38, %v423_v12  ;;  %v387_v39 = vmul.f32 %v552_v61, %v880_v5  ;;  %v264_v40 = vpop.xlane.xlu1 %263  ;;  %v266_v30 = vpop.xlane.xlu0 %265 }
 0x154   :  { %492 = vst [vmem:[%s1156_s3 + $0x78] sm:$0xff] %v460_v44  ;;  %v424_v41 = vmul.f32 %v954_v32, %v386_v51  ;;  %565 = vrsqrt.f32 %v330_v29  ;;  %v300_v42 = vmul.f32 0.0078125, %v264_v40  ;;  %v301_v21 = vmul.f32 0.0078125, %v266_v30 }
 0x155   :  { %v554_v31 = vpop.eup %553  ;;  %493 = vst [vmem:[%s1156_s3 + $0x80] sm:$0xff] %v461_v35  ;;  %v425_v14 = vmul.f32 %v954_v32, %v387_v39  ;;  %567 = vrsqrt.f32 %v331_v4 }
 0x156   :  { %v556_v5 = vpop.eup %555  ;;  %v462_v46 = vadd.f32 %v960_v38, %v424_v41  ;;  %v388_v36 = vmul.f32 %v554_v31, %v883_v16  ;;  %v332_v47 = vadd.f32 1e-12, %v300_v42  ;;  %v333_v48 = vadd.f32 1e-12, %v301_v21 }
 0x157   :  { %v463_v52 = vadd.f32 %v960_v38, %v425_v14  ;;  %v389_v8 = vmul.f32 %v556_v5, %v890_v9  ;;  %v268_v45 = vpop.xlane.xlu1 %267  ;;  %v270_v59 = vpop.xlane.xlu0 %269 }
 0x158   :  { %494 = vst [vmem:[%s1156_s3 + $0x88] sm:$0xff] %v462_v46  ;;  %v426_v49 = vmul.f32 %v954_v32, %v388_v36  ;;  %569 = vrsqrt.f32 %v332_v47  ;;  %v302_v50 = vmul.f32 0.0078125, %v268_v45  ;;  %v303_v23 = vmul.f32 0.0078125, %v270_v59 }
 0x159   :  { %v558_v54 = vpop.eup %557  ;;  %495 = vst [vmem:[%s1156_s3 + $0x90] sm:$0xff] %v463_v52  ;;  %v427_v16 = vmul.f32 %v954_v32, %v389_v8  ;;  %571 = vrsqrt.f32 %v333_v48 }
 0x15a   :  { %v560_v9 = vpop.eup %559  ;;  %v464_v55 = vadd.f32 %v960_v38, %v426_v49  ;;  %v390_v56 = vmul.f32 %v558_v54, %v893_v18  ;;  %v334_v57 = vadd.f32 1e-12, %v302_v50  ;;  %v335_v58 = vadd.f32 1e-12, %v303_v23 }
 0x15b   :  { %v465_v43 = vadd.f32 %v960_v38, %v427_v16  ;;  %v391_v25 = vmul.f32 %v560_v9, %v900_v11  ;;  %v272_v37 = vpop.xlane.xlu1 %271 }
 0x15c   :  { %496 = vst [vmem:[%s1156_s3 + $0x98] sm:$0xff] %v464_v55  ;;  %v428_v10 = vmul.f32 %v954_v32, %v390_v56  ;;  %573 = vrsqrt.f32 %v334_v57  ;;  %v304_v53 = vmul.f32 0.0078125, %v272_v37 }
 0x15d   :  { %v562_v62 = vpop.eup %561  ;;  %497 = vst [vmem:[%s1156_s3 + $0xa0] sm:$0xff] %v465_v43  ;;  %v429_v18 = vmul.f32 %v954_v32, %v391_v25  ;;  %575 = vrsqrt.f32 %v335_v58 }
 0x15e   :  { %v564_v60 = vpop.eup %563  ;;  %v466_v11 = vadd.f32 %v960_v38, %v428_v10  ;;  %v392_v3 = vmul.f32 %v562_v62, %v903_v20  ;;  %v336_v63 = vadd.f32 1e-12, %v304_v53 }
 0x15f   :  { %v467_v0 = vadd.f32 %v960_v38, %v429_v18  ;;  %v393_v1 = vmul.f32 %v564_v60, %v910_v13 }
 0x160   :  { %498 = vst [vmem:[%s1156_s3 + $0xa8] sm:$0xff] %v466_v11  ;;  %v430_v2 = vmul.f32 %v954_v32, %v392_v3  ;;  %577 = vrsqrt.f32 %v336_v63 }
 0x161   :  { %v566_v27 = vpop.eup %565  ;;  %499 = vst [vmem:[%s1156_s3 + $0xb0] sm:$0xff] %v467_v0  ;;  %v431_v6 = vmul.f32 %v954_v32, %v393_v1 }
 0x162   :  { %v568_v20 = vpop.eup %567  ;;  %v468_v7 = vadd.f32 %v960_v38, %v430_v2  ;;  %v394_v33 = vmul.f32 %v566_v27, %v913_v22 }
 0x163   :  { %v469_v13 = vadd.f32 %v960_v38, %v431_v6  ;;  %v395_v34 = vmul.f32 %v568_v20, %v920_v15 }
 0x164   :  { %500 = vst [vmem:[%s1156_s3 + $0xb8] sm:$0xff] %v468_v7  ;;  %v432_v12 = vmul.f32 %v954_v32, %v394_v33 }
 0x165   :  { %v570_v61 = vpop.eup %569  ;;  %501 = vst [vmem:[%s1156_s3 + $0xc0] sm:$0xff] %v469_v13  ;;  %v433_v44 = vmul.f32 %v954_v32, %v395_v34 }
 0x166   :  { %v572_v51 = vpop.eup %571  ;;  %v470_v22 = vadd.f32 %v960_v38, %v432_v12  ;;  %v396_v29 = vmul.f32 %v570_v61, %v923_v24 }
 0x167   :  { %v471_v15 = vadd.f32 %v960_v38, %v433_v44  ;;  %v397_v4 = vmul.f32 %v572_v51, %v930_v17 }
 0x168   :  { %502 = vst [vmem:[%s1156_s3 + $0xc8] sm:$0xff] %v470_v22  ;;  %v434_v35 = vmul.f32 %v954_v32, %v396_v29 }
 0x169   :  { %v574_v39 = vpop.eup %573  ;;  %503 = vst [vmem:[%s1156_s3 + $0xd0] sm:$0xff] %v471_v15  ;;  %v435_v40 = vmul.f32 %v954_v32, %v397_v4 }
 0x16a   :  { %v576_v30 = vpop.eup %575  ;;  %v472_v24 = vadd.f32 %v960_v38, %v434_v35  ;;  %v398_v41 = vmul.f32 %v574_v39, %v933_v26 }
 0x16b   :  { %v473_v17 = vadd.f32 %v960_v38, %v435_v40  ;;  %v399_v42 = vmul.f32 %v576_v30, %v940_v19 }
 0x16c   :  { %504 = vst [vmem:[%s1156_s3 + $0xd8] sm:$0xff] %v472_v24  ;;  %v436_v21 = vmul.f32 %v954_v32, %v398_v41 }
 0x16d   :  { %v578_v31 = vpop.eup %577  ;;  %505 = vst [vmem:[%s1156_s3 + $0xe0] sm:$0xff] %v473_v17  ;;  %v437_v14 = vmul.f32 %v954_v32, %v399_v42 }
 0x16e   :  { %v474_v5 = vadd.f32 %v960_v38, %v436_v21  ;;  %v400_v26 = vmul.f32 %v578_v31, %v943_v28 }
 0x16f   :  { %v475_v46 = vadd.f32 %v960_v38, %v437_v14 }
 0x170   :  { %506 = vst [vmem:[%s1156_s3 + $0xe8] sm:$0xff] %v474_v5  ;;  %v438_v19 = vmul.f32 %v954_v32, %v400_v26 }
 0x171   :  { %507 = vst [vmem:[%s1156_s3 + $0xf0] sm:$0xff] %v475_v46 }
 0x172   :  { %v476_v36 = vadd.f32 %v960_v38, %v438_v19 }
 0x174   :  { %508 = vst [vmem:[%s1156_s3 + $0xf8] sm:$0xff] %v476_v36 }

// kernel: model_forward.5
= control target key start
LH: loop header
LB: loop body
LE: loop exit
PB: predicated region body
PF: predicated region fallthrough
CT: control target
= control target key end

     0   :  { %v300_v1 = vmov 0.0   ;;  %vm301_vm0 = vmmov 0   ;;  %s449_s0 = inlined_call_operand.vmem [shape: f32[2,128,128], index: 0, kind: input, shape index: {}]   ;;  %s450_s1 = inlined_call_operand.vmem [shape: bf16[128,128], index: 1, kind: input, shape index: {}]   ;;  %s451_s2 = inlined_call_operand.vmem [shape: f32[1,128], index: 2, kind: input, shape index: {}]   ;;  %s452_s3 = inlined_call_operand.hbm [shape: f32[2,128], index: 3, kind: output, shape index: {}]  }
   0x1   :  { %v270_v0 = vld [vmem:[%s450_s1 + $0x38] sm:$0xff]   ;;  %247 = vmatprep.subr.bf16.mxu0 %v300_v1  ;;  %v271_v2 = vld [vmem:[%s450_s1 + $0x30] sm:$0xff]   ;;  %263 = vmatprep.mubr.msk.bf16.mxu0 %vm301_vm0, %v300_v1  ;;  %v272_v3 = vld [vmem:[%s450_s1 + $0x28] sm:$0xff]  }
   0x2   :  { %248 = vmatpush3.bf16.msra.mxu0 %v270_v0  ;;  %v16_v4 = vld [vmem:[%s449_s0] sm:$0xff]  ;;  %v17_v5 = vld [vmem:[%s449_s0 + $0x8] sm:$0xff]  ;;  %v18_v6 = vld [vmem:[%s449_s0 + $0x10] sm:$0xff] }
   0x3   :  { %249 = vmatprep.subr.bf16.mxu0 %v300_v1  ;;  %v48_v7 = vadd.f32 %v17_v5, %v16_v4  ;;  %v273_v8 = vld [vmem:[%s450_s1 + $0x20] sm:$0xff]   ;;  %v19_v9 = vld [vmem:[%s449_s0 + $0x18] sm:$0xff]  ;;  %v33_v13 = vld [vmem:[%s449_s0 + $0x88] sm:$0xff] }
   0x4   :  { %v20_v11 = vld [vmem:[%s449_s0 + $0x20] sm:$0xff]  ;;  %v274_v15 = vld [vmem:[%s450_s1 + $0x18] sm:$0xff]   ;;  %v21_v16 = vld [vmem:[%s449_s0 + $0x28] sm:$0xff] }
   0x5   :  { %v49_v10 = vadd.f32 %v48_v7, %v18_v6  ;;  %v32_v12 = vld [vmem:[%s449_s0 + $0x80] sm:$0xff]  ;;  %v34_v17 = vld [vmem:[%s449_s0 + $0x90] sm:$0xff]  ;;  %v35_v19 = vld [vmem:[%s449_s0 + $0x98] sm:$0xff] }
   0x6   :  { %250 = vmatpush3.bf16.msra.mxu0 %v271_v2  ;;  %v69_v18 = vadd.f32 %v33_v13, %v32_v12  ;;  %v22_v21 = vld [vmem:[%s449_s0 + $0x30] sm:$0xff]  ;;  %v36_v23 = vld [vmem:[%s449_s0 + $0xa0] sm:$0xff]  ;;  %v23_v26 = vld [vmem:[%s449_s0 + $0x38] sm:$0xff] }
   0x7   :  { %251 = vmatprep.subr.bf16.mxu0 %v300_v1  ;;  %v50_v14 = vadd.f32 %v49_v10, %v19_v9  ;;  %v275_v25 = vld [vmem:[%s450_s1 + $0x10] sm:$0xff]   ;;  %v37_v28 = vld [vmem:[%s449_s0 + $0xa8] sm:$0xff] }
   0x8   :  { %v70_v22 = vadd.f32 %v69_v18, %v34_v17 }
   0x9   :  { %v51_v20 = vadd.f32 %v50_v14, %v20_v11 }
   0xa   :  { %252 = vmatpush3.bf16.msra.mxu0 %v272_v3  ;;  %v71_v27 = vadd.f32 %v70_v22, %v35_v19 }
   0xb   :  { %253 = vmatprep.subr.bf16.mxu0 %v300_v1  ;;  %v52_v24 = vadd.f32 %v51_v20, %v21_v16 }
   0xd   :  { %v53_v29 = vadd.f32 %v52_v24, %v22_v21 }
   0xe   :  { %254 = vmatpush3.bf16.msra.mxu0 %v273_v8 }
   0xf   :  { %255 = vmatprep.subr.bf16.mxu0 %v300_v1 }
  0x12   :  { %256 = vmatpush3.bf16.msra.mxu0 %v274_v15 }
  0x13   :  { %257 = vmatprep.subr.bf16.mxu0 %v300_v1 }
  0x14   :  { %8 = vsyncpa [#allocation3], 0  ;;  %v24_v30 = vld [vmem:[%s449_s0 + $0x40] sm:$0xff]  ;;  %v72_v31 = vadd.f32 %v71_v27, %v36_v23  ;;  %v38_v32 = vld [vmem:[%s449_s0 + $0xb0] sm:$0xff]  ;;  %v54_v33 = vadd.f32 %v53_v29, %v23_v26  ;;  %vm122_vm1 = vcmask 1041409   ;;  %s302_s11 = smov [#allocation2]  }
  0x15   :  { %v276_v34 = vld [vmem:[%s450_s1 + $0x8] sm:$0xff]   ;;  %v39_v37 = vld [vmem:[%s449_s0 + $0xb8] sm:$0xff]  ;;  %v26_v39 = vld [vmem:[%s449_s0 + $0x50] sm:$0xff]  ;;  %s221_s12 = sshll.u32 %s302_s11, 4  ;;  %s222_s12 = int_to_ptr.vmem [resolvable:$true] %s221_s12 }
  0x16   :  { %258 = vmatpush3.bf16.msra.mxu0 %v275_v25  ;;  %v25_v35 = vld [vmem:[%s449_s0 + $0x48] sm:$0xff]  ;;  %v73_v36 = vadd.f32 %v72_v31, %v37_v28  ;;  %v55_v38 = vadd.f32 %v54_v33, %v24_v30  ;;  %v40_v41 = vld [vmem:[%s449_s0 + $0xc0] sm:$0xff]  ;;  %v27_v44 = vld [vmem:[%s449_s0 + $0x58] sm:$0xff]  ;;  %s278_s13 = scalar_lea.vmem %s222_s12, 32  ;;  %p283_p1 = scmp.lt.s32.totalorder %s222_s12, %s222_s12 }
  0x17   :  { %259 = vmatprep.subr.bf16.mxu0 %v300_v1  ;;  %v277_v43 = vld [vmem:[%s450_s1] sm:$0xff]   ;;  %v41_v46 = vld [vmem:[%s449_s0 + $0xc8] sm:$0xff]  ;;  %v42_v50 = vld [vmem:[%s449_s0 + $0xd0] sm:$0xff]  ;;  %p279_p0 = scmp.ne.s32.totalorder %s222_s12, %s278_s13  ;;  %p284_p2 = scmp.lt.s32.totalorder %s278_s13, %s278_s13 }
  0x18   :  { %v74_v40 = vadd.f32 %v73_v36, %v38_v32  ;;  %v56_v42 = vadd.f32 %v55_v38, %v25_v35  ;;  %v28_v48 = vld [vmem:[%s449_s0 + $0x60] sm:$0xff]  ;;  %v29_v52 = vld [vmem:[%s449_s0 + $0x68] sm:$0xff]  ;;  %v43_v54 = vld [vmem:[%s449_s0 + $0xd8] sm:$0xff] }
  0x19   :  { %v30_v56 = vld [vmem:[%s449_s0 + $0x70] sm:$0xff]  ;;  %v44_v58 = vld [vmem:[%s449_s0 + $0xe0] sm:$0xff]  ;;  %v31_v60 = vld [vmem:[%s449_s0 + $0x78] sm:$0xff]  ;;  %p285_p3 = por %p284_p2, %p283_p1 }
  0x1a   :  { %260 = vmatpush3.bf16.msra.mxu0 %v276_v34  ;;  %v75_v45 = vadd.f32 %v74_v40, %v39_v37  ;;  %v57_v47 = vadd.f32 %v56_v42, %v26_v39  ;;  %v45_v62 = vld [vmem:[%s449_s0 + $0xe8] sm:$0xff]  ;;  %v47_v4 = vld [vmem:[%s449_s0 + $0xf8] sm:$0xff]  ;;  %v229_v27 = vld [vmem:[%s451_s2] ss:$0 sm:$0xff] }
  0x1b   :  { %261 = vmatprep.subr.bf16.mxu0 %v300_v1  ;;  %v46_v1 = vld [vmem:[%s449_s0 + $0xf0] sm:$0xff]  ;;  %p286_p4 = pnand %p285_p3, %p279_p0 }
  0x1c   :  { %v76_v49 = vadd.f32 %v75_v45, %v40_v41  ;;  %v58_v51 = vadd.f32 %v57_v47, %v27_v44 }
  0x1e   :  { %262 = vmatpush3.bf16.msra.mxu0 %v277_v43  ;;  %v77_v53 = vadd.f32 %v76_v49, %v41_v46  ;;  %v59_v55 = vadd.f32 %v58_v51, %v28_v48 }
  0x20   :  { %v78_v57 = vadd.f32 %v77_v53, %v42_v50  ;;  %v60_v59 = vadd.f32 %v59_v55, %v29_v52 }
  0x22   :  { %v79_v61 = vadd.f32 %v78_v57, %v43_v54  ;;  %v61_v63 = vadd.f32 %v60_v59, %v30_v56 }
  0x24   :  { %v80_v0 = vadd.f32 %v79_v61, %v44_v58  ;;  %v62_v2 = vadd.f32 %v61_v63, %v31_v60 }
  0x26   :  { %v81_v3 = vadd.f32 %v80_v0, %v45_v62  ;;  %v63_v5 = vrot.slane %v62_v2, 4 }
  0x28   :  { %v82_v6 = vadd.f32 %v81_v3, %v46_v1  ;;  %v64_v7 = vadd.f32 %v63_v5, %v62_v2 }
  0x2a   :  { %v83_v8 = vadd.f32 %v82_v6, %v47_v4  ;;  %v65_v9 = vrot.slane %v64_v7, 2 }
  0x2c   :  { %v84_v10 = vrot.slane %v83_v8, 4  ;;  %v66_v11 = vadd.f32 %v65_v9, %v64_v7 }
  0x2e   :  { %v85_v12 = vadd.f32 %v84_v10, %v83_v8  ;;  %v67_v13 = vrot.slane %v66_v11, 1 }
  0x30   :  { %v86_v14 = vrot.slane %v85_v12, 2  ;;  %v68_v15 = vadd.f32 %v67_v13, %v66_v11 }
  0x32   :  { %v87_v16 = vadd.f32 %v86_v14, %v85_v12  ;;  %v91_v17 = vmul.f32 0.0078125, %v68_v15 }
  0x34   :  { %v88_v18 = vrot.slane %v87_v16, 1  ;;  %v93_v20 = vpack.c.bf16 %v91_v17, %v91_v17 }
  0x36   :  { %v89_v19 = vadd.f32 %v88_v18, %v87_v16  ;;  %v120_v23 = vunpack.c.l.b16 %v93_v20 }
  0x38   :  { %v92_v21 = vmul.f32 0.0078125, %v89_v19 }
  0x3a   :  { %v94_v22 = vpack.c.bf16 %v92_v21, %v92_v21 }
  0x3c   :  { %v121_v24 = vunpack.c.l.b16 %v94_v22 }
  0x3e   :  { %v123_v25 = vsel %vm122_vm1, %v121_v24, %v120_v23 }
  0x3f   :  { %v124_v26 = vpack.c.b16 %v123_v25, %v123_v25 }
  0x41   :  { %264 = vmatmul.mubr.bf16.vlgmr.msra.gmra.mxu0 %v124_v26 }
 0x101   :  { %v208_v28 = vpop.f32.mrf.mxu0 }
 0x102   :  { %v209_v29 = vadd.f32 %v229_v27, %v208_v28 }
 0x103   :  { %v265_v30 = vpop.f32.mrf.mxu0 }
 0x104   :  { %214 = vst [vmem:[#allocation2] sm:$0x3] %v209_v29 }
 0x105   :  { %v211_v31 = vpop.f32.mrf.mxu0 }
 0x106   :  { %289 = shalt.err (!%p286_p4)
}
 0x107   :  { %224 = dma.vmem_to_hbm [thread:$0]  %s222_s12, 32, %s452_s3, [#allocation3]   ;;  %v266_v32 = vpop.f32.mrf.mxu0 }
 0x108   :  { %298 = dma.done.wait [#allocation3], 32  }
 0x109   :  { %299 = vsyncadd [#allocation3], 4294967264 }
 0x10a   :  { %228 = vsyncpa [#allocation3], 1 }

// kernel: model_forward.4
= control target key start
LH: loop header
LB: loop body
LE: loop exit
PB: predicated region body
PF: predicated region fallthrough
CT: control target
= control target key end

     0   :  { %s5355_s29 = smov 0   ;;  %s7590_s0 = inlined_call_operand.vmem [shape: f32[2,128,128], index: 0, kind: input, shape index: {}]   ;;  %s7591_s1 = inlined_call_operand.vmem [shape: f32[2,1,128], index: 1, kind: input, shape index: {}]   ;;  %s7592_s2 = inlined_call_operand.vmem [shape: bf16[128,384], index: 2, kind: input, shape index: {}]   ;;  %s7593_s3 = inlined_call_operand.vmem [shape: f32[1,384], index: 3, kind: input, shape index: {}]   ;;  %s7594_s4 = inlined_call_operand.vmem [shape: bf16[128,128], index: 4, kind: input, shape index: {}]   ;;  %s7595_s5 = inlined_call_operand.vmem [shape: f32[1,128], index: 5, kind: input, shape index: {}]   ;;  %s7596_s6 = inlined_call_operand.vmem [shape: f32[1,128], index: 6, kind: input, shape index: {}]   ;;  %s7597_s7 = inlined_call_operand.vmem [shape: f32[1,128], index: 7, kind: input, shape index: {}]   ;;  %s7598_s8 = inlined_call_operand.vmem [shape: bf16[128,512], index: 8, kind: input, shape index: {}]   ;;  %s7599_s9 = inlined_call_operand.vmem [shape: f32[1,512], index: 9, kind: input, shape index: {}]   ;;  %s7600_s10 = inlined_call_operand.vmem [shape: bf16[512,128], index: 10, kind: input, shape index: {}]   ;;  %s7601_s11 = inlined_call_operand.vmem [shape: f32[1,128], index: 11, kind: input, shape index: {}]   ;;  %s7602_s12 = inlined_call_operand.vmem [shape: f32[1,128], index: 12, kind: input, shape index: {}]   ;;  %s7603_s13 = inlined_call_operand.vmem [shape: f32[1,128], index: 13, kind: input, shape index: {}]   ;;  %s7604_s14 = inlined_call_operand.vmem [shape: f32[2,128,128], index: 14, kind: output, shape index: {}]  }
   0x1 LB: > { %s4184_s30 = sadd.s32 4294967295, %s5276_s29   ;;  %p4188_p0 = scmp.ge.s32.totalorder %s5276_s29, 1  ;;  %s5276_s29 = sphi %s5355_s29, %s24_s29  }
   0x2   : > { %p420_p1 = scmp.lt.s32.totalorder %s5276_s29, 3 }
   0x4   : > { %p421_p2 = pnand %p4188_p0, %p420_p1 }
   0x6   : > { %424 = sbr.rel (%p421_p2) target bundleno = 3228 (0xc9c), region = 76 }
   0xb   : > { %v4814_v0 = vld [vmem:[%s7592_s2 + $0xac] ss:$12 sps:$4 sm:$0xff]   ;;  %p469_p3 = scmp.lt.s32.totalorder %s4184_s30, 1  ;;  %v4816_v1 = vld [vmem:[%s7592_s2 + $0xa8] ss:$12 sps:$4 sm:$0xff]   ;;  %v5278_v2 = vmov 0   ;;  %v542_v49 = vlaneseq }
   0xc   : > { %717 = vmatprep.mubr.bf16.mxu0 %v5278_v2  ;;  %685 = vmatprep.subr.bf16.mxu0 %v4814_v0  ;;  %v4817_v3 = vld [vmem:[%s7592_s2 + $0x94] ss:$12 sps:$4 sm:$0xff]   ;;  %v4819_v4 = vld [vmem:[%s7592_s2 + $0x90] ss:$12 sps:$4 sm:$0xff]   ;;  %v4822_v6 = vld [vmem:[%s7592_s2 + $0x78] ss:$12 sps:$4 sm:$0xff]  }
   0xd   : > { %s7731_s30 = smov (!%p469_p3, %s4184_s30), 1  ;;  %686 = vmatpush1.bf16.msra.mxu0 %v4816_v1  ;;  %v4820_v5 = vld [vmem:[%s7592_s2 + $0x7c] ss:$12 sps:$4 sm:$0xff]   ;;  %v4823_v7 = vld [vmem:[%s7592_s2 + $0x64] ss:$12 sps:$4 sm:$0xff]   ;;  %v5469_v50 = vshrl.u32 %v542_v49, 7 }
   0xe   : > { %687 = vmatprep.subr.bf16.mxu0 %v4817_v3  ;;  %s4314_s25 = sshll.u32 %s7731_s30, 7  ;;  %v4825_v9 = vld [vmem:[%s7592_s2 + $0x60] ss:$12 sps:$4 sm:$0xff]   ;;  %v4828_v13 = vld [vmem:[%s7592_s2 + $0x48] ss:$12 sps:$4 sm:$0xff]   ;;  %vm911_vm0 = vcmask 523264   ;;  %s476_s22 = scalar_lea.vmem %s7591_s1, %s7731_s30 }
   0xf   : > { %s5390_s16 = scalar_lea.vmem %s7590_s0, %s4314_s25  ;;  %v4826_v11 = vld [vmem:[%s7592_s2 + $0x4c] ss:$12 sps:$4 sm:$0xff]   ;;  %v4829_v14 = vld [vmem:[%s7592_s2 + $0x34] ss:$12 sps:$4 sm:$0xff]   ;;  %v4838_v15 = vld [vmem:[%s7592_s2 + $0xb0] ss:$12 sps:$4 sm:$0xff]   ;;  %s7523_s15 = scalar_lea.vmem %s7604_s14, %s4314_s25 }
  0x10   : > { %v483_v8 = vld [vmem:[%s5390_s16] sm:$0xff]  ;;  %v484_v10 = vld [vmem:[%s5390_s16 + $0x8] sm:$0xff]  ;;  %v4831_v17 = vld [vmem:[%s7592_s2 + $0x30] ss:$12 sps:$4 sm:$0xff]   ;;  %4540 = vmatprep.subr.bf16.mxu1 %v4838_v15  ;;  %v544_v51 = vsub.s32 0, %v5469_v50  ;;  %s5279_s19 = smov 64  }
  0x11   : > { %688 = vmatpush1.bf16.msra.mxu0 %v4819_v4  ;;  %v500_v12 = vpack.c.bf16 %v484_v10, %v483_v8  ;;  %v4839_v16 = vld [vmem:[%s7592_s2 + $0x98] ss:$12 sps:$4 sm:$0xff]   ;;  %v4832_v18 = vld [vmem:[%s7592_s2 + $0x1c] ss:$12 sps:$4 sm:$0xff]   ;;  %4541 = vmatpush3.bf16.msra.mxu1 %v4838_v15  ;;  %v4840_v19 = vld [vmem:[%s7592_s2 + $0x80] ss:$12 sps:$4 sm:$0xff]  }
  0x12   : > { %689 = vmatprep.subr.bf16.mxu0 %v4820_v5  ;;  %4542 = vmatprep.subr.bf16.mxu1 %v4839_v16  ;;  %v4834_v20 = vld [vmem:[%s7592_s2 + $0x18] ss:$12 sps:$4 sm:$0xff]   ;;  %v4841_v22 = vld [vmem:[%s7592_s2 + $0x68] ss:$12 sps:$4 sm:$0xff]   ;;  %v4837_v23 = vld [vmem:[%s7592_s2] ss:$12 sps:$4 sm:$0xff]  }
  0x13   : > { %4556 = vmatprep.mubr.bf16.mxu1 %v500_v12  ;;  %v4835_v21 = vld [vmem:[%s7592_s2 + $0x4] ss:$12 sps:$4 sm:$0xff]   ;;  %v486_v27 = vld [vmem:[%s5390_s16 + $0x18] sm:$0xff]  ;;  %v4844_v28 = vld [vmem:[%s7592_s2 + $0x20] ss:$12 sps:$4 sm:$0xff]  }
  0x14   : > { %v4842_v24 = vld [vmem:[%s7592_s2 + $0x50] ss:$12 sps:$4 sm:$0xff]   ;;  %v4843_v25 = vld [vmem:[%s7592_s2 + $0x38] ss:$12 sps:$4 sm:$0xff]   ;;  %v4845_v30 = vld [vmem:[%s7592_s2 + $0x8] ss:$12 sps:$4 sm:$0xff]  }
  0x15   : > { %690 = vmatpush1.bf16.msra.mxu0 %v4822_v6  ;;  %4543 = vmatpush3.bf16.msra.mxu1 %v4839_v16  ;;  %v485_v26 = vld [vmem:[%s5390_s16 + $0x10] sm:$0xff]  ;;  %v487_v31 = vld [vmem:[%s5390_s16 + $0x20] sm:$0xff]  ;;  %v488_v32 = vld [vmem:[%s5390_s16 + $0x28] sm:$0xff] }
  0x16   : > { %691 = vmatprep.subr.bf16.mxu0 %v4823_v7  ;;  %4544 = vmatprep.subr.bf16.mxu1 %v4840_v19  ;;  %v501_v29 = vpack.c.bf16 %v486_v27, %v485_v26  ;;  %v502_v33 = vpack.c.bf16 %v488_v32, %v487_v31  ;;  %v489_v34 = vld [vmem:[%s5390_s16 + $0x30] sm:$0xff]  ;;  %v490_v35 = vld [vmem:[%s5390_s16 + $0x38] sm:$0xff]  ;;  %v491_v36 = vld [vmem:[%s5390_s16 + $0x40] sm:$0xff] }
  0x17   : > { %v492_v37 = vld [vmem:[%s5390_s16 + $0x48] sm:$0xff]  ;;  %v503_v38 = vpack.c.bf16 %v490_v35, %v489_v34  ;;  %v493_v40 = vld [vmem:[%s5390_s16 + $0x50] sm:$0xff]  ;;  %v494_v41 = vld [vmem:[%s5390_s16 + $0x58] sm:$0xff] }
  0x18   : > { %v504_v39 = vpack.c.bf16 %v492_v37, %v491_v36  ;;  %v495_v42 = vld [vmem:[%s5390_s16 + $0x60] sm:$0xff]  ;;  %v496_v43 = vld [vmem:[%s5390_s16 + $0x68] sm:$0xff]  ;;  %v505_v44 = vpack.c.bf16 %v494_v41, %v493_v40  ;;  %v497_v46 = vld [vmem:[%s5390_s16 + $0x70] sm:$0xff] }
  0x19   : > { %692 = vmatpush1.bf16.msra.mxu0 %v4825_v9  ;;  %4545 = vmatpush3.bf16.msra.mxu1 %v4840_v19  ;;  %v506_v45 = vpack.c.bf16 %v496_v43, %v495_v42  ;;  %v498_v47 = vld [vmem:[%s5390_s16 + $0x78] sm:$0xff]  ;;  %v5475_v52 = vld [vmem:[%s7593_s3] sm:$0x7] }
  0x1a   : > { %693 = vmatprep.subr.bf16.mxu0 %v4826_v11  ;;  %4546 = vmatprep.subr.bf16.mxu1 %v4841_v22  ;;  %v507_v48 = vpack.c.bf16 %v498_v47, %v497_v46  ;;  %v5480_v54 = vrot.slane %v5475_v52, %v544_v51 }
  0x1d   : > { %694 = vmatpush1.bf16.msra.mxu0 %v4828_v13  ;;  %4547 = vmatpush3.bf16.msra.mxu1 %v4841_v22 }
  0x1e   : > { %695 = vmatprep.subr.bf16.mxu0 %v4829_v14  ;;  %4548 = vmatprep.subr.bf16.mxu1 %v4842_v24 }
  0x21   : > { %696 = vmatpush1.bf16.msra.mxu0 %v4831_v17  ;;  %4549 = vmatpush3.bf16.msra.mxu1 %v4842_v24 }
  0x22   : > { %697 = vmatprep.subr.bf16.mxu0 %v4832_v18  ;;  %4550 = vmatprep.subr.bf16.mxu1 %v4843_v25 }
  0x25   : > { %698 = vmatpush1.bf16.msra.mxu0 %v4834_v20  ;;  %4551 = vmatpush3.bf16.msra.mxu1 %v4843_v25 }
  0x26   : > { %699 = vmatprep.subr.bf16.mxu0 %v4835_v21  ;;  %4552 = vmatprep.subr.bf16.mxu1 %v4844_v28 }
  0x29   : > { %700 = vmatpush1.bf16.msra.mxu0 %v4837_v23  ;;  %4553 = vmatpush3.bf16.msra.mxu1 %v4844_v28 }
  0x2a   : > { %4554 = vmatprep.subr.bf16.mxu1 %v4845_v30 }
  0x2c   : > { %718 = vmatmul.mubr.bf16.vlgmr.msra.gmra.mxu0 %v500_v12 }
  0x2d   : > { %727 = vmatprep.mubr.bf16.mxu0 %v5278_v2  ;;  %4555 = vmatpush3.bf16.msra.mxu1 %v4845_v30 }
  0x30   : > { %4557 = vmatmul.mubr.bf16.vlgmr.msra.gmra.mxu1 %v501_v29 }
  0x31   : > { %4560 = vmatprep.mubr.bf16.mxu1 %v502_v33 }
  0x34   : > { %728 = vmatmul.mubr.bf16.gmra.mxu0 %v501_v29 }
  0x35   : > { %737 = vmatprep.mubr.bf16.mxu0 %v5278_v2 }
  0x38   : > { %4561 = vmatmul.mubr.bf16.gmra.mxu1 %v503_v38 }
  0x39   : > { %4564 = vmatprep.mubr.bf16.mxu1 %v504_v39 }
  0x3c   : > { %738 = vmatmul.mubr.bf16.gmra.mxu0 %v502_v33  ;;  %v552_v33 = vsub.s32 2, %v5469_v50 }
  0x3d   : > { %747 = vmatprep.mubr.bf16.mxu0 %v5278_v2 }
  0x3e   : > { %v5540_v40 = vrot.slane %v5475_v52, %v552_v33 }
  0x40   : > { %4565 = vmatmul.mubr.bf16.gmra.mxu1 %v505_v44 }
  0x41   : > { %4568 = vmatprep.mubr.bf16.mxu1 %v506_v45 }
  0x44   : > { %748 = vmatmul.mubr.bf16.gmra.mxu0 %v503_v38 }
  0x45   : > { %757 = vmatprep.mubr.bf16.mxu0 %v5278_v2 }
  0x48   : > { %4569 = vmatmul.mubr.bf16.gmra.mxu1 %v507_v48 }
  0x4c   : > { %758 = vmatmul.mubr.bf16.gmra.mxu0 %v504_v39 }
  0x4d   : > { %767 = vmatprep.mubr.bf16.mxu0 %v5278_v2 }
  0x54   : > { %768 = vmatmul.mubr.bf16.gmra.mxu0 %v505_v44 }
  0x55   : > { %777 = vmatprep.mubr.bf16.mxu0 %v5278_v2 }
  0x5c   : > { %778 = vmatmul.mubr.bf16.gmra.mxu0 %v506_v45 }
  0x5d   : > { %787 = vmatprep.mubr.bf16.mxu0 %v5278_v2 }
  0x64   : > { %788 = vmatmul.mubr.bf16.gmra.mxu0 %v507_v48 }
  0xec   : > { %v719_v53 = vpop.f32.mrf.mxu0 }
  0xed   : > { %v720_v57 = vadd.f32 %v719_v53, %v5480_v54 }
  0xee   : > { %v5482_v55 = vpop.f32.mrf.mxu0 }
  0xf0   : > { %v723_v56 = vpop.f32.mrf.mxu0  ;;  %v5501_v7 = vpop.f32.mrf.mxu1 }
  0xf1   : > { %v724_v58 = vadd.f32 %v723_v56, %v5480_v54 }
  0xf2   : > { %v5486_v59 = vpop.f32.mrf.mxu0  ;;  %v5505_v9 = vpop.f32.mrf.mxu1 }
  0xf3   : > { %v5488_v60 = vpack.c.bf16 %v724_v58, %v720_v57 }
  0xf4   : > { %v729_v61 = vpop.f32.mrf.mxu0  ;;  %v5508_v12 = vpop.f32.mrf.mxu1 }
  0xf5   : > { %v730_v62 = vadd.f32 %v729_v61, %v5480_v54  ;;  %4588 = vmatprep.mubr.msk.bf16.mxu0 %vm911_vm0, %v5488_v60 }
  0xf6   : > { %v5493_v63 = vpop.f32.mrf.mxu0  ;;  %v5514_v15 = vpop.f32.mrf.mxu1 }
  0xf8   : > { %v733_v0 = vpop.f32.mrf.mxu0  ;;  %v4562_v18 = vpop.f32.mrf.mxu1 }
  0xf9   : > { %v734_v1 = vadd.f32 %v733_v0, %v5480_v54 }
  0xfa   : > { %v5496_v3 = vpop.f32.mrf.mxu0  ;;  %v5519_v20 = vpop.f32.mrf.mxu1 }
  0xfb   : > { %v5498_v4 = vpack.c.bf16 %v734_v1, %v730_v62 }
  0xfc   : > { %v739_v5 = vpop.f32.mrf.mxu0  ;;  %v4563_v23 = vpop.f32.mrf.mxu1 }
  0xfd   : > { %v740_v6 = vadd.f32 %v739_v5, %v5480_v54 }
  0xfe   : > { %v5503_v8 = vpop.f32.mrf.mxu0  ;;  %v5526_v26 = vpop.f32.mrf.mxu1 }
 0x100   : > { %v743_v10 = vpop.f32.mrf.mxu0  ;;  %v4566_v29 = vpop.f32.mrf.mxu1 }
 0x101   : > { %v744_v11 = vadd.f32 %v743_v10, %v5480_v54  ;;  %v873_v62 = vadd.f32 %v4566_v29, %v5540_v40 }
 0x102   : > { %v5510_v13 = vpop.f32.mrf.mxu0  ;;  %v864_v31 = vpop.f32.mrf.mxu1 }
 0x103   : > { %v5512_v14 = vpack.c.bf16 %v744_v11, %v740_v6  ;;  %v548_v6 = vsub.s32 1, %v5469_v50 }
 0x104   : > { %v749_v16 = vpop.f32.mrf.mxu0  ;;  %v4567_v35 = vpop.f32.mrf.mxu1 }
 0x105   : > { %v750_v17 = vadd.f32 %v749_v16, %v5480_v54  ;;  %v876_v0 = vadd.f32 %v4567_v35, %v5540_v40 }
 0x106   : > { %v5517_v19 = vpop.f32.mrf.mxu0  ;;  %v867_v38 = vpop.f32.mrf.mxu1 }
 0x108   : > { %v753_v21 = vpop.f32.mrf.mxu0  ;;  %v4570_v42 = vpop.f32.mrf.mxu1 }
 0x109   : > { %v754_v22 = vadd.f32 %v753_v21, %v5480_v54  ;;  %v889_v46 = vadd.f32 %v4570_v42, %v5540_v40  ;;  %v865_v21 = vadd.f32 %v864_v31, %v5540_v40 }
 0x10a   : > { %v5522_v24 = vpop.f32.mrf.mxu0  ;;  %v880_v44 = vpop.f32.mrf.mxu1 }
 0x10b   : > { %v5524_v25 = vpack.c.bf16 %v754_v22, %v750_v17  ;;  %v881_v53 = vadd.f32 %v880_v44, %v5540_v40  ;;  %v5565_v22 = vpack.c.bf16 %v876_v0, %v873_v62 }
 0x10c   : > { %v759_v27 = vpop.f32.mrf.mxu0  ;;  %v4571_v48 = vpop.f32.mrf.mxu1 }
 0x10d   : > { %v760_v28 = vadd.f32 %v759_v27, %v5480_v54  ;;  %v892_v56 = vadd.f32 %v4571_v48, %v5540_v40  ;;  %v868_v27 = vadd.f32 %v867_v38, %v5540_v40  ;;  %v857_v38 = vadd.f32 %v4562_v18, %v5540_v40 }
 0x10e   : > { %v5529_v30 = vpop.f32.mrf.mxu0  ;;  %v883_v58 = vpop.f32.mrf.mxu1  ;;  %v852_v48 = vadd.f32 %v5526_v26, %v5540_v40 }
 0x10f   : > { %v5555_v1 = vpack.c.bf16 %v892_v56, %v889_v46  ;;  %v884_v5 = vadd.f32 %v883_v58, %v5540_v40  ;;  %v5582_v42 = vpack.c.bf16 %v868_v27, %v865_v21 }
 0x110   : > { %v763_v32 = vpop.f32.mrf.mxu0 }
 0x111   : > { %v764_v34 = vadd.f32 %v763_v32, %v5480_v54  ;;  %v5560_v16 = vpack.c.bf16 %v884_v5, %v881_v53  ;;  %4604 = vmatprep.subr.bf16.mxu1 %v5555_v1  ;;  %v833_v5 = vadd.f32 %v5505_v9, %v5540_v40 }
 0x112   : > { %v5533_v36 = vpop.f32.mrf.mxu0  ;;  %4605 = vmatpush3.bf16.msra.mxu1 %v5555_v1 }
 0x113   : > { %v5535_v37 = vpack.c.bf16 %v764_v34, %v760_v28  ;;  %4606 = vmatprep.subr.bf16.mxu1 %v5560_v16  ;;  %v5572_v28 = vrot.slane %v5475_v52, %v548_v6 }
 0x114   : > { %v769_v39 = vpop.f32.mrf.mxu0 }
 0x115   : > { %v770_v41 = vadd.f32 %v769_v39, %v5480_v54  ;;  %v756_v27 = vadd.f32 %v5522_v24, %v5572_v28  ;;  %v736_v24 = vadd.f32 %v5496_v3, %v5572_v28 }
 0x116   : > { %v5543_v43 = vpop.f32.mrf.mxu0  ;;  %4607 = vmatpush3.bf16.msra.mxu1 %v5560_v16 }
 0x117   : > { %4608 = vmatprep.subr.bf16.mxu1 %v5565_v22 }
 0x118   : > { %v773_v45 = vpop.f32.mrf.mxu0 }
 0x119   : > { %v774_v47 = vadd.f32 %v773_v45, %v5480_v54 }
 0x11a   : > { %v5547_v49 = vpop.f32.mrf.mxu0  ;;  %4609 = vmatpush3.bf16.msra.mxu1 %v5565_v22 }
 0x11b   : > { %v5551_v57 = vpack.c.bf16 %v774_v47, %v770_v41  ;;  %v860_v41 = vadd.f32 %v4563_v23, %v5540_v40  ;;  %4610 = vmatprep.subr.bf16.mxu1 %v5582_v42  ;;  %v849_v23 = vadd.f32 %v5519_v20, %v5540_v40  ;;  %v844_v20 = vadd.f32 %v5508_v12, %v5540_v40 }
 0x11c   : > { %v779_v61 = vpop.f32.mrf.mxu0  ;;  %v836_v12 = vadd.f32 %v5514_v15, %v5540_v40  ;;  %v766_v15 = vadd.f32 %v5533_v36, %v5572_v28  ;;  %v752_v36 = vadd.f32 %v5517_v19, %v5572_v28 }
 0x11d   : > { %v780_v10 = vadd.f32 %v779_v61, %v5480_v54  ;;  %v5588_v47 = vpack.c.bf16 %v860_v41, %v857_v38  ;;  %v5606_v0 = vpack.c.bf16 %v852_v48, %v849_v23  ;;  %v722_v41 = vadd.f32 %v5482_v55, %v5572_v28 }
 0x11e   : > { %v781_v11 = vpop.f32.mrf.mxu0  ;;  %4611 = vmatpush3.bf16.msra.mxu1 %v5582_v42 }
 0x11f   : > { %v782_v34 = vadd.f32 %v781_v11, %v5572_v28  ;;  %4612 = vmatprep.subr.bf16.mxu1 %v5588_v47  ;;  %v772_v11 = vadd.f32 %v5543_v43, %v5572_v28 }
 0x120   : > { %v783_v17 = vpop.f32.mrf.mxu0 }
 0x121   : > { %v784_v29 = vadd.f32 %v783_v17, %v5480_v54  ;;  %v5625_v17 = vpack.c.bf16 %v836_v12, %v833_v5 }
 0x122   : > { %v785_v32 = vpop.f32.mrf.mxu0  ;;  %4613 = vmatpush3.bf16.msra.mxu1 %v5588_v47 }
 0x123   : > { %v5576_v35 = vpack.c.bf16 %v784_v29, %v780_v10  ;;  %v786_v31 = vadd.f32 %v785_v32, %v5572_v28  ;;  %4614 = vmatprep.subr.bf16.mxu1 %v5606_v0  ;;  %v776_v10 = vadd.f32 %v5547_v49, %v5572_v28  ;;  %v5650_v29 = vpack.c.bf16 %v756_v27, %v752_v36 }
 0x124   : > { %v789_v39 = vpop.f32.mrf.mxu0  ;;  %v746_v32 = vadd.f32 %v5510_v13, %v5572_v28  ;;  %v726_v13 = vadd.f32 %v5486_v59, %v5572_v28  ;;  %v5710_v59 = vld [vmem:[%s476_s22] ss:$0 sm:$0xff] }
 0x125   : > { %v909_v52 = vpack.c.bf16 %v786_v31, %v782_v34  ;;  %v790_v44 = vadd.f32 %v789_v39, %v5480_v54  ;;  %v5628_v9 = vpack.c.bf16 %v776_v10, %v772_v11  ;;  %v742_v34 = vadd.f32 %v5503_v8, %v5572_v28 }
 0x126   : > { %v791_v45 = vpop.f32.mrf.mxu0  ;;  %4615 = vmatpush3.bf16.msra.mxu1 %v5606_v0  ;;  %v946_v19 = vsel %vm911_vm0, %v5650_v29, 0  ;;  %v732_v39 = vadd.f32 %v5493_v63, %v5572_v28  ;;  %v5680_v3 = vpack.c.bf16 %v726_v13, %v722_v41 }
 0x127   : > { %1396 = vrot.lane.b32.xlu1 %v909_v52, %s5279_s19  ;;  %v792_v56 = vadd.f32 %v791_v45, %v5572_v28  ;;  %v955_v21 = vsel %vm911_vm0, %v909_v52, 0  ;;  %v952_v49 = vsel %vm911_vm0, %v5628_v9, 0  ;;  %v5660_v31 = vpack.c.bf16 %v746_v32, %v742_v34 }
 0x128   : > { %v793_v46 = vpop.f32.mrf.mxu0  ;;  %v5670_v38 = vpack.c.bf16 %v736_v24, %v732_v39 }
 0x129   : > { %v794_v18 = vadd.f32 %v793_v46, %v5480_v54  ;;  %v841_v54 = vadd.f32 %v5501_v7, %v5540_v40  ;;  %v762_v40 = vadd.f32 %v5529_v30, %v5572_v28  ;;  %v943_v8 = vsel %vm911_vm0, %v5660_v31, 0 }
 0x12a   : > { %v795_v53 = vpop.f32.mrf.mxu0  ;;  %v940_v63 = vsel %vm911_vm0, %v5670_v38, 0 }
 0x12b   : > { %v5597_v58 = vpack.c.bf16 %v794_v18, %v790_v44  ;;  %v796_v61 = vadd.f32 %v795_v53, %v5572_v28  ;;  %v5615_v7 = vpack.c.bf16 %v844_v20, %v841_v54  ;;  %v5640_v43 = vpack.c.bf16 %v766_v15, %v762_v40 }
 0x12d   : > { %v910_v62 = vpack.c.bf16 %v796_v61, %v792_v56  ;;  %4616 = vmatprep.subr.bf16.mxu1 %v5615_v7  ;;  %v949_v30 = vsel %vm911_vm0, %v5640_v43, 0 }
 0x12e   : > { %4617 = vmatpush3.bf16.msra.mxu1 %v5615_v7 }
 0x12f   : > { %1398 = vrot.lane.b32.xlu0 %v910_v62, %s5279_s19  ;;  %4748 = vmatprep.subr.msk.bf16.mxu0 %vm911_vm0, %v910_v62  ;;  %v958_v26 = vsel %vm911_vm0, %v910_v62, 0 }
 0x130   : > { %4573 = vmatpush3.bf16.xpose.msra.mxu0 %v958_v26  ;;  %4618 = vmatprep.subr.bf16.mxu1 %v5625_v17 }
 0x131   : > { %4749 = vmatprep.subr.msk.bf16.mxu0 %vm911_vm0, %v909_v52  ;;  %v937_v52 = vsel %vm911_vm0, %v5680_v3, 0 }
 0x132   : > { %4619 = vmatpush3.bf16.msra.mxu1 %v5625_v17 }
 0x138   : > { %4575 = vmatpush3.bf16.xpose.msra.mxu0 %v955_v21 }
 0x139   : > { %4750 = vmatprep.subr.msk.bf16.mxu0 %vm911_vm0, %v5628_v9 }
 0x140   : > { %4577 = vmatpush3.bf16.xpose.msra.mxu0 %v952_v49 }
 0x141   : > { %4751 = vmatprep.subr.msk.bf16.mxu0 %vm911_vm0, %v5640_v43 }
 0x148   : > { %4579 = vmatpush3.bf16.xpose.msra.mxu0 %v949_v30 }
 0x149   : > { %4752 = vmatprep.subr.msk.bf16.mxu0 %vm911_vm0, %v5650_v29 }
 0x150   : > { %4581 = vmatpush3.bf16.xpose.msra.mxu0 %v946_v19 }
 0x151   : > { %4753 = vmatprep.subr.msk.bf16.mxu0 %vm911_vm0, %v5660_v31 }
 0x158   : > { %4583 = vmatpush3.bf16.xpose.msra.mxu0 %v943_v8 }
 0x159   : > { %4754 = vmatprep.subr.msk.bf16.mxu0 %vm911_vm0, %v5670_v38 }
 0x160   : > { %4585 = vmatpush3.bf16.xpose.msra.mxu0 %v940_v63 }
 0x161   : > { %4755 = vmatprep.subr.msk.bf16.mxu0 %vm911_vm0, %v5680_v3 }
 0x168   : > { %4587 = vmatpush3.bf16.xpose.msra.mxu0 %v937_v52 }
 0x16f   : > { %4589 = vmatmul.mubr.msk.bf16.vlgmr.msra.gmra.mxu0 %vm911_vm0, %v5498_v4 }
 0x170   : > { %4592 = vmatprep.mubr.msk.bf16.mxu0 %vm911_vm0, %v5512_v14 }
 0x177   : > { %4593 = vmatmul.mubr.msk.bf16.gmra.mxu0 %vm911_vm0, %v5524_v25 }
 0x178   : > { %4596 = vmatprep.mubr.msk.bf16.mxu0 %vm911_vm0, %v5535_v37 }
 0x17f   : > { %4597 = vmatmul.mubr.msk.bf16.gmra.mxu0 %vm911_vm0, %v5551_v57 }
 0x180   : > { %4600 = vmatprep.mubr.msk.bf16.mxu0 %vm911_vm0, %v5576_v35 }
 0x187   : > { %4601 = vmatmul.mubr.msk.bf16.gmra.mxu0 %vm911_vm0, %v5597_v58 }
 0x1a1   : > { %v5702_v55 = vpop.permute.xlu0 %1398 }
 0x1a2   : > { %4756 = vmatprep.subr.msk.bf16.mxu1 %vm911_vm0, %v5702_v55 }
 0x22f   : > { %v4590_v28 = vpop.f32.mrf.mxu0 }
 0x230   : > { %v1059_v44 = vmul.f32 0.125, %v4590_v28 }
 0x231   : > { %v994_v45 = vpop.f32.mrf.mxu0 }
 0x232   : > { %v1057_v46 = vmul.f32 0.125, %v994_v45  ;;  %v5713_v18 = vadd.f32 %v5710_v59, %v1059_v44 }
 0x233   : > { %v4591_v23 = vpop.f32.mrf.mxu0 }
 0x234   : > { %v1060_v48 = vmul.f32 0.125, %v4591_v23  ;;  %1099 = vmax.xlane.f32.xlu1 %v5713_v18  ;;  %v5717_v53 = vadd.f32 %v5710_v59, %v1057_v46 }
 0x235   : > { %v997_v56 = vpop.f32.mrf.mxu0 }
 0x236   : > { %v1058_v61 = vmul.f32 0.125, %v997_v56  ;;  %1095 = vmax.xlane.f32.xlu0 %v5717_v53  ;;  %v5721_v62 = vadd.f32 %v5710_v59, %v1060_v48 }
 0x237   : > { %v4594_v54 = vpop.f32.mrf.mxu0 }
 0x238   : > { %v1063_v20 = vmul.f32 0.125, %v4594_v54  ;;  %1101 = vmax.xlane.f32.xlu1 %v5721_v62  ;;  %v5725_v26 = vadd.f32 %v5710_v59, %v1058_v61 }
 0x239   : > { %v1010_v5 = vpop.f32.mrf.mxu0 }
 0x23a   : > { %1097 = vmax.xlane.f32.xlu0 %v5725_v26  ;;  %v1061_v10 = vmul.f32 0.125, %v1010_v5  ;;  %v5729_v21 = vadd.f32 %v5710_v59, %v1063_v20 }
 0x23b   : > { %v4595_v12 = vpop.f32.mrf.mxu0 }
 0x23c   : > { %v1064_v11 = vmul.f32 0.125, %v4595_v12  ;;  %v5737_v30 = vadd.f32 %v5710_v59, %v1061_v10 }
 0x23d   : > { %v1013_v15 = vpop.f32.mrf.mxu0 }
 0x23e   : > { %v1062_v40 = vmul.f32 0.125, %v1013_v15  ;;  %1107 = vmax.xlane.f32.xlu0 %v5729_v21  ;;  %v5733_v49 = vadd.f32 %v5710_v59, %v1064_v11  ;;  %v5780_v11 = vpop.permute.xlu1 %1396 }
 0x23f   : > { %v4598_v27 = vpop.f32.mrf.mxu0 }
 0x240   : > { %v1067_v36 = vmul.f32 0.125, %v4598_v27  ;;  %1109 = vmax.xlane.f32.xlu1 %v5733_v49  ;;  %v5741_v34 = vadd.f32 %v5710_v59, %v1062_v40 }
 0x241   : > { %v1026_v32 = vpop.f32.mrf.mxu0 }
 0x242   : > { %1103 = vmax.xlane.f32.xlu0 %v5737_v30  ;;  %v1065_v24 = vmul.f32 0.125, %v1026_v32  ;;  %v5745_v8 = vadd.f32 %v5710_v59, %v1067_v36 }
 0x243   : > { %v4599_v19 = vpop.f32.mrf.mxu0 }
 0x244   : > { %v1068_v39 = vmul.f32 0.125, %v4599_v19  ;;  %1105 = vmax.xlane.f32.xlu1 %v5741_v34  ;;  %v5753_v44 = vadd.f32 %v5710_v59, %v1065_v24 }
 0x245   : > { %v1029_v13 = vpop.f32.mrf.mxu0 }
 0x246   : > { %v1066_v41 = vmul.f32 0.125, %v1029_v13  ;;  %1115 = vmax.xlane.f32.xlu0 %v5745_v8  ;;  %v5749_v63 = vadd.f32 %v5710_v59, %v1068_v39 }
 0x247   : > { %v4602_v52 = vpop.f32.mrf.mxu0 }
 0x248   : > { %v1071_v28 = vmul.f32 0.125, %v4602_v52  ;;  %1117 = vmax.xlane.f32.xlu1 %v5749_v63  ;;  %v5757_v46 = vadd.f32 %v5710_v59, %v1066_v41 }
 0x249   : > { %v1042_v45 = vpop.f32.mrf.mxu0 }
 0x24a   : > { %1111 = vmax.xlane.f32.xlu0 %v5753_v44  ;;  %v1069_v23 = vmul.f32 0.125, %v1042_v45  ;;  %v5761_v48 = vadd.f32 %v5710_v59, %v1071_v28 }
 0x24b   : > { %v4603_v61 = vpop.f32.mrf.mxu0 }
 0x24c   : > { %1113 = vmax.xlane.f32.xlu1 %v5757_v46  ;;  %v5765_v56 = vadd.f32 %v5710_v59, %v1069_v23  ;;  %v1072_v54 = vmul.f32 0.125, %v4603_v61 }
 0x24d   : > { %v1045_v20 = vpop.f32.mrf.mxu0 }
 0x24e   : > { %1123 = vmax.xlane.f32.xlu0 %v5761_v48  ;;  %v1070_v5 = vmul.f32 0.125, %v1045_v20  ;;  %v5773_v12 = vadd.f32 %v5710_v59, %v1072_v54 }
 0x250   : > { %v5777_v10 = vadd.f32 %v5710_v59, %v1070_v5 }
 0x252   : > { %1119 = vmax.xlane.f32.xlu0 %v5765_v56 }
 0x25d   : > { %1392 = vrot.lane.b32.xlu1 %v5640_v43, %s5279_s19 }
 0x268   : > { %1394 = vrot.lane.b32.xlu0 %v5628_v9, %s5279_s19 }
 0x281   : > { %1125 = vmax.xlane.f32.xlu1 %v5773_v12 }
 0x285   : > { %1121 = vmax.xlane.f32.xlu1 %v5777_v10 }
 0x2bd   : > { %v1100_v43 = vpop.xlane.xlu1 %1099 }
 0x2be   : > { %v1129_v15 = vsub.f32 %v5713_v18, %v1100_v43 }
 0x2bf   : > { %v1096_v9 = vpop.xlane.xlu0 %1095 }
 0x2c0   : > { %v1147_v40 = vmul.f32 1.442695, %v1129_v15  ;;  %v1127_v27 = vsub.f32 %v5717_v53, %v1096_v9 }
 0x2c1   : > { %v1102_v36 = vpop.xlane.xlu1 %1101 }
 0x2c2   : > { %4934 = vpow2.f32 %v1147_v40  ;;  %v1143_v32 = vmul.f32 1.442695, %v1127_v27  ;;  %v1130_v19 = vsub.f32 %v5721_v62, %v1102_v36 }
 0x2c3   : > { %v1098_v24 = vpop.xlane.xlu0 %1097 }
 0x2c4   : > { %v1149_v39 = vmul.f32 1.442695, %v1130_v19  ;;  %v1128_v13 = vsub.f32 %v5725_v26, %v1098_v24  ;;  %4936 = vpow2.f32 %v1143_v32 }
 0x2c6   : > { %4938 = vpow2.f32 %v1149_v39  ;;  %v1145_v41 = vmul.f32 1.442695, %v1128_v13 }
 0x2c7   : > { %v1108_v26 = vpop.xlane.xlu0 %1107 }
 0x2c8   : > { %4940 = vpow2.f32 %v1145_v41  ;;  %v1133_v54 = vsub.f32 %v5729_v21, %v1108_v26 }
 0x2c9   : > { %v1110_v23 = vpop.xlane.xlu1 %1109 }
 0x2ca   : > { %v1155_v15 = vmul.f32 1.442695, %v1133_v54  ;;  %v1134_v40 = vsub.f32 %v5733_v49, %v1110_v23 }
 0x2cb   : > { %v1104_v28 = vpop.xlane.xlu0 %1103 }
 0x2cc   : > { %v1131_v5 = vsub.f32 %v5737_v30, %v1104_v28  ;;  %4942 = vpow2.f32 %v1155_v15  ;;  %v1157_v19 = vmul.f32 1.442695, %v1134_v40 }
 0x2cd   : > { %v1106_v20 = vpop.xlane.xlu1 %1105 }
 0x2ce   : > { %v1132_v9 = vsub.f32 %v5741_v34, %v1106_v20  ;;  %v1151_v27 = vmul.f32 1.442695, %v1131_v5 }
 0x2cf   : > { %v5786_v52 = vpop.eup %4934  ;;  %v1116_v45 = vpop.xlane.xlu0 %1115 }
 0x2d0   : > { %1179 = vadd.xlane.f32.xlu0 %v5786_v52  ;;  %4944 = vpow2.f32 %v1151_v27  ;;  %v1137_v21 = vsub.f32 %v5745_v8, %v1116_v45 }
 0x2d1   : > { %v5789_v18 = vpop.eup %4936  ;;  %v1118_v36 = vpop.xlane.xlu1 %1117 }
 0x2d2   : > { %v1163_v34 = vmul.f32 1.442695, %v1137_v21  ;;  %v1138_v41 = vsub.f32 %v5749_v63, %v1118_v36 }
 0x2d3   : > { %v5791_v53 = vpop.eup %4938  ;;  %v1112_v61 = vpop.xlane.xlu0 %1111 }
 0x2d4   : > { %1175 = vadd.xlane.f32.xlu0 %v5789_v18  ;;  %1181 = vadd.xlane.f32.xlu1 %v5791_v53  ;;  %v1135_v49 = vsub.f32 %v5753_v44, %v1112_v61  ;;  %v1165_v8 = vmul.f32 1.442695, %v1138_v41 }
 0x2d5   : > { %v5795_v62 = vpop.eup %4940  ;;  %v1114_v39 = vpop.xlane.xlu1 %1113 }
 0x2d6   : > { %v1159_v26 = vmul.f32 1.442695, %v1135_v49  ;;  %v1136_v44 = vsub.f32 %v5757_v46, %v1114_v39 }
 0x2d7   : > { %v1124_v43 = vpop.xlane.xlu0 %1123 }
 0x2d8   : > { %1177 = vadd.xlane.f32.xlu1 %v5795_v62  ;;  %v1141_v32 = vsub.f32 %v5761_v48, %v1124_v43  ;;  %v1161_v5 = vmul.f32 1.442695, %v1136_v44 }
 0x2d9   : > { %v5811_v48 = vpop.permute.xlu1 %1392  ;;  %v5813_v28 = vpop.eup %4942 }
 0x2da   : > { %v1171_v24 = vmul.f32 1.442695, %v1141_v32 }
 0x2dd   : > { %v5816_v45 = vpop.eup %4944 }
 0x2e9   : > { %1388 = vrot.lane.b32.xlu1 %v5660_v31, %s5279_s19  ;;  %v1153_v31 = vmul.f32 1.442695, %v1132_v9 }
 0x2ea   : > { %1390 = vrot.lane.b32.xlu0 %v5650_v29, %s5279_s19  ;;  %v1120_v29 = vpop.xlane.xlu0 %1119 }
 0x2eb   : > { %4946 = vpow2.f32 %v1153_v31  ;;  %v1139_v30 = vsub.f32 %v5765_v56, %v1120_v29  ;;  %v1446_v29 = vsel %vm911_vm0, %v5702_v55, 0 }
 0x2ec   : > { %4948 = vpow2.f32 %v1157_v19 }
 0x2ed   : > { %4950 = vpow2.f32 %v1171_v24  ;;  %v1167_v13 = vmul.f32 1.442695, %v1139_v30 }
 0x2ee   : > { %4952 = vpow2.f32 %v1163_v34 }
 0x2ef   : > { %4954 = vpow2.f32 %v1167_v13 }
 0x2f0   : > { %4956 = vpow2.f32 %v1159_v26 }
 0x2f1   : > { %4958 = vpow2.f32 %v1165_v8 }
 0x2f8   : > { %v5820_v61 = vpop.eup %4946 }
 0x2f9   : > { %v5824_v20 = vpop.eup %4948 }
 0x2fa   : > { %v5827_v15 = vpop.eup %4950 }
 0x2fb   : > { %v5831_v46 = vpop.eup %4952 }
 0x2fc   : > { %v5833_v9 = vpop.eup %4954 }
 0x2fd   : > { %v5837_v40 = vpop.eup %4956 }
 0x309   : > { %1187 = vadd.xlane.f32.xlu0 %v5813_v28 }
 0x30a   : > { %v1126_v56 = vpop.xlane.xlu1 %1125 }
 0x30b   : > { %v1142_v23 = vsub.f32 %v5773_v12, %v1126_v56 }
 0x30d   : > { %v1173_v63 = vmul.f32 1.442695, %v1142_v23  ;;  %1185 = vadd.xlane.f32.xlu0 %v5820_v61  ;;  %1183 = vadd.xlane.f32.xlu1 %v5816_v45 }
 0x30e   : > { %v1122_v54 = vpop.xlane.xlu1 %1121 }
 0x30f   : > { %4960 = vpow2.f32 %v1173_v63  ;;  %v1140_v43 = vsub.f32 %v5777_v10, %v1122_v54  ;;  %v5840_v10 = vpop.eup %4958 }
 0x310   : > { %4962 = vpow2.f32 %v1161_v5 }
 0x311   : > { %1203 = vadd.xlane.f32.xlu0 %v5827_v15  ;;  %1189 = vadd.xlane.f32.xlu1 %v5824_v20  ;;  %v1169_v12 = vmul.f32 1.442695, %v1140_v43 }
 0x313   : > { %4964 = vpow2.f32 %v1169_v12 }
 0x315   : > { %1199 = vadd.xlane.f32.xlu0 %v5833_v9  ;;  %1195 = vadd.xlane.f32.xlu1 %v5831_v46 }
 0x319   : > { %1191 = vadd.xlane.f32.xlu1 %v5837_v40 }
 0x31c   : > { %v5842_v27 = vpop.eup %4960 }
 0x31d   : > { %1205 = vadd.xlane.f32.xlu0 %v5842_v27  ;;  %1197 = vadd.xlane.f32.xlu1 %v5840_v10  ;;  %v5846_v36 = vpop.eup %4962 }
 0x320   : > { %v5849_v31 = vpop.eup %4964 }
 0x321   : > { %1193 = vadd.xlane.f32.xlu1 %v5846_v36 }
 0x325   : > { %1201 = vadd.xlane.f32.xlu1 %v5849_v31 }
 0x333   : > { %1386 = vrot.lane.b32.xlu0 %v5670_v38, %s5279_s19 }
 0x336   : > { %1384 = vrot.lane.b32.xlu1 %v5680_v3, %s5279_s19 }
 0x337   : > { %1360 = vrot.lane.b32.xlu0 %v5488_v60, %s5279_s19  ;;  %v1395_v60 = vpop.permute.xlu0 %1394 }
 0x33a   : > { %1362 = vrot.lane.b32.xlu1 %v5498_v4, %s5279_s19 }
 0x33b   : > { %1364 = vrot.lane.b32.xlu0 %v5512_v14, %s5279_s19 }
 0x33e   : > { %1366 = vrot.lane.b32.xlu1 %v5524_v25, %s5279_s19 }
 0x33f   : > { %1368 = vrot.lane.b32.xlu0 %v5535_v37, %s5279_s19 }
 0x342   : > { %1370 = vrot.lane.b32.xlu1 %v5551_v57, %s5279_s19 }
 0x343   : > { %1372 = vrot.lane.b32.xlu0 %v5576_v35, %s5279_s19 }
 0x346   : > { %1374 = vrot.lane.b32.xlu1 %v5597_v58, %s5279_s19 }
 0x347   : > { %1751 = vrot.lane.b32.xlu0 %v5555_v1, %s5279_s19 }
 0x34a   : > { %1749 = vrot.lane.b32.xlu1 %v5560_v16, %s5279_s19 }
 0x34b   : > { %1747 = vrot.lane.b32.xlu0 %v5565_v22, %s5279_s19 }
 0x34f   : > { %1745 = vrot.lane.b32.xlu0 %v5582_v42, %s5279_s19 }
 0x359   : > { %v1180_v4 = vpop.xlane.xlu0 %1179 }
 0x35d   : > { %v1176_v14 = vpop.xlane.xlu0 %1175  ;;  %v1182_v25 = vpop.xlane.xlu1 %1181 }
 0x35e   : > { %4966 = vrcp.f32 %v1182_v25 }
 0x35f   : > { %4968 = vrcp.f32 %v1176_v14 }
 0x360   : > { %4970 = vrcp.f32 %v1180_v4 }
 0x361   : > { %v1178_v37 = vpop.xlane.xlu1 %1177  ;;  %v1391_v55 = vpop.permute.xlu0 %1390 }
 0x362   : > { %4972 = vrcp.f32 %v1178_v37 }
 0x36b   : > { %v4967_v57 = vpop.eup %4966 }
 0x36c   : > { %v4969_v1 = vpop.eup %4968  ;;  %v1226_v16 = vmul.f32 %v4967_v57, %v5791_v53  ;;  %v1443_v53 = vsel %vm911_vm0, %v5780_v11, 0 }
 0x36d   : > { %v4971_v35 = vpop.eup %4970  ;;  %v1223_v22 = vmul.f32 %v4969_v1, %v5789_v18  ;;  %v1440_v18 = vsel %vm911_vm0, %v1395_v60, 0 }
 0x36e   : > { %v1225_v42 = vmul.f32 %v4971_v35, %v5786_v52  ;;  %v1437_v52 = vsel %vm911_vm0, %v5811_v48, 0 }
 0x36f   : > { %v4973_v58 = vpop.eup %4972 }
 0x370   : > { %v1224_v38 = vmul.f32 %v4973_v58, %v5795_v62  ;;  %v1240_v32 = vpack.c.bf16 %v1226_v16, %v1225_v42  ;;  %v1389_v62 = vpop.permute.xlu1 %1388 }
 0x371   : > { %v1431_v34 = vsel %vm911_vm0, %v1389_v62, 0 }
 0x372   : > { %v1239_v3 = vpack.c.bf16 %v1224_v38, %v1223_v22 }
 0x374   : > { %4620 = vmatprep.mubr.bf16.mxu1 %v1239_v3 }
 0x375   : > { %4621 = vmatmul.mubr.bf16.vlgmr.msra.gmra.mxu1 %v1240_v32 }
 0x376   : > { %4637 = vmatpush3.bf16.xpose.msra.mxu1 %v1446_v29 }
 0x377   : > { %4757 = vmatprep.subr.msk.bf16.mxu1 %vm911_vm0, %v5780_v11  ;;  %v1434_v11 = vsel %vm911_vm0, %v1391_v55, 0 }
 0x37e   : > { %4639 = vmatpush3.bf16.xpose.msra.mxu1 %v1443_v53 }
 0x37f   : > { %4758 = vmatprep.subr.msk.bf16.mxu1 %vm911_vm0, %v1395_v60 }
 0x386   : > { %4641 = vmatpush3.bf16.xpose.msra.mxu1 %v1440_v18 }
 0x387   : > { %4759 = vmatprep.subr.msk.bf16.mxu1 %vm911_vm0, %v5811_v48 }
 0x38e   : > { %4643 = vmatpush3.bf16.xpose.msra.mxu1 %v1437_v52 }
 0x38f   : > { %4760 = vmatprep.subr.msk.bf16.mxu1 %vm911_vm0, %v1391_v55 }
 0x392   : > { %v1188_v19 = vpop.xlane.xlu0 %1187 }
 0x396   : > { %4645 = vmatpush3.bf16.xpose.msra.mxu1 %v1434_v11  ;;  %v1186_v21 = vpop.xlane.xlu0 %1185  ;;  %v1184_v24 = vpop.xlane.xlu1 %1183 }
 0x397   : > { %4974 = vrcp.f32 %v1186_v21  ;;  %4761 = vmatprep.subr.msk.bf16.mxu1 %vm911_vm0, %v1389_v62 }
 0x398   : > { %4976 = vrcp.f32 %v1184_v24 }
 0x399   : > { %4978 = vrcp.f32 %v1188_v19 }
 0x39a   : > { %v1190_v30 = vpop.xlane.xlu1 %1189  ;;  %v1204_v39 = vpop.xlane.xlu0 %1203 }
 0x39b   : > { %4980 = vrcp.f32 %v1190_v30 }
 0x39e   : > { %4647 = vmatpush3.bf16.xpose.msra.mxu1 %v1431_v34  ;;  %v1196_v49 = vpop.xlane.xlu1 %1195  ;;  %v1200_v13 = vpop.xlane.xlu0 %1199 }
 0x3a2   : > { %v1192_v41 = vpop.xlane.xlu1 %1191 }
 0x3a4   : > { %v4975_v48 = vpop.eup %4974 }
 0x3a5   : > { %v4977_v26 = vpop.eup %4976  ;;  %v1228_v8 = vmul.f32 %v4975_v48, %v5820_v61 }
 0x3a6   : > { %v1206_v56 = vpop.xlane.xlu0 %1205  ;;  %v1198_v44 = vpop.xlane.xlu1 %1197  ;;  %v1227_v23 = vmul.f32 %v4977_v26, %v5816_v45 }
 0x3a7   : > { %v4979_v63 = vpop.eup %4978  ;;  %4982 = vrcp.f32 %v1198_v44 }
 0x3a8   : > { %v1241_v54 = vpack.c.bf16 %v1228_v8, %v1227_v23  ;;  %v4981_v5 = vpop.eup %4980  ;;  %4984 = vrcp.f32 %v1192_v41  ;;  %v1229_v60 = vmul.f32 %v4979_v63, %v5813_v28 }
 0x3a9   : > { %4986 = vrcp.f32 %v1196_v49  ;;  %v1230_v4 = vmul.f32 %v4981_v5, %v5824_v20 }
 0x3aa   : > { %4624 = vmatprep.mubr.bf16.mxu1 %v1241_v54  ;;  %v1387_v43 = vpop.permute.xlu0 %1386  ;;  %v1194_v12 = vpop.xlane.xlu1 %1193 }
 0x3ab   : > { %4988 = vrcp.f32 %v1194_v12  ;;  %4762 = vmatprep.subr.msk.bf16.mxu1 %vm911_vm0, %v1387_v43  ;;  %v1428_v61 = vsel %vm911_vm0, %v1387_v43, 0  ;;  %v1242_v45 = vpack.c.bf16 %v1230_v4, %v1229_v60 }
 0x3ac   : > { %4649 = vmatpush3.bf16.xpose.msra.mxu1 %v1428_v61  ;;  %4990 = vrcp.f32 %v1200_v13 }
 0x3ad   : > { %4625 = vmatmul.mubr.bf16.gmra.mxu1 %v1242_v45 }
 0x3ae   : > { %v1361_v14 = vpop.permute.xlu0 %1360  ;;  %v1202_v25 = vpop.xlane.xlu1 %1201 }
 0x3af   : > { %4992 = vrcp.f32 %v1202_v25 }
 0x3b0   : > { %4994 = vrcp.f32 %v1206_v56 }
 0x3b1   : > { %4996 = vrcp.f32 %v1204_v39 }
 0x3b2   : > { %v1365_v37 = vpop.permute.xlu0 %1364  ;;  %v1385_v57 = vpop.permute.xlu1 %1384 }
 0x3b3   : > { %4763 = vmatprep.subr.msk.bf16.mxu1 %vm911_vm0, %v1385_v57  ;;  %v1425_v28 = vsel %vm911_vm0, %v1385_v57, 0 }
 0x3b4   : > { %4651 = vmatpush3.bf16.xpose.msra.mxu1 %v1425_v28  ;;  %v4983_v20 = vpop.eup %4982 }
 0x3b5   : > { %v4985_v1 = vpop.eup %4984  ;;  %v1234_v38 = vmul.f32 %v4983_v20, %v5840_v10 }
 0x3b6   : > { %v1369_v35 = vpop.permute.xlu0 %1368  ;;  %v1363_v58 = vpop.permute.xlu1 %1362  ;;  %v1231_v42 = vmul.f32 %v4985_v1, %v5837_v40 }
 0x3b7   : > { %v4987_v16 = vpop.eup %4986 }
 0x3b8   : > { %v4989_v22 = vpop.eup %4988  ;;  %v1233_v18 = vmul.f32 %v4987_v16, %v5831_v46 }
 0x3b9   : > { %v1232_v3 = vmul.f32 %v4989_v22, %v5846_v36  ;;  %v4991_v32 = vpop.eup %4990 }
 0x3ba   : > { %v1373_v29 = vpop.permute.xlu0 %1372  ;;  %v1367_v53 = vpop.permute.xlu1 %1366  ;;  %v1244_v62 = vpack.c.bf16 %v1234_v38, %v1233_v18  ;;  %v1235_v11 = vmul.f32 %v4991_v32, %v5833_v9 }
 0x3bb   : > { %v1243_v52 = vpack.c.bf16 %v1232_v3, %v1231_v42 }
 0x3bc   : > { %v4993_v55 = vpop.eup %4992 }
 0x3bd   : > { %v4995_v19 = vpop.eup %4994  ;;  %4628 = vmatprep.mubr.bf16.mxu1 %v1243_v52  ;;  %v1236_v21 = vmul.f32 %v4993_v55, %v5849_v31 }
 0x3be   : > { %4629 = vmatmul.mubr.bf16.gmra.mxu1 %v1244_v62  ;;  %v1371_v10 = vpop.permute.xlu1 %1370  ;;  %v1752_v24 = vpop.permute.xlu0 %1751  ;;  %v1238_v36 = vmul.f32 %v4995_v19, %v5842_v27 }
 0x3bf   : > { %v4997_v40 = vpop.eup %4996  ;;  %v1245_v30 = vpack.c.bf16 %v1236_v21, %v1235_v11  ;;  %4668 = vmatprep.subr.bf16.mxu0 %v1752_v24 }
 0x3c0   : > { %4669 = vmatpush3.bf16.msra.mxu0 %v1752_v24  ;;  %v1237_v39 = vmul.f32 %v4997_v40, %v5827_v15 }
 0x3c1   : > { %4632 = vmatprep.mubr.bf16.mxu1 %v1245_v30 }
 0x3c2   : > { %v1375_v46 = vpop.permute.xlu1 %1374  ;;  %v1246_v34 = vpack.c.bf16 %v1238_v36, %v1237_v39  ;;  %v1748_v49 = vpop.permute.xlu0 %1747 }
 0x3c6   : > { %4633 = vmatmul.mubr.bf16.gmra.mxu1 %v1246_v34  ;;  %v1750_v13 = vpop.permute.xlu1 %1749  ;;  %v1746_v9 = vpop.permute.xlu0 %1745 }
 0x3c7   : > { %4652 = vmatprep.mubr.msk.bf16.mxu1 %vm911_vm0, %v1361_v14  ;;  %4670 = vmatprep.subr.bf16.mxu0 %v1750_v13 }
 0x3c8   : > { %4671 = vmatpush3.bf16.msra.mxu0 %v1750_v13 }
 0x3c9   : > { %4672 = vmatprep.subr.bf16.mxu0 %v1748_v49 }
 0x3cc   : > { %4673 = vmatpush3.bf16.msra.mxu0 %v1748_v49 }
 0x3cd   : > { %4674 = vmatprep.subr.bf16.mxu0 %v1746_v9 }
 0x3ce   : > { %4653 = vmatmul.mubr.msk.bf16.vlgmr.msra.gmra.mxu1 %vm911_vm0, %v1363_v58 }
 0x3cf   : > { %4656 = vmatprep.mubr.msk.bf16.mxu1 %vm911_vm0, %v1365_v37 }
 0x3d0   : > { %4675 = vmatpush3.bf16.msra.mxu0 %v1746_v9 }
 0x3d6   : > { %4657 = vmatmul.mubr.msk.bf16.gmra.mxu1 %vm911_vm0, %v1367_v53 }
 0x3d7   : > { %4660 = vmatprep.mubr.msk.bf16.mxu1 %vm911_vm0, %v1369_v35 }
 0x3de   : > { %4661 = vmatmul.mubr.msk.bf16.gmra.mxu1 %vm911_vm0, %v1371_v10 }
 0x3df   : > { %4664 = vmatprep.mubr.msk.bf16.mxu1 %vm911_vm0, %v1373_v29 }
 0x3e6   : > { %4665 = vmatmul.mubr.msk.bf16.gmra.mxu1 %vm911_vm0, %v1375_v46 }
 0x3e7   : > { %2607 = vmatprep.mubr.bf16.mxu1 %v5278_v2 }
 0x435   : > { %v5925_v15 = vpop.f32.mrf.mxu1 }
 0x437   : > { %v5927_v27 = vpop.f32.mrf.mxu1 }
 0x439   : > { %v5929_v31 = vpop.f32.mrf.mxu1 }
 0x43b   : > { %v5931_v41 = vpop.f32.mrf.mxu1 }
 0x46d   : > { %v5933_v48 = vpop.f32.mrf.mxu1 }
 0x46f   : > { %v5935_v26 = vpop.f32.mrf.mxu1 }
 0x471   : > { %v5937_v8 = vpop.f32.mrf.mxu1 }
 0x473   : > { %v5939_v56 = vpop.f32.mrf.mxu1 }
 0x47e   : > { %v5941_v44 = vpop.f32.mrf.mxu1 }
 0x480   : > { %v5943_v23 = vpop.f32.mrf.mxu1 }
 0x482   : > { %v5945_v63 = vpop.f32.mrf.mxu1 }
 0x484   : > { %v5947_v54 = vpop.f32.mrf.mxu1 }
 0x486   : > { %v5949_v5 = vpop.f32.mrf.mxu1 }
 0x488   : > { %v5951_v43 = vpop.f32.mrf.mxu1 }
 0x48a   : > { %v5953_v12 = vpop.f32.mrf.mxu1 }
 0x48c   : > { %v5955_v60 = vpop.f32.mrf.mxu1 }
 0x48e   : > { %v4654_v4 = vpop.f32.mrf.mxu1 }
 0x48f   : > { %v1547_v61 = vmul.f32 0.125, %v4654_v4 }
 0x490   : > { %v1482_v45 = vpop.f32.mrf.mxu1 }
 0x491   : > { %v1545_v14 = vmul.f32 0.125, %v1482_v45  ;;  %v5958_v25 = vadd.f32 %v5710_v59, %v1547_v61 }
 0x492   : > { %v4655_v37 = vpop.f32.mrf.mxu1 }
 0x493   : > { %1581 = vmax.xlane.f32.xlu0 %v5958_v25  ;;  %v1548_v28 = vmul.f32 0.125, %v4655_v37  ;;  %v5962_v1 = vadd.f32 %v5710_v59, %v1545_v14 }
 0x494   : > { %v1485_v57 = vpop.f32.mrf.mxu1 }
 0x495   : > { %v1546_v20 = vmul.f32 0.125, %v1485_v57  ;;  %v1564_v38 = vadd.f32 %v5710_v59, %v1548_v28 }
 0x496   : > { %v4658_v35 = vpop.f32.mrf.mxu1 }
 0x497   : > { %1577 = vmax.xlane.f32.xlu0 %v5962_v1  ;;  %v5966_v58 = vadd.f32 %v5710_v59, %v1546_v20  ;;  %v1551_v22 = vmul.f32 0.125, %v4658_v35 }
 0x498   : > { %v1498_v16 = vpop.f32.mrf.mxu1 }
 0x499   : > { %1579 = vmax.xlane.f32.xlu1 %v5966_v58  ;;  %v1549_v29 = vmul.f32 0.125, %v1498_v16  ;;  %v1567_v18 = vadd.f32 %v5710_v59, %v1551_v22 }
 0x49a   : > { %v4659_v42 = vpop.f32.mrf.mxu1 }
 0x49b   : > { %v1552_v3 = vmul.f32 0.125, %v4659_v42  ;;  %1583 = vmax.xlane.f32.xlu0 %v1564_v38  ;;  %v5973_v11 = vadd.f32 %v5710_v59, %v1549_v29 }
 0x49c   : > { %v1501_v32 = vpop.f32.mrf.mxu1 }
 0x49d   : > { %v1550_v53 = vmul.f32 0.125, %v1501_v32  ;;  %v1568_v52 = vadd.f32 %v5710_v59, %v1552_v3 }
 0x49e   : > { %v4662_v55 = vpop.f32.mrf.mxu1 }
 0x49f   : > { %1589 = vmax.xlane.f32.xlu0 %v1567_v18  ;;  %1591 = vmax.xlane.f32.xlu1 %v1568_v52  ;;  %v1555_v19 = vmul.f32 0.125, %v4662_v55  ;;  %v5976_v21 = vadd.f32 %v5710_v59, %v1550_v53 }
 0x4a0   : > { %v1514_v62 = vpop.f32.mrf.mxu1 }
 0x4a1   : > { %v1553_v30 = vmul.f32 0.125, %v1514_v62  ;;  %v5981_v46 = vadd.f32 %v5710_v59, %v1555_v19 }
 0x4a2   : > { %v4663_v10 = vpop.f32.mrf.mxu1 }
 0x4a3   : > { %v1556_v24 = vmul.f32 0.125, %v4663_v10  ;;  %1585 = vmax.xlane.f32.xlu0 %v5973_v11  ;;  %1587 = vmax.xlane.f32.xlu1 %v5976_v21  ;;  %v5989_v13 = vadd.f32 %v5710_v59, %v1553_v30 }
 0x4a4   : > { %v1517_v40 = vpop.f32.mrf.mxu1 }
 0x4a5   : > { %v1554_v36 = vmul.f32 0.125, %v1517_v40  ;;  %v5984_v39 = vadd.f32 %v5710_v59, %v1556_v24 }
 0x4a6   : > { %v4666_v34 = vpop.f32.mrf.mxu1 }
 0x4a7   : > { %1597 = vmax.xlane.f32.xlu0 %v5981_v46  ;;  %1599 = vmax.xlane.f32.xlu1 %v5984_v39  ;;  %v1559_v49 = vmul.f32 0.125, %v4666_v34  ;;  %v5992_v9 = vadd.f32 %v5710_v59, %v1554_v36 }
 0x4a8   : > { %v1530_v4 = vpop.f32.mrf.mxu1 }
 0x4a9   : > { %v1557_v61 = vmul.f32 0.125, %v1530_v4  ;;  %v5997_v45 = vadd.f32 %v5710_v59, %v1559_v49 }
 0x4aa   : > { %v4667_v37 = vpop.f32.mrf.mxu1 }
 0x4ab   : > { %1593 = vmax.xlane.f32.xlu0 %v5989_v13  ;;  %1595 = vmax.xlane.f32.xlu1 %v5992_v9  ;;  %v6001_v14 = vadd.f32 %v5710_v59, %v1557_v61  ;;  %v1560_v57 = vmul.f32 0.125, %v4667_v37 }
 0x4ac   : > { %v1533_v28 = vpop.f32.mrf.mxu1 }
 0x4ad   : > { %v1558_v20 = vmul.f32 0.125, %v1533_v28  ;;  %v6009_v35 = vadd.f32 %v5710_v59, %v1560_v57 }
 0x4af   : > { %1605 = vmax.xlane.f32.xlu0 %v5997_v45  ;;  %v6013_v16 = vadd.f32 %v5710_v59, %v1558_v20 }
 0x4b3   : > { %1601 = vmax.xlane.f32.xlu0 %v6001_v14 }
 0x4bc   : > { %1741 = vrot.lane.b32.xlu1 %v5606_v0, %s5279_s19 }
 0x4c9   : > { %1743 = vrot.lane.b32.xlu0 %v5588_v47, %s5279_s19 }
 0x4e0   : > { %1607 = vmax.xlane.f32.xlu1 %v6009_v35 }
 0x4e4   : > { %1603 = vmax.xlane.f32.xlu1 %v6013_v16 }
 0x51c   : > { %v1582_v22 = vpop.xlane.xlu0 %1581 }
 0x51d   : > { %v1611_v0 = vsub.f32 %v5958_v25, %v1582_v22 }
 0x51f   : > { %v1629_v42 = vmul.f32 1.442695, %v1611_v0 }
 0x520   : > { %v1578_v3 = vpop.xlane.xlu0 %1577 }
 0x521   : > { %4998 = vpow2.f32 %v1629_v42  ;;  %v1609_v47 = vsub.f32 %v5962_v1, %v1578_v3 }
 0x522   : > { %v1580_v32 = vpop.xlane.xlu1 %1579 }
 0x523   : > { %v1625_v29 = vmul.f32 1.442695, %v1609_v47  ;;  %v1610_v53 = vsub.f32 %v5966_v58, %v1580_v32 }
 0x524   : > { %v1584_v55 = vpop.xlane.xlu0 %1583 }
 0x525   : > { %5000 = vpow2.f32 %v1625_v29  ;;  %v1612_v62 = vsub.f32 %v1564_v38, %v1584_v55  ;;  %v1627_v59 = vmul.f32 1.442695, %v1610_v53 }
 0x527   : > { %v1631_v19 = vmul.f32 1.442695, %v1612_v62 }
 0x528   : > { %v1590_v10 = vpop.xlane.xlu0 %1589  ;;  %v1592_v24 = vpop.xlane.xlu1 %1591 }
 0x529   : > { %5002 = vpow2.f32 %v1631_v19  ;;  %v1615_v40 = vsub.f32 %v1567_v18, %v1590_v10  ;;  %v1616_v30 = vsub.f32 %v1568_v52, %v1592_v24 }
 0x52a   : > { %5004 = vpow2.f32 %v1627_v59 }
 0x52b   : > { %v1637_v25 = vmul.f32 1.442695, %v1615_v40  ;;  %v1639_v36 = vmul.f32 1.442695, %v1616_v30 }
 0x52c   : > { %v1586_v34 = vpop.xlane.xlu0 %1585  ;;  %v1588_v49 = vpop.xlane.xlu1 %1587 }
 0x52d   : > { %5006 = vpow2.f32 %v1637_v25  ;;  %v1613_v1 = vsub.f32 %v5973_v11, %v1586_v34  ;;  %v1614_v58 = vsub.f32 %v5976_v21, %v1588_v49 }
 0x52e   : > { %v6021_v4 = vpop.eup %4998  ;;  %5008 = vpow2.f32 %v1639_v36 }
 0x52f   : > { %v1633_v38 = vmul.f32 1.442695, %v1613_v1  ;;  %1661 = vadd.xlane.f32.xlu1 %v6021_v4  ;;  %v1635_v18 = vmul.f32 1.442695, %v1614_v58 }
 0x530   : > { %v1598_v61 = vpop.xlane.xlu0 %1597  ;;  %v1600_v11 = vpop.xlane.xlu1 %1599 }
 0x531   : > { %5010 = vpow2.f32 %v1633_v38  ;;  %v1620_v55 = vsub.f32 %v5984_v39, %v1600_v11  ;;  %v1619_v10 = vsub.f32 %v5981_v46, %v1598_v61 }
 0x532   : > { %v6024_v52 = vpop.eup %5000  ;;  %5012 = vpow2.f32 %v1635_v18 }
 0x533   : > { %1657 = vadd.xlane.f32.xlu1 %v6024_v52  ;;  %v1647_v59 = vmul.f32 1.442695, %v1620_v55 }
 0x534   : > { %v1594_v37 = vpop.xlane.xlu0 %1593  ;;  %v1596_v22 = vpop.xlane.xlu1 %1595 }
 0x535   : > { %v1617_v53 = vsub.f32 %v5989_v13, %v1594_v37  ;;  %v1618_v19 = vsub.f32 %v5992_v9, %v1596_v22 }
 0x536   : > { %v6027_v57 = vpop.eup %5002 }
 0x537   : > { %1663 = vadd.xlane.f32.xlu1 %v6027_v57  ;;  %v6030_v28 = vpop.eup %5004  ;;  %v1641_v62 = vmul.f32 1.442695, %v1617_v53  ;;  %v1643_v24 = vmul.f32 1.442695, %v1618_v19 }
 0x538   : > { %v1606_v21 = vpop.xlane.xlu0 %1605  ;;  %v1742_v29 = vpop.permute.xlu1 %1741 }
 0x539   : > { %5014 = vpow2.f32 %v1641_v62 }
 0x53a   : > { %v6032_v20 = vpop.eup %5006  ;;  %5016 = vpow2.f32 %v1647_v59 }
 0x53b   : > { %1669 = vadd.xlane.f32.xlu0 %v6032_v20  ;;  %1659 = vadd.xlane.f32.xlu1 %v6030_v28  ;;  %v6036_v42 = vpop.eup %5008  ;;  %5018 = vpow2.f32 %v1643_v24 }
 0x53c   : > { %v1602_v0 = vpop.xlane.xlu0 %1601 }
 0x53d   : > { %v1621_v40 = vsub.f32 %v6001_v14, %v1602_v0 }
 0x53e   : > { %v6038_v3 = vpop.eup %5010 }
 0x53f   : > { %1665 = vadd.xlane.f32.xlu1 %v6038_v3  ;;  %1671 = vadd.xlane.f32.xlu0 %v6036_v42  ;;  %v6042_v32 = vpop.eup %5012  ;;  %v1649_v25 = vmul.f32 1.442695, %v1621_v40 }
 0x540   : > { %v1744_v47 = vpop.permute.xlu0 %1743 }
 0x541   : > { %4676 = vmatprep.subr.bf16.mxu0 %v1744_v47 }
 0x542   : > { %4677 = vmatpush3.bf16.msra.mxu0 %v1744_v47 }
 0x543   : > { %1667 = vadd.xlane.f32.xlu0 %v6042_v32  ;;  %4678 = vmatprep.subr.bf16.mxu0 %v1742_v29 }
 0x546   : > { %4679 = vmatpush3.bf16.msra.mxu0 %v1742_v29  ;;  %v6057_v49 = vpop.eup %5014 }
 0x547   : > { %v6060_v14 = vpop.eup %5016 }
 0x550   : > { %1737 = vrot.lane.b32.xlu1 %v5625_v17, %s5279_s19  ;;  %v1645_v17 = vmul.f32 1.442695, %v1619_v10 }
 0x552   : > { %5020 = vpow2.f32 %v1645_v17 }
 0x553   : > { %5022 = vpow2.f32 %v1649_v25 }
 0x559   : > { %1739 = vrot.lane.b32.xlu0 %v5615_v7, %s5279_s19  ;;  %v1623_v7 = vsub.f32 %v5997_v45, %v1606_v21  ;;  %v6062_v45 = vpop.eup %5018 }
 0x55b   : > { %v1653_v34 = vmul.f32 1.442695, %v1623_v7 }
 0x569   : > { %v1608_v30 = vpop.xlane.xlu1 %1607 }
 0x56a   : > { %v1624_v39 = vsub.f32 %v6009_v35, %v1608_v30  ;;  %v6066_v35 = vpop.eup %5020 }
 0x56c   : > { %v1655_v46 = vmul.f32 1.442695, %v1624_v39 }
 0x56d   : > { %v1604_v13 = vpop.xlane.xlu1 %1603 }
 0x56e   : > { %v1622_v9 = vsub.f32 %v6013_v16, %v1604_v13  ;;  %v6069_v16 = vpop.eup %5022 }
 0x570   : > { %v1651_v36 = vmul.f32 1.442695, %v1622_v9 }
 0x572   : > { %5024 = vpow2.f32 %v1651_v36 }
 0x573   : > { %5026 = vpow2.f32 %v1653_v34 }
 0x574   : > { %1673 = vadd.xlane.f32.xlu1 %v6057_v49  ;;  %5028 = vpow2.f32 %v1655_v46 }
 0x578   : > { %1679 = vadd.xlane.f32.xlu1 %v6060_v14  ;;  %1675 = vadd.xlane.f32.xlu0 %v6062_v45 }
 0x57c   : > { %1677 = vadd.xlane.f32.xlu0 %v6066_v35 }
 0x57f   : > { %v6071_v1 = vpop.eup %5024 }
 0x580   : > { %1681 = vadd.xlane.f32.xlu0 %v6069_v16  ;;  %1683 = vadd.xlane.f32.xlu1 %v6071_v1  ;;  %v6075_v58 = vpop.eup %5026 }
 0x581   : > { %v6077_v38 = vpop.eup %5028 }
 0x584   : > { %1685 = vadd.xlane.f32.xlu0 %v6075_v58  ;;  %1687 = vadd.xlane.f32.xlu1 %v6077_v38 }
 0x5b8   : > { %v1662_v61 = vpop.xlane.xlu1 %1661 }
 0x5bc   : > { %v1658_v18 = vpop.xlane.xlu1 %1657 }
 0x5c0   : > { %v1664_v37 = vpop.xlane.xlu1 %1663 }
 0x5c1   : > { %5030 = vrcp.f32 %v1664_v37 }
 0x5c2   : > { %5032 = vrcp.f32 %v1658_v18 }
 0x5c3   : > { %5034 = vrcp.f32 %v1662_v61 }
 0x5c4   : > { %v1670_v11 = vpop.xlane.xlu0 %1669  ;;  %v1660_v21 = vpop.xlane.xlu1 %1659 }
 0x5c5   : > { %5036 = vrcp.f32 %v1660_v21 }
 0x5c8   : > { %v1672_v22 = vpop.xlane.xlu0 %1671  ;;  %v1666_v0 = vpop.xlane.xlu1 %1665 }
 0x5c9   : > { %5038 = vrcp.f32 %v1672_v22 }
 0x5ca   : > { %5040 = vrcp.f32 %v1666_v0 }
 0x5cb   : > { %5042 = vrcp.f32 %v1670_v11 }
 0x5cc   : > { %v1668_v47 = vpop.xlane.xlu0 %1667  ;;  %v1738_v19 = vpop.permute.xlu1 %1737 }
 0x5cd   : > { %5044 = vrcp.f32 %v1668_v47 }
 0x5ce   : > { %v5031_v29 = vpop.eup %5030 }
 0x5cf   : > { %v5033_v55 = vpop.eup %5032  ;;  %v1708_v10 = vmul.f32 %v5031_v29, %v6027_v57 }
 0x5d0   : > { %v1740_v53 = vpop.permute.xlu0 %1739  ;;  %v5035_v62 = vpop.eup %5034  ;;  %v1705_v24 = vmul.f32 %v5033_v55, %v6024_v52 }
 0x5d1   : > { %4680 = vmatprep.subr.bf16.mxu0 %v1740_v53  ;;  %v1707_v30 = vmul.f32 %v5035_v62, %v6021_v4 }
 0x5d2   : > { %4681 = vmatpush3.bf16.msra.mxu0 %v1740_v53  ;;  %v5037_v59 = vpop.eup %5036 }
 0x5d3   : > { %4682 = vmatprep.subr.bf16.mxu0 %v1738_v19  ;;  %v1706_v40 = vmul.f32 %v5037_v59, %v6030_v28  ;;  %v1722_v25 = vpack.c.bf16 %v1708_v10, %v1707_v30 }
 0x5d5   : > { %v1721_v17 = vpack.c.bf16 %v1706_v40, %v1705_v24 }
 0x5d6   : > { %4683 = vmatpush3.bf16.msra.mxu0 %v1738_v19  ;;  %v5039_v7 = vpop.eup %5038 }
 0x5d7   : > { %v5041_v13 = vpop.eup %5040  ;;  %4684 = vmatprep.mubr.bf16.mxu0 %v1721_v17  ;;  %v1712_v57 = vmul.f32 %v5039_v7, %v6036_v42 }
 0x5d8   : > { %v5043_v39 = vpop.eup %5042  ;;  %v1709_v36 = vmul.f32 %v5041_v13, %v6038_v3  ;;  %v4852_v13 = vld [vmem:[%s7594_s4 + $0x8] sm:$0xff]  }
 0x5d9   : > { %4685 = vmatmul.mubr.bf16.vlgmr.msra.gmra.mxu0 %v1722_v25  ;;  %v1711_v28 = vmul.f32 %v5043_v39, %v6032_v20  ;;  %v4853_v39 = vld [vmem:[%s7594_s4] sm:$0xff]  }
 0x5da   : > { %v5045_v9 = vpop.eup %5044 }
 0x5db   : > { %v1710_v34 = vmul.f32 %v5045_v9, %v6042_v32  ;;  %v1724_v4 = vpack.c.bf16 %v1712_v57, %v1711_v28 }
 0x5dd   : > { %v1723_v52 = vpack.c.bf16 %v1710_v34, %v1709_v36 }
 0x5df   : > { %4688 = vmatprep.mubr.bf16.mxu0 %v1723_v52 }
 0x5e1   : > { %4689 = vmatmul.mubr.bf16.gmra.mxu0 %v1724_v4 }
 0x5fd   : > { %v1674_v46 = vpop.xlane.xlu1 %1673 }
 0x5fe   : > { %5046 = vrcp.f32 %v1674_v46 }
 0x601   : > { %v1676_v61 = vpop.xlane.xlu0 %1675  ;;  %v1680_v18 = vpop.xlane.xlu1 %1679 }
 0x602   : > { %5048 = vrcp.f32 %v1676_v61 }
 0x603   : > { %5050 = vrcp.f32 %v1680_v18 }
 0x605   : > { %v1678_v37 = vpop.xlane.xlu0 %1677 }
 0x606   : > { %5052 = vrcp.f32 %v1678_v37 }
 0x609   : > { %v1682_v11 = vpop.xlane.xlu0 %1681  ;;  %v1684_v3 = vpop.xlane.xlu1 %1683 }
 0x60a   : > { %5054 = vrcp.f32 %v1682_v11 }
 0x60b   : > { %5056 = vrcp.f32 %v1684_v3  ;;  %v5047_v32 = vpop.eup %5046 }
 0x60c   : > { %v1713_v22 = vmul.f32 %v5047_v32, %v6057_v49 }
 0x60d   : > { %v1686_v42 = vpop.xlane.xlu0 %1685  ;;  %v1688_v21 = vpop.xlane.xlu1 %1687 }
 0x60e   : > { %5058 = vrcp.f32 %v1686_v42 }
 0x60f   : > { %v5049_v20 = vpop.eup %5048  ;;  %5060 = vrcp.f32 %v1688_v21 }
 0x610   : > { %v1714_v0 = vmul.f32 %v5049_v20, %v6062_v45  ;;  %v5051_v47 = vpop.eup %5050 }
 0x611   : > { %v1716_v62 = vmul.f32 %v5051_v47, %v6060_v14  ;;  %v4846_v14 = vld [vmem:[%s7594_s4 + $0x38] sm:$0xff]  }
 0x612   : > { %v1725_v29 = vpack.c.bf16 %v1714_v0, %v1713_v22  ;;  %4700 = vmatprep.subr.bf16.mxu0 %v4846_v14 }
 0x613   : > { %v5053_v53 = vpop.eup %5052  ;;  %4701 = vmatpush3.bf16.msra.mxu0 %v4846_v14 }
 0x614   : > { %4692 = vmatprep.mubr.bf16.mxu0 %v1725_v29  ;;  %v1715_v55 = vmul.f32 %v5053_v53, %v6066_v35  ;;  %v4847_v35 = vld [vmem:[%s7594_s4 + $0x30] sm:$0xff]  }
 0x615   : > { %4702 = vmatprep.subr.bf16.mxu0 %v4847_v35 }
 0x616   : > { %v1726_v19 = vpack.c.bf16 %v1716_v62, %v1715_v55 }
 0x617   : > { %v5055_v59 = vpop.eup %5054  ;;  %4703 = vmatpush3.bf16.msra.mxu0 %v4847_v35 }
 0x618   : > { %v5057_v10 = vpop.eup %5056  ;;  %4693 = vmatmul.mubr.bf16.gmra.mxu0 %v1726_v19  ;;  %v1717_v24 = vmul.f32 %v5055_v59, %v6069_v16  ;;  %v4848_v16 = vld [vmem:[%s7594_s4 + $0x28] sm:$0xff]  }
 0x619   : > { %v1718_v40 = vmul.f32 %v5057_v10, %v6071_v1  ;;  %4704 = vmatprep.subr.bf16.mxu0 %v4848_v16  ;;  %v4849_v1 = vld [vmem:[%s7594_s4 + $0x20] sm:$0xff]  }
 0x61b   : > { %v5059_v30 = vpop.eup %5058  ;;  %v1727_v49 = vpack.c.bf16 %v1718_v40, %v1717_v24  ;;  %4705 = vmatpush3.bf16.msra.mxu0 %v4848_v16 }
 0x61c   : > { %v5061_v17 = vpop.eup %5060  ;;  %v1719_v45 = vmul.f32 %v5059_v30, %v6075_v58  ;;  %4706 = vmatprep.subr.bf16.mxu0 %v4849_v1  ;;  %v4850_v58 = vld [vmem:[%s7594_s4 + $0x18] sm:$0xff]  }
 0x61d   : > { %4696 = vmatprep.mubr.bf16.mxu0 %v1727_v49  ;;  %v1720_v7 = vmul.f32 %v5061_v17, %v6077_v38  ;;  %v4851_v38 = vld [vmem:[%s7594_s4 + $0x10] sm:$0xff]  }
 0x61f   : > { %v1728_v25 = vpack.c.bf16 %v1720_v7, %v1719_v45  ;;  %4707 = vmatpush3.bf16.msra.mxu0 %v4849_v1 }
 0x620   : > { %4708 = vmatprep.subr.bf16.mxu0 %v4850_v58 }
 0x621   : > { %4697 = vmatmul.mubr.bf16.gmra.mxu0 %v1728_v25 }
 0x623   : > { %4709 = vmatpush3.bf16.msra.mxu0 %v4850_v58 }
 0x624   : > { %4710 = vmatprep.subr.bf16.mxu0 %v4851_v38 }
 0x627   : > { %4711 = vmatpush3.bf16.msra.mxu0 %v4851_v38 }
 0x628   : > { %4712 = vmatprep.subr.bf16.mxu0 %v4852_v13 }
 0x62b   : > { %4713 = vmatpush3.bf16.msra.mxu0 %v4852_v13 }
 0x62c   : > { %4714 = vmatprep.subr.bf16.mxu0 %v4853_v39 }
 0x62f   : > { %4715 = vmatpush3.bf16.msra.mxu0 %v4853_v39 }
 0x699   : > { %v4686_v9 = vpop.f32.mrf.mxu0 }
 0x69b   : > { %v1795_v36 = vpop.f32.mrf.mxu0 }
 0x69d   : > { %v4687_v34 = vpop.f32.mrf.mxu0 }
 0x69e   : > { %v4779_v57 = vpack.i.bf16 %v4687_v34, %v4686_v9 }
 0x69f   : > { %v1798_v52 = vpop.f32.mrf.mxu0 }
 0x6a0   : > { %v4774_v28 = vpack.i.bf16 %v1798_v52, %v1795_v36  ;;  %4780 = vrot.lane.b32.xlu1 %v4779_v57, %s5279_s19 }
 0x6a1   : > { %v4690_v4 = vpop.f32.mrf.mxu0 }
 0x6a2   : > { %4775 = vrot.lane.b32.xlu0 %v4774_v28, %s5279_s19 }
 0x6a3   : > { %v1811_v46 = vpop.f32.mrf.mxu0 }
 0x6a5   : > { %v4691_v61 = vpop.f32.mrf.mxu0 }
 0x6a6   : > { %v4789_v11 = vpack.i.bf16 %v4691_v61, %v4690_v4 }
 0x6a7   : > { %v1814_v18 = vpop.f32.mrf.mxu0 }
 0x6a8   : > { %v4784_v37 = vpack.i.bf16 %v1814_v18, %v1811_v46 }
 0x6aa   : > { %4785 = vrot.lane.b32.xlu1 %v4784_v37, %s5279_s19 }
 0x6ae   : > { %4790 = vrot.lane.b32.xlu1 %v4789_v11, %s5279_s19 }
 0x6d8   : > { %v4694_v3 = vpop.f32.mrf.mxu0 }
 0x6da   : > { %v1827_v32 = vpop.f32.mrf.mxu0 }
 0x6dc   : > { %v4695_v42 = vpop.f32.mrf.mxu0 }
 0x6dd   : > { %v4799_v21 = vpack.i.bf16 %v4695_v42, %v4694_v3 }
 0x6de   : > { %v1830_v20 = vpop.f32.mrf.mxu0 }
 0x6df   : > { %v4794_v22 = vpack.i.bf16 %v1830_v20, %v1827_v32  ;;  %4800 = vrot.lane.b32.xlu1 %v4799_v21, %s5279_s19 }
 0x6e1   : > { %v4698_v0 = vpop.f32.mrf.mxu0  ;;  %4795 = vrot.lane.b32.xlu0 %v4794_v22, %s5279_s19 }
 0x6e3   : > { %v1843_v47 = vpop.f32.mrf.mxu0 }
 0x6e5   : > { %v4699_v29 = vpop.f32.mrf.mxu0 }
 0x6e6   : > { %v4809_v53 = vpack.i.bf16 %v4699_v29, %v4698_v0 }
 0x6e7   : > { %v1846_v55 = vpop.f32.mrf.mxu0 }
 0x6e8   : > { %v4804_v62 = vpack.i.bf16 %v1846_v55, %v1843_v47  ;;  %4810 = vrot.lane.b32.xlu1 %v4809_v53, %s5279_s19  ;;  %v5254_v47 = vld [vmem:[%s5390_s16] sm:$0xff] }
 0x6ea   : > { %4805 = vrot.lane.b32.xlu0 %v4804_v62, %s5279_s19 }
 0x712   : > { %v4781_v19 = vpop.permute.xlu1 %4780 }
 0x713   : > { %v4783_v59 = vunpack.i.h.bf16 %v4781_v19  ;;  %v4782_v10 = vunpack.i.l.bf16 %v4781_v19  ;;  %v5255_v19 = vld [vmem:[%s5390_s16 + $0x8] sm:$0xff] }
 0x714   : > { %v4776_v24 = vpop.permute.xlu0 %4775 }
 0x715   : > { %v4778_v40 = vunpack.i.h.bf16 %v4776_v24  ;;  %v4777_v30 = vunpack.i.l.bf16 %v4776_v24  ;;  %v1925_v49 = vsel %vm911_vm0, %v5929_v31, %v4783_v59  ;;  %v1924_v17 = vsel %vm911_vm0, %v5925_v15, %v4782_v10  ;;  %v5256_v10 = vld [vmem:[%s5390_s16 + $0x10] sm:$0xff] }
 0x716   : > { %v1939_v14 = vpack.c.bf16 %v1925_v49, %v1924_v17 }
 0x717   : > { %v1922_v45 = vsel %vm911_vm0, %v5927_v27, %v4777_v30  ;;  %v1923_v7 = vsel %vm911_vm0, %v5931_v41, %v4778_v40  ;;  %v5257_v30 = vld [vmem:[%s5390_s16 + $0x18] sm:$0xff] }
 0x718   : > { %v1938_v25 = vpack.c.bf16 %v1923_v7, %v1922_v45 }
 0x71a   : > { %4716 = vmatprep.mubr.bf16.mxu0 %v1938_v25  ;;  %v5258_v25 = vld [vmem:[%s5390_s16 + $0x20] sm:$0xff] }
 0x71b   : > { %4717 = vmatmul.mubr.bf16.vlgmr.msra.gmra.mxu0 %v1939_v14 }
 0x71c   : > { %v4786_v35 = vpop.permute.xlu1 %4785 }
 0x71d   : > { %v4788_v16 = vunpack.i.h.bf16 %v4786_v35  ;;  %v4787_v1 = vunpack.i.l.bf16 %v4786_v35 }
 0x71f   : > { %v1926_v58 = vsel %vm911_vm0, %v5935_v26, %v4787_v1  ;;  %v1927_v31 = vsel %vm911_vm0, %v5939_v56, %v4788_v16 }
 0x720   : > { %v4791_v15 = vpop.permute.xlu1 %4790  ;;  %v1940_v38 = vpack.c.bf16 %v1927_v31, %v1926_v58  ;;  %v5259_v31 = vld [vmem:[%s5390_s16 + $0x28] sm:$0xff] }
 0x721   : > { %v4793_v13 = vunpack.i.h.bf16 %v4791_v15  ;;  %v4792_v27 = vunpack.i.l.bf16 %v4791_v15 }
 0x722   : > { %4720 = vmatprep.mubr.bf16.mxu0 %v1940_v38  ;;  %v5260_v38 = vld [vmem:[%s5390_s16 + $0x30] sm:$0xff] }
 0x723   : > { %v1928_v41 = vsel %vm911_vm0, %v5933_v48, %v4792_v27  ;;  %v1929_v39 = vsel %vm911_vm0, %v5937_v8, %v4793_v13  ;;  %v5261_v27 = vld [vmem:[%s5390_s16 + $0x38] sm:$0xff] }
 0x724   : > { %v1941_v9 = vpack.c.bf16 %v1929_v39, %v1928_v41 }
 0x726   : > { %4721 = vmatmul.mubr.bf16.gmra.mxu0 %v1941_v9 }
 0x751   : > { %v4801_v36 = vpop.permute.xlu1 %4800 }
 0x752   : > { %v4803_v34 = vunpack.i.h.bf16 %v4801_v36  ;;  %v4802_v57 = vunpack.i.l.bf16 %v4801_v36 }
 0x753   : > { %v4796_v26 = vpop.permute.xlu0 %4795 }
 0x754   : > { %v4798_v52 = vunpack.i.h.bf16 %v4796_v26  ;;  %v4797_v28 = vunpack.i.l.bf16 %v4796_v26  ;;  %v1932_v56 = vsel %vm911_vm0, %v5941_v44, %v4802_v57  ;;  %v1933_v4 = vsel %vm911_vm0, %v5945_v63, %v4803_v34  ;;  %v5262_v26 = vld [vmem:[%s5390_s16 + $0x40] sm:$0xff] }
 0x755   : > { %v1943_v61 = vpack.c.bf16 %v1933_v4, %v1932_v56  ;;  %v5263_v4 = vld [vmem:[%s5390_s16 + $0x50] sm:$0xff] }
 0x756   : > { %v1930_v48 = vsel %vm911_vm0, %v5943_v23, %v4797_v28  ;;  %v1931_v8 = vsel %vm911_vm0, %v5947_v54, %v4798_v52 }
 0x757   : > { %v1942_v46 = vpack.c.bf16 %v1931_v8, %v1930_v48 }
 0x759   : > { %4724 = vmatprep.mubr.bf16.mxu0 %v1942_v46  ;;  %v5264_v46 = vld [vmem:[%s5390_s16 + $0x48] sm:$0xff] }
 0x75a   : > { %v4811_v18 = vpop.permute.xlu1 %4810  ;;  %4725 = vmatmul.mubr.bf16.gmra.mxu0 %v1943_v61 }
 0x75b   : > { %v4813_v37 = vunpack.i.h.bf16 %v4811_v18  ;;  %v4812_v11 = vunpack.i.l.bf16 %v4811_v18 }
 0x75c   : > { %v4806_v3 = vpop.permute.xlu0 %4805 }
 0x75d   : > { %v4808_v32 = vunpack.i.h.bf16 %v4806_v3  ;;  %v4807_v42 = vunpack.i.l.bf16 %v4806_v3  ;;  %v1936_v44 = vsel %vm911_vm0, %v5949_v5, %v4812_v11  ;;  %v1937_v23 = vsel %vm911_vm0, %v5953_v12, %v4813_v37  ;;  %v6165_v5 = vld [vmem:[%s7595_s5] ss:$0 sm:$0xff]  ;;  %v5265_v3 = vld [vmem:[%s5390_s16 + $0x58] sm:$0xff] }
 0x75e   : > { %v1945_v20 = vpack.c.bf16 %v1937_v23, %v1936_v44  ;;  %v5266_v23 = vld [vmem:[%s5390_s16 + $0x60] sm:$0xff] }
 0x75f   : > { %v1934_v63 = vsel %vm911_vm0, %v5951_v43, %v4807_v42  ;;  %v1935_v54 = vsel %vm911_vm0, %v5955_v60, %v4808_v32 }
 0x760   : > { %v1944_v21 = vpack.c.bf16 %v1935_v54, %v1934_v63 }
 0x762   : > { %4728 = vmatprep.mubr.bf16.mxu0 %v1944_v21 }
 0x763   : > { %4729 = vmatmul.mubr.bf16.gmra.mxu0 %v1945_v20  ;;  %v5267_v20 = vld [vmem:[%s5390_s16 + $0x70] sm:$0xff] }
 0x764   : > { %2720 = vmatprep.mubr.bf16.mxu0 %v5278_v2 }
 0x7db   : > { %v4718_v22 = vpop.f32.mrf.mxu0 }
 0x7dc   : > { %v2060_v60 = vadd.f32 %v4718_v22, %v6165_v5 }
 0x7dd   : > { %v2051_v12 = vpop.f32.mrf.mxu0 }
 0x7de   : > { %v2052_v43 = vadd.f32 %v6165_v5, %v2051_v12  ;;  %v6179_v24 = vadd.f32 %v5256_v10, %v2060_v60  ;;  %v5269_v60 = vld [vmem:[%s5390_s16 + $0x78] sm:$0xff] }
 0x7df   : > { %v4719_v0 = vpop.f32.mrf.mxu0 }
 0x7e0   : > { %v6170_v29 = vadd.f32 %v5254_v47, %v2052_v43  ;;  %v2063_v62 = vadd.f32 %v4719_v0, %v6165_v5  ;;  %v5268_v43 = vld [vmem:[%s5390_s16 + $0x68] sm:$0xff] }
 0x7e1   : > { %v2054_v53 = vpop.f32.mrf.mxu0 }
 0x7e2   : > { %v2055_v55 = vadd.f32 %v6165_v5, %v2054_v53  ;;  %2132 = vadd.xlane.f32.xlu0 %v6170_v29  ;;  %v6184_v49 = vadd.f32 %v5257_v30, %v2063_v62  ;;  %v4854_v53 = vld [vmem:[%s7598_s8 + $0xe0] ss:$16 sps:$4 sm:$0xff]   ;;  %v4859_v62 = vld [vmem:[%s7598_s8 + $0xec] ss:$16 sps:$4 sm:$0xff]  }
 0x7e3   : > { %2688 = vmatprep.subr.bf16.mxu0 %v4859_v62  ;;  %v4884_v62 = vld [vmem:[%s7598_s8 + $0x40] ss:$16 sps:$4 sm:$0xff]  }
 0x7e4   : > { %v6176_v59 = vadd.f32 %v5255_v19, %v2055_v55  ;;  %v4857_v55 = vld [vmem:[%s7598_s8 + $0xe8] ss:$16 sps:$4 sm:$0xff]  }
 0x7e5   : > { %2689 = vmatpush1.bf16.msra.mxu0 %v4857_v55  ;;  %v4889_v55 = vld [vmem:[%s7598_s8 + $0x4c] ss:$16 sps:$4 sm:$0xff]  }
 0x7e6   : > { %v4722_v40 = vpop.f32.mrf.mxu0  ;;  %2134 = vadd.xlane.f32.xlu1 %v6176_v59  ;;  %2136 = vadd.xlane.f32.xlu0 %v6179_v24 }
 0x7e7   : > { %v2076_v35 = vadd.f32 %v4722_v40, %v6165_v5 }
 0x7e8   : > { %v2067_v17 = vpop.f32.mrf.mxu0 }
 0x7e9   : > { %v2068_v45 = vadd.f32 %v6165_v5, %v2067_v17  ;;  %v6199_v13 = vadd.f32 %v5260_v38, %v2076_v35 }
 0x7ea   : > { %v4723_v7 = vpop.f32.mrf.mxu0  ;;  %2138 = vadd.xlane.f32.xlu0 %v6184_v49 }
 0x7eb   : > { %v6189_v14 = vadd.f32 %v5258_v25, %v2068_v45  ;;  %v2079_v58 = vadd.f32 %v4723_v7, %v6165_v5 }
 0x7ec   : > { %v2070_v16 = vpop.f32.mrf.mxu0 }
 0x7ed   : > { %v2071_v1 = vadd.f32 %v6165_v5, %v2070_v16  ;;  %v6204_v41 = vadd.f32 %v5261_v27, %v2079_v58 }
 0x7ee   : > { %2140 = vadd.xlane.f32.xlu0 %v6189_v14 }
 0x7ef   : > { %v6196_v15 = vadd.f32 %v5259_v31, %v2071_v1 }
 0x7f1   : > { %2142 = vadd.xlane.f32.xlu1 %v6196_v15 }
 0x7f2   : > { %2144 = vadd.xlane.f32.xlu0 %v6199_v13 }
 0x7f5   : > { %2146 = vadd.xlane.f32.xlu1 %v6204_v41 }
 0x81a   : > { %v4726_v39 = vpop.f32.mrf.mxu0 }
 0x81b   : > { %v2092_v57 = vadd.f32 %v4726_v39, %v6165_v5 }
 0x81c   : > { %v2083_v9 = vpop.f32.mrf.mxu0 }
 0x81d   : > { %v2084_v36 = vadd.f32 %v6165_v5, %v2083_v9  ;;  %v6215_v48 = vadd.f32 %v5263_v4, %v2092_v57 }
 0x81e   : > { %v4727_v34 = vpop.f32.mrf.mxu0 }
 0x81f   : > { %v6210_v52 = vadd.f32 %v5262_v26, %v2084_v36  ;;  %v2095_v8 = vadd.f32 %v4727_v34, %v6165_v5 }
 0x820   : > { %v2086_v28 = vpop.f32.mrf.mxu0 }
 0x821   : > { %v2087_v56 = vadd.f32 %v6165_v5, %v2086_v28  ;;  %2148 = vadd.xlane.f32.xlu0 %v6210_v52  ;;  %v6225_v32 = vadd.f32 %v5265_v3, %v2095_v8  ;;  %v4862_v28 = vld [vmem:[%s7598_s8 + $0xc4] ss:$16 sps:$4 sm:$0xff]   ;;  %v4860_v8 = vld [vmem:[%s7598_s8 + $0xc0] ss:$16 sps:$4 sm:$0xff]   ;;  %v4871_v3 = vld [vmem:[%s7598_s8 + $0xac] ss:$16 sps:$4 sm:$0xff]  }
 0x823   : > { %v6219_v61 = vadd.f32 %v5264_v46, %v2087_v56  ;;  %v4730_v18 = vpop.f32.mrf.mxu0 }
 0x824   : > { %v2108_v44 = vadd.f32 %v4730_v18, %v6165_v5 }
 0x825   : > { %v2099_v37 = vpop.f32.mrf.mxu0  ;;  %2150 = vadd.xlane.f32.xlu1 %v6219_v61  ;;  %2152 = vadd.xlane.f32.xlu0 %v6215_v48 }
 0x826   : > { %v2100_v11 = vadd.f32 %v6165_v5, %v2099_v37  ;;  %v6235_v22 = vadd.f32 %v5267_v20, %v2108_v44  ;;  %v4869_v44 = vld [vmem:[%s7598_s8 + $0xa8] ss:$16 sps:$4 sm:$0xff]  }
 0x827   : > { %v4731_v42 = vpop.f32.mrf.mxu0  ;;  %v4875_v20 = vld [vmem:[%s7598_s8 + $0x88] ss:$16 sps:$4 sm:$0xff]  }
 0x828   : > { %v6229_v63 = vadd.f32 %v5266_v23, %v2100_v11  ;;  %v2111_v12 = vadd.f32 %v4731_v42, %v6165_v5  ;;  %v4868_v11 = vld [vmem:[%s7598_s8 + $0xa4] ss:$16 sps:$4 sm:$0xff]   ;;  %v4866_v42 = vld [vmem:[%s7598_s8 + $0xa0] ss:$16 sps:$4 sm:$0xff]  }
 0x829   : > { %v2102_v54 = vpop.f32.mrf.mxu0  ;;  %2154 = vadd.xlane.f32.xlu1 %v6225_v32  ;;  %v4874_v23 = vld [vmem:[%s7598_s8 + $0x84] ss:$16 sps:$4 sm:$0xff]  }
 0x82a   : > { %v2103_v21 = vadd.f32 %v6165_v5, %v2102_v54  ;;  %2156 = vadd.xlane.f32.xlu0 %v6229_v63  ;;  %v6244_v47 = vadd.f32 %v5269_v60, %v2111_v12  ;;  %v4856_v5 = vld [vmem:[%s7598_s8 + $0xe4] ss:$16 sps:$4 sm:$0xff]   ;;  %v4877_v54 = vld [vmem:[%s7598_s8 + $0x8c] ss:$16 sps:$4 sm:$0xff]   ;;  %v4878_v60 = vld [vmem:[%s7598_s8 + $0x60] ss:$16 sps:$4 sm:$0xff]  }
 0x82b   : > { %2575 = vmatprep.subr.bf16.mxu1 %v4856_v5  ;;  %v4880_v12 = vld [vmem:[%s7598_s8 + $0x64] ss:$16 sps:$4 sm:$0xff]  }
 0x82c   : > { %v6239_v0 = vadd.f32 %v5268_v43, %v2103_v21  ;;  %2576 = vmatpush1.bf16.msra.mxu1 %v4854_v53  ;;  %v4872_v21 = vld [vmem:[%s7598_s8 + $0x80] ss:$16 sps:$4 sm:$0xff]   ;;  %v4883_v43 = vld [vmem:[%s7598_s8 + $0x6c] ss:$16 sps:$4 sm:$0xff]   ;;  %v4881_v53 = vld [vmem:[%s7598_s8 + $0x68] ss:$16 sps:$4 sm:$0xff]  }
 0x82d   : > { %2577 = vmatprep.subr.bf16.mxu1 %v4862_v28  ;;  %v4886_v5 = vld [vmem:[%s7598_s8 + $0x44] ss:$16 sps:$4 sm:$0xff]  }
 0x82e   : > { %2158 = vadd.xlane.f32.xlu1 %v6239_v0  ;;  %2160 = vadd.xlane.f32.xlu0 %v6235_v22 }
 0x830   : > { %2578 = vmatpush1.bf16.msra.mxu1 %v4860_v8 }
 0x831   : > { %2579 = vmatprep.subr.bf16.mxu1 %v4868_v11 }
 0x832   : > { %2162 = vadd.xlane.f32.xlu1 %v6244_v47 }
 0x834   : > { %2580 = vmatpush1.bf16.msra.mxu1 %v4866_v42 }
 0x835   : > { %2581 = vmatprep.subr.bf16.mxu1 %v4874_v23 }
 0x838   : > { %2582 = vmatpush1.bf16.msra.mxu1 %v4872_v21 }
 0x839   : > { %2583 = vmatprep.subr.bf16.mxu1 %v4880_v12 }
 0x83c   : > { %2584 = vmatpush1.bf16.msra.mxu1 %v4878_v60 }
 0x83d   : > { %2585 = vmatprep.subr.bf16.mxu1 %v4886_v5 }
 0x840   : > { %2586 = vmatpush1.bf16.msra.mxu1 %v4884_v62 }
 0x86b   : > { %v2133_v19 = vpop.xlane.xlu0 %2132 }
 0x86c   : > { %v2165_v10 = vmul.f32 0.0078125, %v2133_v19  ;;  %v4887_v19 = vld [vmem:[%s7598_s8 + $0x48] ss:$16 sps:$4 sm:$0xff]  }
 0x86e   : > { %v6260_v40 = vsub.f32 %v6170_v29, %v2165_v10  ;;  %v4892_v10 = vld [vmem:[%s7598_s8 + $0x24] ss:$16 sps:$4 sm:$0xff]  }
 0x86f   : > { %v2135_v30 = vpop.xlane.xlu1 %2134  ;;  %v2137_v17 = vpop.xlane.xlu0 %2136  ;;  %2587 = vmatprep.subr.bf16.mxu1 %v4892_v10 }
 0x870   : > { %v2166_v45 = vmul.f32 0.0078125, %v2135_v30  ;;  %v2167_v7 = vmul.f32 0.0078125, %v2137_v17  ;;  %v2197_v25 = vmul.f32 %v6260_v40, %v6260_v40  ;;  %v4895_v30 = vld [vmem:[%s7598_s8 + $0x2c] ss:$16 sps:$4 sm:$0xff]   ;;  %v4890_v17 = vld [vmem:[%s7598_s8 + $0x20] ss:$16 sps:$4 sm:$0xff]  }
 0x871   : > { %2588 = vmatpush1.bf16.msra.mxu1 %v4890_v17 }
 0x872   : > { %v6265_v35 = vsub.f32 %v6176_v59, %v2166_v45  ;;  %v6268_v16 = vsub.f32 %v6179_v24, %v2167_v7  ;;  %2213 = vadd.xlane.f32.xlu0 %v2197_v25  ;;  %v4893_v45 = vld [vmem:[%s7598_s8 + $0x28] ss:$16 sps:$4 sm:$0xff]   ;;  %v4898_v7 = vld [vmem:[%s7598_s8 + $0x4] ss:$16 sps:$4 sm:$0xff]   ;;  %v4896_v25 = vld [vmem:[%s7598_s8] ss:$16 sps:$4 sm:$0xff]  }
 0x873   : > { %v2139_v1 = vpop.xlane.xlu0 %2138  ;;  %2589 = vmatprep.subr.bf16.mxu1 %v4898_v7 }
 0x874   : > { %v2168_v58 = vmul.f32 0.0078125, %v2139_v1  ;;  %v2198_v29 = vmul.f32 %v6265_v35, %v6265_v35  ;;  %v2199_v31 = vmul.f32 %v6268_v16, %v6268_v16  ;;  %v4899_v1 = vld [vmem:[%s7598_s8 + $0x8] ss:$16 sps:$4 sm:$0xff]  }
 0x875   : > { %2590 = vmatpush1.bf16.msra.mxu1 %v4896_v25 }
 0x876   : > { %v6275_v38 = vsub.f32 %v6184_v49, %v2168_v58  ;;  %2215 = vadd.xlane.f32.xlu1 %v2198_v29  ;;  %2217 = vadd.xlane.f32.xlu0 %v2199_v31  ;;  %v4901_v58 = vld [vmem:[%s7598_s8 + $0xc] ss:$16 sps:$4 sm:$0xff]  }
 0x877   : > { %v2141_v27 = vpop.xlane.xlu0 %2140 }
 0x878   : > { %v2169_v59 = vmul.f32 0.0078125, %v2141_v27  ;;  %v2200_v24 = vmul.f32 %v6275_v38, %v6275_v38 }
 0x87a   : > { %v6280_v39 = vsub.f32 %v6189_v14, %v2169_v59  ;;  %v2143_v9 = vpop.xlane.xlu1 %2142  ;;  %2219 = vadd.xlane.f32.xlu1 %v2200_v24  ;;  %v4865_v14 = vld [vmem:[%s7598_s8 + $0xcc] ss:$16 sps:$4 sm:$0xff]  }
 0x87b   : > { %v2170_v36 = vmul.f32 0.0078125, %v2143_v9  ;;  %v2145_v34 = vpop.xlane.xlu0 %2144  ;;  %2690 = vmatprep.subr.bf16.mxu0 %v4865_v14 }
 0x87c   : > { %v2171_v57 = vmul.f32 0.0078125, %v2145_v34  ;;  %v2201_v26 = vmul.f32 %v6280_v39, %v6280_v39 }
 0x87d   : > { %v6285_v49 = vsub.f32 %v6196_v15, %v2170_v36  ;;  %v4863_v15 = vld [vmem:[%s7598_s8 + $0xc8] ss:$16 sps:$4 sm:$0xff]  }
 0x87e   : > { %v6294_v56 = vsub.f32 %v6199_v13, %v2171_v57  ;;  %v2147_v4 = vpop.xlane.xlu1 %2146  ;;  %2221 = vadd.xlane.f32.xlu0 %v2201_v26  ;;  %2691 = vmatpush1.bf16.msra.mxu0 %v4863_v15 }
 0x87f   : > { %v2172_v46 = vmul.f32 0.0078125, %v2147_v4  ;;  %v2202_v18 = vmul.f32 %v6285_v49, %v6285_v49  ;;  %2692 = vmatprep.subr.bf16.mxu0 %v4871_v3 }
 0x880   : > { %v2203_v13 = vmul.f32 %v6294_v56, %v6294_v56 }
 0x881   : > { %v6307_v37 = vsub.f32 %v6204_v41, %v2172_v46  ;;  %2223 = vadd.xlane.f32.xlu1 %v2202_v18 }
 0x882   : > { %2225 = vadd.xlane.f32.xlu0 %v2203_v13  ;;  %2693 = vmatpush1.bf16.msra.mxu0 %v4869_v44 }
 0x883   : > { %v2204_v41 = vmul.f32 %v6307_v37, %v6307_v37  ;;  %2694 = vmatprep.subr.bf16.mxu0 %v4877_v54 }
 0x885   : > { %2227 = vadd.xlane.f32.xlu1 %v2204_v41 }
 0x886   : > { %2695 = vmatpush1.bf16.msra.mxu0 %v4875_v20 }
 0x887   : > { %2696 = vmatprep.subr.bf16.mxu0 %v4883_v43 }
 0x88a   : > { %2697 = vmatpush1.bf16.msra.mxu0 %v4881_v53 }
 0x88b   : > { %2698 = vmatprep.subr.bf16.mxu0 %v4889_v55 }
 0x88e   : > { %2699 = vmatpush1.bf16.msra.mxu0 %v4887_v19 }
 0x88f   : > { %2700 = vmatprep.subr.bf16.mxu0 %v4895_v30 }
 0x892   : > { %2701 = vmatpush1.bf16.msra.mxu0 %v4893_v45 }
 0x893   : > { %2702 = vmatprep.subr.bf16.mxu0 %v4901_v58 }
 0x896   : > { %2703 = vmatpush1.bf16.msra.mxu0 %v4899_v1 }
 0x8aa   : > { %v2149_v29 = vpop.xlane.xlu0 %2148 }
 0x8ab   : > { %v2173_v31 = vmul.f32 0.0078125, %v2149_v29 }
 0x8ad   : > { %v6384_v27 = vsub.f32 %v6210_v52, %v2173_v31 }
 0x8ae   : > { %v2151_v59 = vpop.xlane.xlu1 %2150  ;;  %v2153_v24 = vpop.xlane.xlu0 %2152 }
 0x8af   : > { %v2174_v9 = vmul.f32 0.0078125, %v2151_v59  ;;  %v2175_v36 = vmul.f32 0.0078125, %v2153_v24  ;;  %v2205_v34 = vmul.f32 %v6384_v27, %v6384_v27 }
 0x8b1   : > { %v6389_v57 = vsub.f32 %v6219_v61, %v2174_v9  ;;  %v6392_v26 = vsub.f32 %v6215_v48, %v2175_v36  ;;  %2229 = vadd.xlane.f32.xlu0 %v2205_v34  ;;  %v6427_v36 = vld [vmem:[%s7596_s6] ss:$0 sm:$0xff] }
 0x8b2   : > { %v2155_v28 = vpop.xlane.xlu1 %2154 }
 0x8b3   : > { %v2176_v14 = vmul.f32 0.0078125, %v2155_v28  ;;  %v2157_v4 = vpop.xlane.xlu0 %2156  ;;  %v2206_v52 = vmul.f32 %v6389_v57, %v6389_v57  ;;  %v2207_v8 = vmul.f32 %v6392_v26, %v6392_v26 }
 0x8b4   : > { %v2177_v15 = vmul.f32 0.0078125, %v2157_v4 }
 0x8b5   : > { %v6399_v46 = vsub.f32 %v6225_v32, %v2176_v14  ;;  %2231 = vadd.xlane.f32.xlu1 %v2206_v52  ;;  %2233 = vadd.xlane.f32.xlu0 %v2207_v8 }
 0x8b6   : > { %v6402_v61 = vsub.f32 %v6229_v63, %v2177_v15 }
 0x8b7   : > { %v2159_v48 = vpop.xlane.xlu1 %2158  ;;  %v2161_v18 = vpop.xlane.xlu0 %2160  ;;  %v2208_v13 = vmul.f32 %v6399_v46, %v6399_v46 }
 0x8b8   : > { %v2178_v11 = vmul.f32 0.0078125, %v2159_v48  ;;  %v2179_v3 = vmul.f32 0.0078125, %v2161_v18  ;;  %v2209_v42 = vmul.f32 %v6402_v61, %v6402_v61 }
 0x8b9   : > { %2235 = vadd.xlane.f32.xlu1 %v2208_v13 }
 0x8ba   : > { %v6409_v44 = vsub.f32 %v6239_v0, %v2178_v11  ;;  %v6412_v32 = vsub.f32 %v6235_v22, %v2179_v3  ;;  %2237 = vadd.xlane.f32.xlu0 %v2209_v42 }
 0x8bb   : > { %v2163_v63 = vpop.xlane.xlu1 %2162 }
 0x8bc   : > { %v2180_v41 = vmul.f32 0.0078125, %v2163_v63  ;;  %v2210_v23 = vmul.f32 %v6409_v44, %v6409_v44  ;;  %v2211_v54 = vmul.f32 %v6412_v32, %v6412_v32 }
 0x8be   : > { %v6419_v21 = vsub.f32 %v6244_v47, %v2180_v41  ;;  %2239 = vadd.xlane.f32.xlu1 %v2210_v23  ;;  %2241 = vadd.xlane.f32.xlu0 %v2211_v54 }
 0x8c0   : > { %v2212_v0 = vmul.f32 %v6419_v21, %v6419_v21 }
 0x8c2   : > { %2243 = vadd.xlane.f32.xlu1 %v2212_v0 }
 0x8fb   : > { %v2214_v22 = vpop.xlane.xlu0 %2213 }
 0x8fc   : > { %v2245_v20 = vmul.f32 0.0078125, %v2214_v22 }
 0x8fe   : > { %v2261_v12 = vadd.f32 1e-12, %v2245_v20 }
 0x8ff   : > { %v2216_v43 = vpop.xlane.xlu1 %2215  ;;  %v2218_v60 = vpop.xlane.xlu0 %2217 }
 0x900   : > { %5062 = vrsqrt.f32 %v2261_v12  ;;  %v2246_v53 = vmul.f32 0.0078125, %v2216_v43  ;;  %v2247_v5 = vmul.f32 0.0078125, %v2218_v60 }
 0x902   : > { %v2262_v55 = vadd.f32 1e-12, %v2246_v53  ;;  %v2263_v62 = vadd.f32 1e-12, %v2247_v5 }
 0x903   : > { %v2220_v19 = vpop.xlane.xlu1 %2219 }
 0x904   : > { %5064 = vrsqrt.f32 %v2262_v55  ;;  %v2248_v47 = vmul.f32 0.0078125, %v2220_v19 }
 0x905   : > { %5066 = vrsqrt.f32 %v2263_v62 }
 0x906   : > { %v2264_v10 = vadd.f32 1e-12, %v2248_v47 }
 0x907   : > { %v2222_v30 = vpop.xlane.xlu0 %2221 }
 0x908   : > { %5068 = vrsqrt.f32 %v2264_v10  ;;  %v2249_v17 = vmul.f32 0.0078125, %v2222_v30 }
 0x90a   : > { %v2265_v45 = vadd.f32 1e-12, %v2249_v17  ;;  %v2224_v7 = vpop.xlane.xlu1 %2223 }
 0x90b   : > { %v2250_v25 = vmul.f32 0.0078125, %v2224_v7  ;;  %v2226_v1 = vpop.xlane.xlu0 %2225 }
 0x90c   : > { %v2251_v31 = vmul.f32 0.0078125, %v2226_v1  ;;  %5070 = vrsqrt.f32 %v2265_v45 }
 0x90d   : > { %v5063_v58 = vpop.eup %5062  ;;  %v2266_v29 = vadd.f32 1e-12, %v2250_v25 }
 0x90e   : > { %v2293_v59 = vmul.f32 %v5063_v58, %v6260_v40  ;;  %v2228_v24 = vpop.xlane.xlu1 %2227  ;;  %v2267_v28 = vadd.f32 1e-12, %v2251_v31  ;;  %v6434_v40 = vld [vmem:[%s7597_s7] ss:$0 sm:$0xff] }
 0x90f   : > { %5072 = vrsqrt.f32 %v2266_v29  ;;  %v2252_v9 = vmul.f32 0.0078125, %v2228_v24 }
 0x910   : > { %v2315_v52 = vmul.f32 %v6427_v36, %v2293_v59 }
 0x911   : > { %v5065_v34 = vpop.eup %5064  ;;  %v2268_v14 = vadd.f32 1e-12, %v2252_v9 }
 0x912   : > { %v2294_v4 = vmul.f32 %v5065_v34, %v6265_v35  ;;  %v5067_v8 = vpop.eup %5066  ;;  %v6438_v18 = vadd.f32 %v6434_v40, %v2315_v52 }
 0x913   : > { %5074 = vrsqrt.f32 %v2268_v14  ;;  %v2295_v35 = vmul.f32 %v5067_v8, %v6268_v16 }
 0x914   : > { %v2316_v15 = vmul.f32 %v6427_v36, %v2294_v4  ;;  %5076 = vrsqrt.f32 %v2267_v28  ;;  %7648 = vst [vmem:[#allocation2_spill] sm:$0xff] %v6438_v18 }
 0x915   : > { %v5069_v48 = vpop.eup %5068  ;;  %v2317_v63 = vmul.f32 %v6427_v36, %v2295_v35 }
 0x916   : > { %v6441_v13 = vadd.f32 %v6434_v40, %v2316_v15  ;;  %v2296_v11 = vmul.f32 %v5069_v48, %v6275_v38 }
 0x917   : > { %v6456_v38 = vadd.f32 %v6434_v40, %v2317_v63 }
 0x918   : > { %7649 = vst [vmem:[#allocation3_spill] sm:$0xff] %v6441_v13  ;;  %v2353_v3 = vpack.c.bf16 %v6441_v13, %v6438_v18  ;;  %v2318_v42 = vmul.f32 %v6427_v36, %v2296_v11 }
 0x919   : > { %v5071_v41 = vpop.eup %5070  ;;  %7651 = vst [vmem:[#allocation5_spill] sm:$0xff] %v6456_v38 }
 0x91a   : > { %2608 = vmatmul.mubr.bf16.vlgmr.msra.gmra.mxu1 %v2353_v3  ;;  %2721 = vmatmul.mubr.bf16.vlgmr.msra.gmra.mxu0 %v2353_v3  ;;  %v6452_v54 = vadd.f32 %v6434_v40, %v2318_v42  ;;  %v2297_v0 = vmul.f32 %v5071_v41, %v6280_v39 }
 0x91b   : > { %2617 = vmatprep.mubr.bf16.mxu1 %v5278_v2  ;;  %2730 = vmatprep.mubr.bf16.mxu0 %v5278_v2 }
 0x91c   : > { %v5073_v23 = vpop.eup %5072  ;;  %7650 = vst [vmem:[#allocation4_spill] sm:$0xff] %v6452_v54  ;;  %v2354_v22 = vpack.c.bf16 %v6452_v54, %v6456_v38  ;;  %v2319_v60 = vmul.f32 %v6427_v36, %v2297_v0 }
 0x91d   : > { %v2298_v16 = vmul.f32 %v5073_v23, %v6285_v49 }
 0x91e   : > { %v6470_v53 = vadd.f32 %v6434_v40, %v2319_v60 }
 0x91f   : > { %v2320_v20 = vmul.f32 %v6427_v36, %v2298_v16 }
 0x920   : > { %v5075_v12 = vpop.eup %5074  ;;  %7653 = vst [vmem:[#allocation7_spill] sm:$0xff] %v6470_v53 }
 0x921   : > { %v5077_v43 = vpop.eup %5076  ;;  %v6466_v49 = vadd.f32 %v6434_v40, %v2320_v20  ;;  %v2300_v39 = vmul.f32 %v5075_v12, %v6307_v37 }
 0x922   : > { %2618 = vmatmul.mubr.bf16.gmra.mxu1 %v2354_v22  ;;  %2731 = vmatmul.mubr.bf16.gmra.mxu0 %v2354_v22  ;;  %v2299_v5 = vmul.f32 %v5077_v43, %v6294_v56 }
 0x923   : > { %2627 = vmatprep.mubr.bf16.mxu1 %v5278_v2  ;;  %2740 = vmatprep.mubr.bf16.mxu0 %v5278_v2  ;;  %7652 = vst [vmem:[#allocation6_spill] sm:$0xff] %v6466_v49  ;;  %v2355_v55 = vpack.c.bf16 %v6466_v49, %v6470_v53  ;;  %v2322_v62 = vmul.f32 %v6427_v36, %v2300_v39 }
 0x924   : > { %v2321_v19 = vmul.f32 %v6427_v36, %v2299_v5 }
 0x925   : > { %v6480_v37 = vadd.f32 %v6434_v40, %v2322_v62 }
 0x926   : > { %v6483_v47 = vadd.f32 %v6434_v40, %v2321_v19 }
 0x927   : > { %7654 = vst [vmem:[#allocation8_spill] sm:$0xff] %v6480_v37 }
 0x928   : > { %7655 = vst [vmem:[#allocation9_spill] sm:$0xff] %v6483_v47  ;;  %v2356_v56 = vpack.c.bf16 %v6480_v37, %v6483_v47 }
 0x92a   : > { %2628 = vmatmul.mubr.bf16.gmra.mxu1 %v2355_v55  ;;  %2741 = vmatmul.mubr.bf16.gmra.mxu0 %v2355_v55 }
 0x92b   : > { %2637 = vmatprep.mubr.bf16.mxu1 %v5278_v2  ;;  %2750 = vmatprep.mubr.bf16.mxu0 %v5278_v2 }
 0x932   : > { %2638 = vmatmul.mubr.bf16.gmra.mxu1 %v2356_v56  ;;  %2751 = vmatmul.mubr.bf16.gmra.mxu0 %v2356_v56 }
 0x933   : > { %2647 = vmatprep.mubr.bf16.mxu1 %v5278_v2  ;;  %2760 = vmatprep.mubr.bf16.mxu0 %v5278_v2 }
 0x93a   : > { %v2230_v10 = vpop.xlane.xlu0 %2229 }
 0x93b   : > { %v2253_v30 = vmul.f32 0.0078125, %v2230_v10 }
 0x93d   : > { %v2269_v17 = vadd.f32 1e-12, %v2253_v30 }
 0x93e   : > { %v2232_v45 = vpop.xlane.xlu1 %2231  ;;  %v2234_v7 = vpop.xlane.xlu0 %2233 }
 0x93f   : > { %5078 = vrsqrt.f32 %v2269_v17  ;;  %v2254_v25 = vmul.f32 0.0078125, %v2232_v45  ;;  %v2255_v1 = vmul.f32 0.0078125, %v2234_v7 }
 0x941   : > { %v2270_v58 = vadd.f32 1e-12, %v2254_v25  ;;  %v2271_v29 = vadd.f32 1e-12, %v2255_v1 }
 0x942   : > { %v2236_v31 = vpop.xlane.xlu1 %2235 }
 0x943   : > { %5080 = vrsqrt.f32 %v2270_v58  ;;  %v2256_v59 = vmul.f32 0.0078125, %v2236_v31  ;;  %v2238_v24 = vpop.xlane.xlu0 %2237  ;;  %v4902_v31 = vld [vmem:[%s7600_s10 + $0x78] sm:$0xff]  }
 0x944   : > { %5082 = vrsqrt.f32 %v2271_v29  ;;  %v2257_v34 = vmul.f32 0.0078125, %v2238_v24  ;;  %4412 = vmatprep.subr.bf16.mxu1 %v4902_v31  ;;  %v4903_v24 = vld [vmem:[%s7600_s10 + $0x38] sm:$0xff]  }
 0x945   : > { %v2272_v9 = vadd.f32 1e-12, %v2256_v59  ;;  %4413 = vmatpush3.bf16.msra.mxu1 %v4903_v24 }
 0x946   : > { %v2273_v4 = vadd.f32 1e-12, %v2257_v34  ;;  %v4906_v34 = vld [vmem:[%s7600_s10 + $0x70] sm:$0xff]  }
 0x947   : > { %5084 = vrsqrt.f32 %v2272_v9  ;;  %v2240_v28 = vpop.xlane.xlu1 %2239  ;;  %v2242_v52 = vpop.xlane.xlu0 %2241  ;;  %4414 = vmatprep.subr.bf16.mxu1 %v4906_v34 }
 0x948   : > { %v2258_v14 = vmul.f32 0.0078125, %v2240_v28  ;;  %v2259_v35 = vmul.f32 0.0078125, %v2242_v52  ;;  %v6567_v28 = vld [vmem:[%s7600_s10 + $0xf0] sm:$0xff]   ;;  %v6585_v52 = vld [vmem:[%s7600_s10 + $0xe8] sm:$0xff]  }
 0x94a   : > { %v2274_v8 = vadd.f32 1e-12, %v2258_v14  ;;  %v2275_v41 = vadd.f32 1e-12, %v2259_v35  ;;  %v6575_v14 = vld [vmem:[%s7600_s10 + $0xb0] sm:$0xff]   ;;  %v6603_v35 = vld [vmem:[%s7600_s10 + $0xe0] sm:$0xff]  }
 0x94b   : > { %v2244_v15 = vpop.xlane.xlu1 %2243  ;;  %7665 = vst [vmem:[#allocation19_spill] sm:$0xff] %v6603_v35 }
 0x94c   : > { %v5079_v48 = vpop.eup %5078  ;;  %5086 = vrsqrt.f32 %v2274_v8  ;;  %v2260_v11 = vmul.f32 0.0078125, %v2244_v15  ;;  %v4912_v8 = vld [vmem:[%s7600_s10 + $0x28] sm:$0xff]  }
 0x94d   : > { %5088 = vrsqrt.f32 %v2273_v4  ;;  %v2301_v3 = vmul.f32 %v5079_v48, %v6384_v27  ;;  %v4910_v4 = vld [vmem:[%s7600_s10 + $0x68] sm:$0xff]   ;;  %v4914_v48 = vld [vmem:[%s7600_s10 + $0x60] sm:$0xff]  }
 0x94e   : > { %v2276_v42 = vadd.f32 1e-12, %v2260_v11  ;;  %v6593_v15 = vld [vmem:[%s7600_s10 + $0xa8] sm:$0xff]   ;;  %v4916_v11 = vld [vmem:[%s7600_s10 + $0x20] sm:$0xff]  }
 0x94f   : > { %v2323_v16 = vmul.f32 %v6427_v36, %v2301_v3  ;;  %7664 = vst [vmem:[#allocation18_spill] sm:$0xff] %v6593_v15  ;;  %v6611_v3 = vld [vmem:[%s7600_s10 + $0xa0] sm:$0xff]  }
 0x950   : > { %v5081_v63 = vpop.eup %5080  ;;  %5090 = vrsqrt.f32 %v2276_v42  ;;  %7666 = vst [vmem:[#allocation20_spill] sm:$0xff] %v6611_v3  ;;  %v4918_v42 = vld [vmem:[%s7600_s10 + $0x58] sm:$0xff]  }
 0x951   : > { %v2302_v23 = vmul.f32 %v5081_v63, %v6389_v57  ;;  %v5083_v0 = vpop.eup %5082  ;;  %5092 = vrsqrt.f32 %v2275_v41  ;;  %v6494_v12 = vadd.f32 %v6434_v40, %v2323_v16  ;;  %v6621_v63 = vld [vmem:[%s7600_s10 + $0xd8] sm:$0xff]   ;;  %v4922_v16 = vld [vmem:[%s7600_s10 + $0x50] sm:$0xff]  }
 0x952   : > { %v2303_v27 = vmul.f32 %v5083_v0, %v6392_v26  ;;  %7667 = vst [vmem:[#allocation21_spill] sm:$0xff] %v6621_v63  ;;  %v4920_v41 = vld [vmem:[%s7600_s10 + $0x18] sm:$0xff]   ;;  %v6639_v0 = vld [vmem:[%s7600_s10 + $0xd0] sm:$0xff]  }
 0x953   : > { %v2324_v22 = vmul.f32 %v6427_v36, %v2302_v23  ;;  %7656 = vst [vmem:[#allocation10_spill] sm:$0xff] %v6494_v12  ;;  %v6629_v23 = vld [vmem:[%s7600_s10 + $0x98] sm:$0xff]   ;;  %7669 = vst [vmem:[#allocation23_spill] sm:$0xff] %v6639_v0 }
 0x954   : > { %v5085_v20 = vpop.eup %5084  ;;  %v2325_v55 = vmul.f32 %v6427_v36, %v2303_v27  ;;  %7668 = vst [vmem:[#allocation22_spill] sm:$0xff] %v6629_v23  ;;  %v4926_v27 = vld [vmem:[%s7600_s10 + $0x48] sm:$0xff]  }
 0x955   : > { %v6497_v43 = vadd.f32 %v6434_v40, %v2324_v22  ;;  %v2304_v60 = vmul.f32 %v5085_v20, %v6399_v46  ;;  %v4924_v22 = vld [vmem:[%s7600_s10 + $0x10] sm:$0xff]  }
 0x956   : > { %v6512_v46 = vadd.f32 %v6434_v40, %v2325_v55  ;;  %v6647_v20 = vld [vmem:[%s7600_s10 + $0x90] sm:$0xff]   ;;  %v6675_v55 = vld [vmem:[%s7600_s10 + $0xc0] sm:$0xff]  }
 0x957   : > { %7657 = vst [vmem:[#allocation11_spill] sm:$0xff] %v6497_v43  ;;  %v2357_v57 = vpack.c.bf16 %v6497_v43, %v6494_v12  ;;  %v2326_v39 = vmul.f32 %v6427_v36, %v2304_v60  ;;  %7670 = vst [vmem:[#allocation24_spill] sm:$0xff] %v6647_v20  ;;  %v6657_v60 = vld [vmem:[%s7600_s10 + $0xc8] sm:$0xff]  }
 0x958   : > { %7659 = vst [vmem:[#allocation13_spill] sm:$0xff] %v6512_v46  ;;  %7671 = vst [vmem:[#allocation25_spill] sm:$0xff] %v6657_v60 }
 0x959   : > { %v5087_v5 = vpop.eup %5086  ;;  %2648 = vmatmul.mubr.bf16.gmra.mxu1 %v2357_v57  ;;  %2761 = vmatmul.mubr.bf16.gmra.mxu0 %v2357_v57  ;;  %v6508_v19 = vadd.f32 %v6434_v40, %v2326_v39  ;;  %v4928_v57 = vld [vmem:[%s7600_s10 + $0x8] sm:$0xff]   ;;  %7673 = vst [vmem:[#allocation27_spill] sm:$0xff] %v6675_v55 }
 0x95a   : > { %v5089_v62 = vpop.eup %5088  ;;  %2657 = vmatprep.mubr.bf16.mxu1 %v5278_v2  ;;  %2770 = vmatprep.mubr.bf16.mxu0 %v5278_v2  ;;  %v2306_v26 = vmul.f32 %v5087_v5, %v6409_v44  ;;  %v6665_v39 = vld [vmem:[%s7600_s10 + $0x88] sm:$0xff]   ;;  %v4930_v5 = vld [vmem:[%s7600_s10 + $0x40] sm:$0xff]  }
 0x95b   : > { %7658 = vst [vmem:[#allocation12_spill] sm:$0xff] %v6508_v19  ;;  %v2305_v56 = vmul.f32 %v5089_v62, %v6402_v61  ;;  %v2358_v10 = vpack.c.bf16 %v6508_v19, %v6512_v46  ;;  %7672 = vst [vmem:[#allocation26_spill] sm:$0xff] %v6665_v39  ;;  %v4932_v62 = vld [vmem:[%s7600_s10] sm:$0xff]  }
 0x95c   : > { %v2328_v30 = vmul.f32 %v6427_v36, %v2306_v26  ;;  %v6683_v26 = vld [vmem:[%s7600_s10 + $0x80] sm:$0xff]  }
 0x95d   : > { %v5091_v17 = vpop.eup %5090  ;;  %v2327_v7 = vmul.f32 %v6427_v36, %v2305_v56  ;;  %7674 = vst [vmem:[#allocation28_spill] sm:$0xff] %v6683_v26  ;;  %v2393_v56 = vld [vmem:[%s7599_s9] sm:$0xf] }
 0x95e   : > { %v5093_v45 = vpop.eup %5092  ;;  %v6522_v44 = vadd.f32 %v6434_v40, %v2328_v30  ;;  %v2308_v61 = vmul.f32 %v5091_v17, %v6419_v21  ;;  %v6694_v30 = vrot.slane %v2393_v56, %v544_v51  ;;  %v6698_v17 = vrot.slane %v2393_v56, %v552_v33 }
 0x95f   : > { %v6526_v25 = vadd.f32 %v6434_v40, %v2327_v7  ;;  %v2307_v1 = vmul.f32 %v5093_v45, %v6412_v32  ;;  %v6541_v32 = vld [vmem:[%s7600_s10 + $0xf8] sm:$0xff]   ;;  %v6702_v45 = vrot.slane %v2393_v56, %v548_v6 }
 0x960   : > { %7660 = vst [vmem:[#allocation14_spill] sm:$0xff] %v6522_v44  ;;  %v2330_v29 = vmul.f32 %v6427_v36, %v2308_v61  ;;  %4476 = vmatprep.subr.bf16.mxu0 %v6541_v32  ;;  %7675 = vst [vmem:[#allocation29_spill] sm:$0xff] %v6694_v30 }
 0x961   : > { %2658 = vmatmul.mubr.bf16.gmra.mxu1 %v2358_v10  ;;  %2771 = vmatmul.mubr.bf16.gmra.mxu0 %v2358_v10  ;;  %7661 = vst [vmem:[#allocation15_spill] sm:$0xff] %v6526_v25  ;;  %v2359_v58 = vpack.c.bf16 %v6522_v44, %v6526_v25  ;;  %v2329_v59 = vmul.f32 %v6427_v36, %v2307_v1  ;;  %v6552_v36 = vld [vmem:[%s7600_s10 + $0xb8] sm:$0xff]   ;;  %v2409_v10 = vsub.s32 3, %v5469_v50  ;;  %7676 = vst [vmem:[#allocation30_spill] sm:$0xff] %v6698_v17 }
 0x962   : > { %2667 = vmatprep.mubr.bf16.mxu1 %v5278_v2  ;;  %2780 = vmatprep.mubr.bf16.mxu0 %v5278_v2  ;;  %v6544_v21 = vadd.f32 %v6434_v40, %v2330_v29  ;;  %7677 = vst [vmem:[#allocation31_spill] sm:$0xff] %v6702_v45 }
 0x963   : > { %4477 = vmatpush3.bf16.msra.mxu0 %v6552_v36  ;;  %v6704_v7 = vrot.slane %v2393_v56, %v2409_v10 }
 0x964   : > { %7662 = vst [vmem:[#allocation16_spill] sm:$0xff] %v6544_v21  ;;  %4478 = vmatprep.subr.bf16.mxu0 %v6567_v28 }
 0x967   : > { %4479 = vmatpush3.bf16.msra.mxu0 %v6575_v14 }
 0x968   : > { %4480 = vmatprep.subr.bf16.mxu0 %v6585_v52 }
 0x969   : > { %2668 = vmatmul.mubr.bf16.gmra.mxu1 %v2359_v58  ;;  %2781 = vmatmul.mubr.bf16.gmra.mxu0 %v2359_v58 }
 0x96a   : > { %2677 = vmatprep.mubr.bf16.mxu1 %v5278_v2  ;;  %2790 = vmatprep.mubr.bf16.mxu0 %v5278_v2  ;;  %v6556_v2 = vadd.f32 %v6434_v40, %v2329_v59  ;;  %v4908_v40 = vld [vmem:[%s7600_s10 + $0x30] sm:$0xff]  }
 0x96b   : > { %4415 = vmatpush3.bf16.msra.mxu1 %v4908_v40  ;;  %4481 = vmatpush3.bf16.msra.mxu0 %v6593_v15 }
 0x96c   : > { %7663 = vst [vmem:[#allocation17_spill] sm:$0xff] %v6556_v2  ;;  %v2360_v9 = vpack.c.bf16 %v6544_v21, %v6556_v2  ;;  %4416 = vmatprep.subr.bf16.mxu1 %v4910_v4  ;;  %4482 = vmatprep.subr.bf16.mxu0 %v6603_v35 }
 0x96f   : > { %4417 = vmatpush3.bf16.msra.mxu1 %v4912_v8  ;;  %4483 = vmatpush3.bf16.msra.mxu0 %v6611_v3 }
 0x970   : > { %4418 = vmatprep.subr.bf16.mxu1 %v4914_v48  ;;  %4484 = vmatprep.subr.bf16.mxu0 %v6621_v63 }
 0x971   : > { %2678 = vmatmul.mubr.bf16.gmra.mxu1 %v2360_v9  ;;  %2791 = vmatmul.mubr.bf16.gmra.mxu0 %v2360_v9 }
 0x973   : > { %4419 = vmatpush3.bf16.msra.mxu1 %v4916_v11  ;;  %4485 = vmatpush3.bf16.msra.mxu0 %v6629_v23 }
 0x974   : > { %4420 = vmatprep.subr.bf16.mxu1 %v4918_v42  ;;  %4486 = vmatprep.subr.bf16.mxu0 %v6639_v0 }
 0x977   : > { %4421 = vmatpush3.bf16.msra.mxu1 %v4920_v41  ;;  %4487 = vmatpush3.bf16.msra.mxu0 %v6647_v20 }
 0x978   : > { %4422 = vmatprep.subr.bf16.mxu1 %v4922_v16  ;;  %4488 = vmatprep.subr.bf16.mxu0 %v6657_v60 }
 0x97b   : > { %4423 = vmatpush3.bf16.msra.mxu1 %v4924_v22  ;;  %4489 = vmatpush3.bf16.msra.mxu0 %v6665_v39 }
 0x97c   : > { %4424 = vmatprep.subr.bf16.mxu1 %v4926_v27  ;;  %4490 = vmatprep.subr.bf16.mxu0 %v6675_v55 }
 0x97f   : > { %4425 = vmatpush3.bf16.msra.mxu1 %v4928_v57  ;;  %4491 = vmatpush3.bf16.msra.mxu0 %v6683_v26 }
 0x980   : > { %4426 = vmatprep.subr.bf16.mxu1 %v4930_v5 }
 0x983   : > { %4427 = vmatpush3.bf16.msra.mxu1 %v4932_v62 }
 0x984   : > { %4732 = vmatprep.subr.bf16.mxu1 %v6541_v32 }
 0x9da   : > { %v2609_v61 = vpop.f32.mrf.mxu1  ;;  %v2722_v1 = vpop.f32.mrf.mxu0 }
 0x9db   : > { %v6707_v58 = vadd.f32 %v2609_v61, %v6694_v30  ;;  %v6710_v29 = vadd.f32 %v2722_v1, %v6698_v17 }
 0x9dc   : > { %v2611_v51 = vpop.f32.mrf.mxu1  ;;  %v2724_v31 = vpop.f32.mrf.mxu0 }
 0x9dd   : > { %v2801_v33 = vmul.f32 %v6707_v58, %v6707_v58  ;;  %v2803_v50 = vmul.f32 %v6710_v29, %v6710_v29  ;;  %v6717_v6 = vadd.f32 %v2611_v51, %v6702_v45  ;;  %v6720_v59 = vadd.f32 %v2724_v31, %v6704_v7 }
 0x9de   : > { %v2613_v32 = vpop.f32.mrf.mxu1  ;;  %v2726_v24 = vpop.f32.mrf.mxu0 }
 0x9df   : > { %v2865_v9 = vmul.f32 %v2801_v33, %v6707_v58  ;;  %v2867_v34 = vmul.f32 %v2803_v50, %v6710_v29  ;;  %v2802_v40 = vmul.f32 %v6717_v6, %v6717_v6  ;;  %v2804_v4 = vmul.f32 %v6720_v59, %v6720_v59 }
 0x9e0   : > { %v6729_v8 = vadd.f32 %v2613_v32, %v6694_v30  ;;  %v6732_v48 = vadd.f32 %v2726_v24, %v6698_v17  ;;  %v2615_v11 = vpop.f32.mrf.mxu1  ;;  %v2728_v42 = vpop.f32.mrf.mxu0 }
 0x9e1   : > { %v2929_v41 = vmul.f32 0.044715, %v2865_v9  ;;  %v2931_v16 = vmul.f32 0.044715, %v2867_v34  ;;  %v2866_v22 = vmul.f32 %v2802_v40, %v6717_v6  ;;  %v2868_v27 = vmul.f32 %v2804_v4, %v6720_v59 }
 0x9e2   : > { %v2805_v57 = vmul.f32 %v6729_v8, %v6729_v8  ;;  %v2807_v5 = vmul.f32 %v6732_v48, %v6732_v48  ;;  %v6741_v62 = vadd.f32 %v2615_v11, %v6702_v45  ;;  %v6744_v56 = vadd.f32 %v2728_v42, %v6704_v7  ;;  %v2619_v10 = vpop.f32.mrf.mxu1  ;;  %v2732_v61 = vpop.f32.mrf.mxu0 }
 0x9e3   : > { %v2993_v1 = vadd.f32 %v2929_v41, %v6707_v58  ;;  %v2995_v51 = vadd.f32 %v2931_v16, %v6710_v29  ;;  %v2930_v31 = vmul.f32 0.044715, %v2866_v22  ;;  %v2932_v33 = vmul.f32 0.044715, %v2868_v27 }
 0x9e4   : > { %v2869_v50 = vmul.f32 %v2805_v57, %v6729_v8  ;;  %v2871_v32 = vmul.f32 %v2807_v5, %v6732_v48  ;;  %v2806_v24 = vmul.f32 %v6741_v62, %v6741_v62  ;;  %v2808_v9 = vmul.f32 %v6744_v56, %v6744_v56  ;;  %v2621_v4 = vpop.f32.mrf.mxu1  ;;  %v2734_v22 = vpop.f32.mrf.mxu0 }
 0x9e5   : > { %v3057_v34 = vmul.f32 0.7978846, %v2993_v1  ;;  %v3059_v40 = vmul.f32 0.7978846, %v2995_v51  ;;  %v2994_v27 = vadd.f32 %v2930_v31, %v6717_v6  ;;  %v6758_v57 = vadd.f32 %v2619_v10, %v6694_v30 }
 0x9e6   : > { %v2933_v11 = vmul.f32 0.044715, %v2869_v50  ;;  %v2935_v42 = vmul.f32 0.044715, %v2871_v32  ;;  %v2870_v41 = vmul.f32 %v2806_v24, %v6741_v62  ;;  %v2872_v16 = vmul.f32 %v2808_v9, %v6744_v56  ;;  %v2623_v9 = vpop.f32.mrf.mxu1  ;;  %v2736_v21 = vpop.f32.mrf.mxu0 }
 0x9e7   : > { %5094 = vtanh.f32 %v3057_v34  ;;  %v2996_v5 = vadd.f32 %v2932_v33, %v6720_v59  ;;  %v2809_v32 = vmul.f32 %v6758_v57, %v6758_v57  ;;  %v6766_v24 = vadd.f32 %v2732_v61, %v6698_v17 }
 0x9e8   : > { %5096 = vtanh.f32 %v3059_v40  ;;  %v2997_v1 = vadd.f32 %v2933_v11, %v6729_v8  ;;  %v2999_v51 = vadd.f32 %v2935_v42, %v6732_v48  ;;  %v2934_v50 = vmul.f32 0.044715, %v2870_v41 }
 0x9e9   : > { %v2936_v31 = vmul.f32 0.044715, %v2872_v16  ;;  %v2873_v40 = vmul.f32 %v2809_v32, %v6758_v57  ;;  %v2811_v33 = vmul.f32 %v6766_v24, %v6766_v24  ;;  %v6772_v11 = vadd.f32 %v2621_v4, %v6702_v45  ;;  %v2625_v32 = vpop.f32.mrf.mxu1 }
 0x9ea   : > { %v3061_v34 = vmul.f32 0.7978846, %v2997_v1  ;;  %v3063_v10 = vmul.f32 0.7978846, %v2999_v51  ;;  %v3058_v42 = vmul.f32 0.7978846, %v2994_v27  ;;  %v6775_v2 = vadd.f32 %v2734_v22, %v6704_v7 }
 0x9eb   : > { %v3060_v41 = vmul.f32 0.7978846, %v2996_v5  ;;  %v6778_v61 = vadd.f32 %v2623_v9, %v6694_v30  ;;  %v2998_v16 = vadd.f32 %v2934_v50, %v6741_v62  ;;  %v2937_v1 = vmul.f32 0.044715, %v2873_v40  ;;  %v2738_v5 = vpop.f32.mrf.mxu0 }
 0x9ec   : > { %5098 = vtanh.f32 %v3061_v34  ;;  %v2875_v51 = vmul.f32 %v2811_v33, %v6766_v24  ;;  %v3000_v44 = vadd.f32 %v2936_v31, %v6744_v56  ;;  %v2810_v4 = vmul.f32 %v6772_v11, %v6772_v11 }
 0x9ed   : > { %v2812_v27 = vmul.f32 %v6775_v2, %v6775_v2  ;;  %v2813_v22 = vmul.f32 %v6778_v61, %v6778_v61  ;;  %5100 = vtanh.f32 %v3063_v10  ;;  %v3001_v9 = vadd.f32 %v2937_v1, %v6758_v57 }
 0x9ee   : > { %v2939_v50 = vmul.f32 0.044715, %v2875_v51  ;;  %v6791_v34 = vadd.f32 %v2736_v21, %v6698_v17  ;;  %v2874_v40 = vmul.f32 %v2810_v4, %v6772_v11  ;;  %v6797_v25 = vadd.f32 %v2625_v32, %v6702_v45  ;;  %v2629_v21 = vpop.f32.mrf.mxu1 }
 0x9ef   : > { %v2876_v31 = vmul.f32 %v2812_v27, %v6775_v2  ;;  %v2877_v33 = vmul.f32 %v2813_v22, %v6778_v61  ;;  %5102 = vtanh.f32 %v3058_v42  ;;  %v6803_v1 = vadd.f32 %v2738_v5, %v6704_v7 }
 0x9f0   : > { %v3003_v19 = vadd.f32 %v2939_v50, %v6766_v24  ;;  %v2815_v10 = vmul.f32 %v6791_v34, %v6791_v34  ;;  %v2938_v51 = vmul.f32 0.044715, %v2874_v40  ;;  %v2814_v27 = vmul.f32 %v6797_v25, %v6797_v25 }
 0x9f1   : > { %v2940_v46 = vmul.f32 0.044715, %v2876_v31  ;;  %v2941_v4 = vmul.f32 0.044715, %v2877_v33  ;;  %v3062_v22 = vmul.f32 0.7978846, %v2998_v16  ;;  %v2816_v42 = vmul.f32 %v6803_v1, %v6803_v1  ;;  %v2742_v31 = vpop.f32.mrf.mxu0 }
 0x9f2   : > { %v3064_v43 = vmul.f32 0.7978846, %v3000_v44  ;;  %v2879_v32 = vmul.f32 %v2815_v10, %v6791_v34  ;;  %v3065_v12 = vmul.f32 0.7978846, %v3001_v9  ;;  %v3002_v37 = vadd.f32 %v2938_v51, %v6772_v11  ;;  %v2631_v44 = vpop.f32.mrf.mxu1 }
 0x9f3   : > { %v3004_v5 = vadd.f32 %v2940_v46, %v6775_v2  ;;  %v2878_v40 = vmul.f32 %v2814_v27, %v6797_v25  ;;  %5104 = vtanh.f32 %v3060_v41  ;;  %v3067_v49 = vmul.f32 0.7978846, %v3003_v19  ;;  %v2744_v41 = vpop.f32.mrf.mxu0 }
 0x9f4   : > { %v5095_v50 = vpop.eup %5094  ;;  %v2943_v16 = vmul.f32 0.044715, %v2879_v32  ;;  %v3005_v10 = vadd.f32 %v2941_v4, %v6778_v61  ;;  %v2880_v54 = vmul.f32 %v2816_v42, %v6803_v1  ;;  %v6816_v9 = vadd.f32 %v2629_v21, %v6694_v30  ;;  %v2633_v4 = vpop.f32.mrf.mxu1 }
 0x9f5   : > { %v5097_v33 = vpop.eup %5096  ;;  %v3185_v47 = vadd.f32 1.0, %v5095_v50  ;;  %5106 = vtanh.f32 %v3062_v22  ;;  %v3066_v46 = vmul.f32 0.7978846, %v3002_v37  ;;  %v3068_v38 = vmul.f32 0.7978846, %v3004_v5 }
 0x9f6   : > { %v3187_v53 = vadd.f32 1.0, %v5097_v33  ;;  %7678 = vst [vmem:[#allocation32_spill] sm:$0xff] %v6816_v9  ;;  %v3007_v27 = vadd.f32 %v2943_v16, %v6791_v34  ;;  %5108 = vtanh.f32 %v3064_v43  ;;  %v2942_v50 = vmul.f32 0.044715, %v2878_v40 }
 0x9f7   : > { %v3249_v51 = vmul.f32 0.5, %v3185_v47  ;;  %v2817_v19 = vmul.f32 %v6816_v9, %v6816_v9  ;;  %5110 = vtanh.f32 %v3065_v12  ;;  %v3069_v42 = vmul.f32 0.7978846, %v3005_v10  ;;  %v2635_v10 = vpop.f32.mrf.mxu1 }
 0x9f8   : > { %v3251_v32 = vmul.f32 0.5, %v3187_v53  ;;  %5112 = vtanh.f32 %v3067_v49  ;;  %v2944_v21 = vmul.f32 0.044715, %v2880_v54  ;;  %v3071_v37 = vmul.f32 0.7978846, %v3007_v27  ;;  %v2746_v49 = vpop.f32.mrf.mxu0 }
 0x9f9   : > { %v5099_v33 = vpop.eup %5098  ;;  %v6822_v47 = vmul.f32 %v3249_v51, %v6707_v58  ;;  %5114 = vtanh.f32 %v3066_v46  ;;  %v2881_v43 = vmul.f32 %v2817_v19, %v6816_v9  ;;  %v3006_v5 = vadd.f32 %v2942_v50, %v6797_v25 }
 0x9fa   : > { %v5101_v22 = vpop.eup %5100  ;;  %5116 = vtanh.f32 %v3068_v38  ;;  %v6827_v40 = vadd.f32 %v2742_v31, %v6698_v17  ;;  %v6830_v53 = vadd.f32 %v2631_v44, %v6702_v45  ;;  %v6833_v54 = vmul.f32 %v3251_v32, %v6710_v29 }
 0x9fb   : > { %v3189_v12 = vadd.f32 1.0, %v5099_v33  ;;  %v2945_v58 = vmul.f32 0.044715, %v2881_v43  ;;  %v6836_v16 = vadd.f32 %v2744_v41, %v6704_v7  ;;  %5118 = vtanh.f32 %v3069_v42  ;;  %v2748_v33 = vpop.f32.mrf.mxu0 }
 0x9fc   : > { %7679 = vst [vmem:[#allocation33_spill] sm:$0xff] %v6827_v40  ;;  %v6838_v51 = vpop.eup %5102  ;;  %v3008_v38 = vadd.f32 %v2944_v21, %v6803_v1  ;;  %v2819_v31 = vmul.f32 %v6827_v40, %v6827_v40  ;;  %v2818_v44 = vmul.f32 %v6830_v53, %v6830_v53  ;;  %v3191_v46 = vadd.f32 1.0, %v5101_v22  ;;  %v2639_v22 = vpop.f32.mrf.mxu1 }
 0x9fd   : > { %5120 = vtanh.f32 %v3071_v37  ;;  %v2820_v29 = vmul.f32 %v6836_v16, %v6836_v16  ;;  %v6848_v27 = vadd.f32 %v2633_v4, %v6694_v30  ;;  %v3070_v50 = vmul.f32 0.7978846, %v3006_v5  ;;  %v2752_v39 = vpop.f32.mrf.mxu0 }
 0x9fe   : > { %v2883_v19 = vmul.f32 %v2819_v31, %v6827_v40  ;;  %v2882_v41 = vmul.f32 %v2818_v44, %v6830_v53  ;;  %v6853_v32 = vadd.f32 %v2746_v49, %v6698_v17  ;;  %v3253_v42 = vmul.f32 0.5, %v3189_v12 }
 0x9ff   : > { %7680 = vst [vmem:[#allocation34_spill] sm:$0xff] %v6848_v27  ;;  %v3009_v21 = vadd.f32 %v2945_v58, %v6816_v9  ;;  %v2884_v37 = vmul.f32 %v2820_v29, %v6836_v16  ;;  %v2821_v43 = vmul.f32 %v6848_v27, %v6848_v27  ;;  %v6864_v49 = vadd.f32 %v2635_v10, %v6702_v45 }
 0xa00   : > { %7681 = vst [vmem:[#allocation35_spill] sm:$0xff] %v6853_v32  ;;  %v6859_v4 = vpop.eup %5104  ;;  %v2947_v5 = vmul.f32 0.044715, %v2883_v19  ;;  %v2946_v13 = vmul.f32 0.044715, %v2882_v41  ;;  %v2823_v31 = vmul.f32 %v6853_v32, %v6853_v32  ;;  %v3255_v44 = vmul.f32 0.5, %v3191_v46 }
 0xa01   : > { %v3072_v12 = vmul.f32 0.7978846, %v3008_v38  ;;  %v2948_v18 = vmul.f32 0.044715, %v2884_v37  ;;  %v2885_v58 = vmul.f32 %v2821_v43, %v6848_v27  ;;  %v2822_v41 = vmul.f32 %v6864_v49, %v6864_v49  ;;  %v2641_v43 = vpop.f32.mrf.mxu1 }
 0xa02   : > { %v6867_v29 = vpop.eup %5106  ;;  %v3011_v26 = vadd.f32 %v2947_v5, %v6827_v40  ;;  %v3010_v55 = vadd.f32 %v2946_v13, %v6830_v53  ;;  %v2887_v19 = vmul.f32 %v2823_v31, %v6853_v32  ;;  %v6877_v10 = vmul.f32 %v3253_v42, %v6729_v8 }
 0xa03   : > { %v6874_v60 = vpop.eup %5108  ;;  %v3012_v38 = vadd.f32 %v2948_v18, %v6836_v16  ;;  %v2949_v46 = vmul.f32 0.044715, %v2885_v58  ;;  %v6881_v37 = vadd.f32 %v2748_v33, %v6704_v7  ;;  %5122 = vtanh.f32 %v3070_v50  ;;  %v2643_v3 = vpop.f32.mrf.mxu1 }
 0xa04   : > { %v6883_v5 = vpop.eup %5110  ;;  %v3073_v13 = vmul.f32 0.7978846, %v3009_v21  ;;  %v2951_v31 = vmul.f32 0.044715, %v2887_v19  ;;  %v2886_v20 = vmul.f32 %v2822_v41, %v6864_v49  ;;  %5124 = vtanh.f32 %v3072_v12  ;;  %v2754_v21 = vpop.f32.mrf.mxu0 }
 0xa05   : > { %v5113_v0 = vpop.eup %5112  ;;  %v3075_v23 = vmul.f32 0.7978846, %v3011_v26  ;;  %v3074_v63 = vmul.f32 0.7978846, %v3010_v55  ;;  %v2824_v8 = vmul.f32 %v6881_v37, %v6881_v37  ;;  %v3013_v33 = vadd.f32 %v2949_v46, %v6848_v27 }
 0xa06   : > { %v6888_v18 = vpop.eup %5114  ;;  %v3015_v42 = vadd.f32 %v2951_v31, %v6853_v32  ;;  %v2950_v58 = vmul.f32 0.044715, %v2886_v20  ;;  %v6893_v50 = vadd.f32 %v2639_v22, %v6694_v30  ;;  %v6900_v55 = vmul.f32 %v3255_v44, %v6732_v48 }
 0xa07   : > { %v6895_v19 = vpop.eup %5116  ;;  %v3076_v12 = vmul.f32 0.7978846, %v3012_v38  ;;  %v2888_v41 = vmul.f32 %v2824_v8, %v6881_v37  ;;  %v6903_v46 = vadd.f32 1.0, %v5113_v0  ;;  %5126 = vtanh.f32 %v3073_v13  ;;  %v2756_v8 = vpop.f32.mrf.mxu0 }
 0xa08   : > { %7682 = vst [vmem:[#allocation36_spill] sm:$0xff] %v6893_v50  ;;  %v3014_v20 = vadd.f32 %v2950_v58, %v6864_v49  ;;  %v2825_v22 = vmul.f32 %v6893_v50, %v6893_v50  ;;  %v6908_v31 = vpop.eup %5118  ;;  %5128 = vtanh.f32 %v3075_v23  ;;  %v3079_v35 = vmul.f32 0.7978846, %v3015_v42  ;;  %v2645_v42 = vpop.f32.mrf.mxu1 }
 0xa09   : > { %v2952_v26 = vmul.f32 0.044715, %v2888_v41  ;;  %v6911_v48 = vadd.f32 %v2752_v39, %v6698_v17  ;;  %5130 = vtanh.f32 %v3074_v63  ;;  %v3077_v38 = vmul.f32 0.7978846, %v3013_v33 }
 0xa0a   : > { %v5121_v44 = vpop.eup %5120  ;;  %v2889_v0 = vmul.f32 %v2825_v22, %v6893_v50  ;;  %v6915_v13 = vadd.f32 %v2641_v43, %v6702_v45  ;;  %5132 = vtanh.f32 %v3076_v12  ;;  %v3078_v58 = vmul.f32 0.7978846, %v3014_v20 }
 0xa0b   : > { %7683 = vst [vmem:[#allocation37_spill] sm:$0xff] %v6911_v48  ;;  %v2827_v9 = vmul.f32 %v6911_v48, %v6911_v48  ;;  %v6920_v23 = vadd.f32 %v2754_v21, %v6704_v7  ;;  %v3016_v39 = vadd.f32 %v2952_v26, %v6881_v37  ;;  %v6926_v33 = vadd.f32 %v2643_v3, %v6694_v30  ;;  %v2758_v3 = vpop.f32.mrf.mxu0 }
 0xa0c   : > { %v2953_v41 = vmul.f32 0.044715, %v2889_v0  ;;  %v2826_v63 = vmul.f32 %v6915_v13, %v6915_v13  ;;  %5134 = vtanh.f32 %v3079_v35  ;;  %v6932_v20 = vadd.f32 %v2756_v8, %v6698_v17 }
 0xa0d   : > { %7684 = vst [vmem:[#allocation38_spill] sm:$0xff] %v6926_v33  ;;  %v2891_v43 = vmul.f32 %v2827_v9, %v6911_v48  ;;  %v2828_v12 = vmul.f32 %v6920_v23, %v6920_v23  ;;  %v2829_v22 = vmul.f32 %v6926_v33, %v6926_v33  ;;  %v6939_v0 = vadd.f32 %v2645_v42, %v6702_v45 }
 0xa0e   : > { %v3017_v21 = vadd.f32 %v2953_v41, %v6893_v50  ;;  %v2890_v26 = vmul.f32 %v2826_v63, %v6915_v13  ;;  %5136 = vtanh.f32 %v3078_v58  ;;  %v2831_v15 = vmul.f32 %v6932_v20, %v6932_v20 }
 0xa0f   : > { %v2955_v35 = vmul.f32 0.044715, %v2891_v43  ;;  %v2892_v9 = vmul.f32 %v2828_v12, %v6920_v23  ;;  %v3080_v8 = vmul.f32 0.7978846, %v3016_v39  ;;  %v2893_v41 = vmul.f32 %v2829_v22, %v6926_v33 }
 0xa10   : > { %v2954_v32 = vmul.f32 0.044715, %v2890_v26  ;;  %v2830_v63 = vmul.f32 %v6939_v0, %v6939_v0  ;;  %v5123_v50 = vpop.eup %5122  ;;  %v2895_v45 = vmul.f32 %v2831_v15, %v6932_v20  ;;  %v6950_v58 = vadd.f32 %v2758_v3, %v6704_v7 }
 0xa11   : > { %v3019_v40 = vadd.f32 %v2955_v35, %v6911_v48  ;;  %v2956_v42 = vmul.f32 0.044715, %v2892_v9  ;;  %v5125_v43 = vpop.eup %5124  ;;  %v3081_v12 = vmul.f32 0.7978846, %v3017_v21  ;;  %v2957_v39 = vmul.f32 0.044715, %v2893_v41 }
 0xa12   : > { %v3018_v27 = vadd.f32 %v2954_v32, %v6915_v13  ;;  %v2894_v26 = vmul.f32 %v2830_v63, %v6939_v0  ;;  %v2959_v17 = vmul.f32 0.044715, %v2895_v45  ;;  %v2832_v35 = vmul.f32 %v6950_v58, %v6950_v58 }
 0xa13   : > { %v3083_v22 = vmul.f32 0.7978846, %v3019_v40  ;;  %v3020_v30 = vadd.f32 %v2956_v42, %v6920_v23  ;;  %v3199_v9 = vadd.f32 1.0, %v5121_v44  ;;  %5138 = vtanh.f32 %v3080_v8 }
 0xa14   : > { %v3082_v15 = vmul.f32 0.7978846, %v3018_v27  ;;  %v2958_v48 = vmul.f32 0.044715, %v2894_v26  ;;  %v6957_v3 = vpop.eup %5126  ;;  %5140 = vtanh.f32 %v3077_v38  ;;  %v3023_v32 = vadd.f32 %v2959_v17, %v6932_v20 }
 0xa15   : > { %v3084_v21 = vmul.f32 0.7978846, %v3020_v30  ;;  %v2896_v41 = vmul.f32 %v2832_v35, %v6950_v58  ;;  %v5129_v63 = vpop.eup %5128  ;;  %5142 = vtanh.f32 %v3081_v12  ;;  %v3021_v45 = vadd.f32 %v2957_v39, %v6926_v33 }
 0xa16   : > { %v3022_v44 = vadd.f32 %v2958_v48, %v6939_v0  ;;  %v5131_v8 = vpop.eup %5130  ;;  %5144 = vtanh.f32 %v3083_v22  ;;  %v3087_v27 = vmul.f32 0.7978846, %v3023_v32  ;;  %v3186_v38 = vadd.f32 1.0, %v6838_v51 }
 0xa17   : > { %v2960_v42 = vmul.f32 0.044715, %v2896_v41  ;;  %v5133_v30 = vpop.eup %5132  ;;  %v6967_v17 = vmul.f32 0.5, %v6903_v46  ;;  %v6969_v26 = vmul.f32 0.5, %v3199_v9  ;;  %5146 = vtanh.f32 %v3082_v15 }
 0xa18   : > { %v3086_v35 = vmul.f32 0.7978846, %v3022_v44  ;;  %5148 = vtanh.f32 %v3084_v21  ;;  %v3190_v39 = vadd.f32 1.0, %v6867_v29  ;;  %v3250_v48 = vmul.f32 0.5, %v3186_v38 }
 0xa19   : > { %v3024_v12 = vadd.f32 %v2960_v42, %v6950_v58  ;;  %v5135_v40 = vpop.eup %5134  ;;  %v3085_v22 = vmul.f32 0.7978846, %v3021_v45  ;;  %5150 = vtanh.f32 %v3087_v27  ;;  %v3188_v32 = vadd.f32 1.0, %v6859_v4 }
 0xa1a   : > { %v3192_v51 = vadd.f32 1.0, %v6874_v60  ;;  %5152 = vtanh.f32 %v3086_v35  ;;  %v3254_v41 = vmul.f32 0.5, %v3190_v39  ;;  %v3194_v9 = vadd.f32 1.0, %v6888_v18 }
 0xa1b   : > { %v3088_v46 = vmul.f32 0.7978846, %v3024_v12  ;;  %v5137_v15 = vpop.eup %5136  ;;  %v3314_v21 = vmul.f32 %v3250_v48, %v6717_v6  ;;  %v3252_v44 = vmul.f32 0.5, %v3188_v32  ;;  %v3198_v33 = vadd.f32 1.0, %v5123_v50 }
 0xa1c   : > { %v3256_v42 = vmul.f32 0.5, %v3192_v51  ;;  %v3318_v29 = vmul.f32 %v3254_v41, %v6741_v62  ;;  %v3258_v45 = vmul.f32 0.5, %v3194_v9  ;;  %v3196_v27 = vadd.f32 1.0, %v6895_v19  ;;  %v2649_v9 = vpop.f32.mrf.mxu1 }
 0xa1d   : > { %5154 = vtanh.f32 %v3088_v46  ;;  %v3316_v4 = vmul.f32 %v3252_v44, %v6720_v59  ;;  %v3262_v38 = vmul.f32 0.5, %v3198_v33  ;;  %v3200_v35 = vadd.f32 1.0, %v5125_v43  ;;  %v2762_v44 = vpop.f32.mrf.mxu0 }
 0xa1e   : > { %v3320_v60 = vmul.f32 %v3256_v42, %v6744_v56  ;;  %v3378_v12 = vpack.c.bf16 %v3318_v29, %v3314_v21  ;;  %v3322_v18 = vmul.f32 %v3258_v45, %v6772_v11  ;;  %v3260_v39 = vmul.f32 0.5, %v3196_v27 }
 0xa1f   : > { %v3193_v6 = vadd.f32 1.0, %v6883_v5  ;;  %v3326_v50 = vmul.f32 %v3262_v38, %v6797_v25  ;;  %v3264_v32 = vmul.f32 0.5, %v3200_v35  ;;  %v3197_v62 = vadd.f32 1.0, %v6908_v31 }
 0xa20   : > { %v3380_v48 = vpack.c.bf16 %v3320_v60, %v3316_v4  ;;  %v5139_v51 = vpop.eup %5138  ;;  %v3203_v19 = vadd.f32 1.0, %v5129_v63  ;;  %3704 = vmatprep.mubr.bf16.mxu1 %v3378_v12  ;;  %v3324_v59 = vmul.f32 %v3260_v39, %v6775_v2  ;;  %v3202_v33 = vadd.f32 1.0, %v5131_v8  ;;  %v2651_v4 = vpop.f32.mrf.mxu1 }
 0xa21   : > { %v3257_v56 = vmul.f32 0.5, %v3193_v6  ;;  %v5141_v43 = vpop.eup %5140  ;;  %v7685_v11 = vpack.c.bf16 %v6877_v10, %v6822_v47  ;;  %v3382_v5 = vpack.c.bf16 %v3326_v50, %v3322_v18  ;;  %v3328_v46 = vmul.f32 %v3264_v32, %v6803_v1  ;;  %v7687_v6 = vld [vmem:[#allocation30_spill] sm:$0xff]  ;;  %v7688_v32 = vld [vmem:[#allocation29_spill] sm:$0xff] }
 0xa22   : > { %3801 = vmatprep.mubr.bf16.mxu0 %v3380_v48  ;;  %v3261_v25 = vmul.f32 0.5, %v3197_v62  ;;  %v3206_v41 = vadd.f32 1.0, %v5137_v15  ;;  %v6990_v31 = vpop.eup %5142  ;;  %v3207_v63 = vadd.f32 1.0, %v5135_v40  ;;  %5156 = vtanh.f32 %v3085_v22  ;;  %v2653_v62 = vpop.f32.mrf.mxu1 }
 0xa23   : > { %3705 = vmatmul.mubr.bf16.vlgmr.msra.gmra.mxu1 %v7685_v11  ;;  %v7686_v2 = vpack.c.bf16 %v6900_v55, %v6833_v54  ;;  %v3266_v8 = vmul.f32 0.5, %v3202_v33  ;;  %v3204_v21 = vadd.f32 1.0, %v5133_v30  ;;  %v5145_v47 = vpop.eup %5144  ;;  %v3384_v10 = vpack.c.bf16 %v3328_v46, %v3324_v59  ;;  %v7691_v33 = vld [vmem:[#allocation33_spill] sm:$0xff]  ;;  %v7692_v11 = vld [vmem:[#allocation35_spill] sm:$0xff] }
 0xa24   : > { %4740 = vmatpush3.bf16.msra.mxu1 %v6552_v36  ;;  %3712 = vmatprep.mubr.bf16.mxu1 %v3382_v5  ;;  %v3325_v1 = vmul.f32 %v3261_v25, %v6778_v61  ;;  %v3270_v15 = vmul.f32 0.5, %v3206_v41  ;;  %v3208_v42 = vadd.f32 1.0, %v5139_v51  ;;  %v5147_v40 = vpop.eup %5146  ;;  %v3327_v22 = vmul.f32 %v6969_v26, %v6791_v34  ;;  %v7690_v51 = vld [vmem:[#allocation31_spill] sm:$0xff]  ;;  %v7693_v41 = vld [vmem:[#allocation18_spill] sm:$0xff] }
 0xa25   : > { %3802 = vmatmul.mubr.bf16.vlgmr.msra.gmra.mxu0 %v7686_v2  ;;  %4733 = vmatprep.subr.bf16.mxu1 %v6567_v28  ;;  %v3321_v54 = vmul.f32 %v3257_v56, %v6758_v57  ;;  %v3268_v55 = vmul.f32 0.5, %v3204_v21  ;;  %v3201_v30 = vadd.f32 1.0, %v6957_v3  ;;  %v5149_v29 = vpop.eup %5148  ;;  %v3330_v36 = vmul.f32 %v3266_v8, %v6830_v53  ;;  %v2764_v57 = vpop.f32.mrf.mxu0 }
 0xa26   : > { %3809 = vmatprep.mubr.bf16.mxu0 %v3384_v10  ;;  %v3334_v45 = vmul.f32 %v3270_v15, %v6864_v49  ;;  %v3272_v61 = vmul.f32 0.5, %v3208_v42  ;;  %v3205_v27 = vadd.f32 1.0, %v5141_v43  ;;  %v5151_v60 = vpop.eup %5150  ;;  %v3323_v28 = vmul.f32 %v6967_v17, %v6766_v24 }
 0xa27   : > { %v3267_v38 = vmul.f32 0.5, %v3203_v19  ;;  %v3271_v34 = vmul.f32 0.5, %v3207_v63  ;;  %v3381_v26 = vpack.c.bf16 %v3325_v1, %v3321_v54  ;;  %v5153_v3 = vpop.eup %5152  ;;  %v3332_v12 = vmul.f32 %v3268_v55, %v6836_v16  ;;  %v7689_v16 = vld [vmem:[#allocation34_spill] sm:$0xff]  ;;  %v2766_v56 = vpop.f32.mrf.mxu0 }
 0xa28   : > { %4741 = vmatpush3.bf16.msra.mxu1 %v6575_v14  ;;  %v3386_v35 = vpack.c.bf16 %v3334_v45, %v3330_v36  ;;  %v3336_v53 = vmul.f32 %v3272_v61, %v6881_v37  ;;  %v3269_v49 = vmul.f32 0.5, %v3205_v27  ;;  %v3383_v18 = vpack.c.bf16 %v3327_v22, %v3323_v28 }
 0xa29   : > { %4734 = vmatprep.subr.bf16.mxu1 %v6585_v52  ;;  %v3265_v39 = vmul.f32 0.5, %v3201_v30  ;;  %v7011_v48 = vadd.f32 %v2762_v44, %v7687_v6  ;;  %v3215_v17 = vadd.f32 1.0, %v5151_v60  ;;  %v7014_v14 = vadd.f32 %v2649_v9, %v7688_v32  ;;  %v7694_v9 = vld [vmem:[#allocation32_spill] sm:$0xff]  ;;  %v7695_v44 = vld [vmem:[#allocation19_spill] sm:$0xff]  ;;  %v2768_v30 = vpop.f32.mrf.mxu0 }
 0xa2a   : > { %v5155_v24 = vpop.eup %5154  ;;  %v3388_v50 = vpack.c.bf16 %v3336_v53, %v3332_v12  ;;  %v3333_v37 = vmul.f32 %v3269_v49, %v7689_v16  ;;  %v7020_v19 = vadd.f32 %v2651_v4, %v7690_v51  ;;  %v3210_v59 = vadd.f32 1.0, %v5147_v40  ;;  %v2655_v40 = vpop.f32.mrf.mxu1  ;;  %v7696_v4 = vld [vmem:[#allocation20_spill] sm:$0xff] }
 0xa2b   : > { %3713 = vmatmul.mubr.bf16.gmra.mxu1 %v3381_v26  ;;  %v2835_v52 = vmul.f32 %v7011_v48, %v7011_v48  ;;  %v3331_v43 = vmul.f32 %v3267_v38, %v7691_v33  ;;  %v3335_v5 = vmul.f32 %v3271_v34, %v7692_v11  ;;  %v3211_v46 = vadd.f32 1.0, %v5145_v47  ;;  %v7697_v34 = vld [vmem:[#allocation21_spill] sm:$0xff] }
 0xa2c   : > { %3720 = vmatprep.mubr.bf16.mxu1 %v3386_v35  ;;  %v3214_v25 = vadd.f32 1.0, %v5153_v3  ;;  %4742 = vmatpush3.bf16.msra.mxu1 %v7693_v41  ;;  %v3329_v63 = vmul.f32 %v3265_v39, %v7694_v9  ;;  %v3274_v8 = vmul.f32 0.5, %v3210_v59  ;;  %v3212_v21 = vadd.f32 1.0, %v5149_v29  ;;  %v2659_v35 = vpop.f32.mrf.mxu1 }
 0xa2d   : > { %3810 = vmatmul.mubr.bf16.gmra.mxu0 %v3383_v18  ;;  %v2899_v2 = vmul.f32 %v2835_v52, %v7011_v48  ;;  %4735 = vmatprep.subr.bf16.mxu1 %v7695_v44  ;;  %v3279_v10 = vmul.f32 0.5, %v3215_v17  ;;  %v7029_v1 = vadd.f32 %v2764_v57, %v6704_v7  ;;  %v3216_v42 = vadd.f32 1.0, %v5155_v24  ;;  %v7698_v17 = vld [vmem:[#allocation22_spill] sm:$0xff] }
 0xa2e   : > { %3817 = vmatprep.mubr.bf16.mxu0 %v3388_v50  ;;  %v3278_v15 = vmul.f32 0.5, %v3214_v25  ;;  %v3385_v47 = vpack.c.bf16 %v3333_v37, %v3329_v63  ;;  %v2833_v22 = vmul.f32 %v7014_v14, %v7014_v14  ;;  %v2834_v54 = vmul.f32 %v7020_v19, %v7020_v19  ;;  %v7700_v37 = vld [vmem:[#allocation23_spill] sm:$0xff]  ;;  %v7702_v25 = vld [vmem:[#allocation38_spill] sm:$0xff] }
 0xa2f   : > { %v3276_v55 = vmul.f32 0.5, %v3212_v21  ;;  %v5157_v36 = vpop.eup %5156  ;;  %v2963_v29 = vmul.f32 0.044715, %v2899_v2  ;;  %v3338_v45 = vmul.f32 %v3274_v8, %v6915_v13  ;;  %v3280_v27 = vmul.f32 0.5, %v3216_v42  ;;  %v7703_v21 = vld [vmem:[#allocation24_spill] sm:$0xff] }
 0xa30   : > { %v3342_v61 = vmul.f32 %v3278_v15, %v6939_v0  ;;  %4743 = vmatpush3.bf16.msra.mxu1 %v7696_v4  ;;  %v3275_v60 = vmul.f32 0.5, %v3211_v46  ;;  %v3387_v28 = vpack.c.bf16 %v3335_v5, %v3331_v43  ;;  %v3209_v38 = vadd.f32 1.0, %v6990_v31  ;;  %v2772_v31 = vpop.f32.mrf.mxu0  ;;  %v2661_v43 = vpop.f32.mrf.mxu1  ;;  %v7701_v46 = vld [vmem:[#allocation36_spill] sm:$0xff] }
 0xa31   : > { %4736 = vmatprep.subr.bf16.mxu1 %v7697_v34  ;;  %v2836_v26 = vmul.f32 %v7029_v1, %v7029_v1  ;;  %v3340_v3 = vmul.f32 %v3276_v55, %v6920_v23  ;;  %v3344_v13 = vmul.f32 %v3280_v27, %v6950_v58  ;;  %v2897_v0 = vmul.f32 %v2833_v22, %v7014_v14  ;;  %v7699_v23 = vld [vmem:[#allocation37_spill] sm:$0xff] }
 0xa32   : > { %v3390_v57 = vpack.c.bf16 %v3342_v61, %v3338_v45  ;;  %v2898_v12 = vmul.f32 %v2834_v54, %v7020_v19  ;;  %v3213_v53 = vadd.f32 1.0, %v5157_v36  ;;  %v3273_v49 = vmul.f32 0.5, %v3209_v38  ;;  %v2774_v9 = vpop.f32.mrf.mxu0  ;;  %v2663_v55 = vpop.f32.mrf.mxu1 }
 0xa33   : > { %3721 = vmatmul.mubr.bf16.gmra.mxu1 %v3385_v47  ;;  %v3343_v18 = vmul.f32 %v3279_v10, %v6932_v20  ;;  %v3027_v39 = vadd.f32 %v2963_v29, %v7011_v48  ;;  %v3392_v24 = vpack.c.bf16 %v3344_v13, %v3340_v3  ;;  %v3339_v50 = vmul.f32 %v3275_v60, %v7699_v23  ;;  %v7705_v60 = vld [vmem:[#allocation26_spill] sm:$0xff] }
 0xa34   : > { %3728 = vmatprep.mubr.bf16.mxu1 %v3390_v57  ;;  %4744 = vmatpush3.bf16.msra.mxu1 %v7698_v17  ;;  %v3277_v58 = vmul.f32 0.5, %v3213_v53  ;;  %v7051_v16 = vadd.f32 %v2653_v62, %v7688_v32  ;;  %v2900_v52 = vmul.f32 %v2836_v26, %v7029_v1  ;;  %v7056_v59 = vadd.f32 %v2766_v56, %v7687_v6  ;;  %v2776_v45 = vpop.f32.mrf.mxu0  ;;  %v7706_v57 = vld [vmem:[#allocation27_spill] sm:$0xff]  ;;  %v7707_v17 = vld [vmem:[#allocation28_spill] sm:$0xff] }
 0xa35   : > { %3818 = vmatmul.mubr.bf16.gmra.mxu0 %v3387_v28  ;;  %4737 = vmatprep.subr.bf16.mxu1 %v7700_v37  ;;  %v7059_v20 = vadd.f32 %v2655_v40, %v7690_v51  ;;  %v7062_v33 = vadd.f32 %v2768_v30, %v6704_v7  ;;  %v2961_v11 = vmul.f32 0.044715, %v2897_v0  ;;  %v2962_v5 = vmul.f32 0.044715, %v2898_v12  ;;  %v7704_v40 = vld [vmem:[#allocation25_spill] sm:$0xff] }
 0xa36   : > { %3825 = vmatprep.mubr.bf16.mxu0 %v3392_v24  ;;  %v3337_v62 = vmul.f32 %v3273_v49, %v7701_v46  ;;  %v3341_v41 = vmul.f32 %v3277_v58, %v7702_v25  ;;  %v3091_v63 = vmul.f32 0.7978846, %v3027_v39  ;;  %v3391_v2 = vpack.c.bf16 %v3343_v18, %v3339_v50  ;;  %v2778_v49 = vpop.f32.mrf.mxu0 }
 0xa37   : > { %v2837_v56 = vmul.f32 %v7051_v16, %v7051_v16  ;;  %v2839_v8 = vmul.f32 %v7056_v59, %v7056_v59  ;;  %v2838_v10 = vmul.f32 %v7059_v20, %v7059_v20  ;;  %v7074_v15 = vadd.f32 %v2659_v35, %v7688_v32  ;;  %v2665_v35 = vpop.f32.mrf.mxu1 }
 0xa38   : > { %4745 = vmatpush3.bf16.msra.mxu1 %v7703_v21  ;;  %v3389_v44 = vpack.c.bf16 %v3341_v41, %v3337_v62  ;;  %v7077_v42 = vadd.f32 %v2772_v31, %v7687_v6  ;;  %v2840_v22 = vmul.f32 %v7062_v33, %v7062_v33  ;;  %v7084_v54 = vadd.f32 %v2661_v43, %v7690_v51  ;;  %v2782_v41 = vpop.f32.mrf.mxu0 }
 0xa39   : > { %4738 = vmatprep.subr.bf16.mxu1 %v7704_v40  ;;  %v2903_v47 = vmul.f32 %v2839_v8, %v7056_v59  ;;  %v3025_v30 = vadd.f32 %v2961_v11, %v7014_v14  ;;  %v2964_v36 = vmul.f32 0.044715, %v2900_v52  ;;  %5158 = vtanh.f32 %v3091_v63 }
 0xa3a   : > { %v2843_v29 = vmul.f32 %v7077_v42, %v7077_v42  ;;  %v2901_v61 = vmul.f32 %v2837_v56, %v7051_v16  ;;  %v7091_v4 = vadd.f32 %v2774_v9, %v6704_v7  ;;  %v3026_v28 = vadd.f32 %v2962_v5, %v7020_v19  ;;  %v2669_v5 = vpop.f32.mrf.mxu1 }
 0xa3b   : > { %3729 = vmatmul.mubr.bf16.gmra.mxu1 %v3389_v44  ;;  %v2967_v27 = vmul.f32 0.044715, %v2903_v47  ;;  %v2902_v38 = vmul.f32 %v2838_v10, %v7059_v20  ;;  %v2841_v34 = vmul.f32 %v7074_v15, %v7074_v15  ;;  %v2904_v3 = vmul.f32 %v2840_v22, %v7062_v33 }
 0xa3c   : > { %4746 = vmatpush3.bf16.msra.mxu1 %v7705_v60  ;;  %v2907_v26 = vmul.f32 %v2843_v29, %v7077_v42  ;;  %v2842_v13 = vmul.f32 %v7084_v54, %v7084_v54  ;;  %v3028_v0 = vadd.f32 %v2964_v36, %v7029_v1  ;;  %v3089_v31 = vmul.f32 0.7978846, %v3025_v30  ;;  %v2671_v22 = vpop.f32.mrf.mxu1  ;;  %v2784_v29 = vpop.f32.mrf.mxu0 }
 0xa3d   : > { %3826 = vmatmul.mubr.bf16.gmra.mxu0 %v3391_v2  ;;  %4739 = vmatprep.subr.bf16.mxu1 %v7706_v57  ;;  %v3031_v12 = vadd.f32 %v2967_v27, %v7056_v59  ;;  %v2965_v18 = vmul.f32 0.044715, %v2901_v61  ;;  %v2844_v39 = vmul.f32 %v7091_v4, %v7091_v4  ;;  %v7108_v24 = vadd.f32 %v2663_v55, %v7688_v32 }
 0xa3e   : > { %v2971_v53 = vmul.f32 0.044715, %v2907_v26  ;;  %v3090_v23 = vmul.f32 0.7978846, %v3026_v28  ;;  %v2966_v50 = vmul.f32 0.044715, %v2902_v38  ;;  %v2905_v58 = vmul.f32 %v2841_v34, %v7074_v15 }
 0xa3f   : > { %v2968_v37 = vmul.f32 0.044715, %v2904_v3  ;;  %v2906_v43 = vmul.f32 %v2842_v13, %v7084_v54  ;;  %v7115_v11 = vadd.f32 %v2776_v45, %v7687_v6  ;;  %v3095_v46 = vmul.f32 0.7978846, %v3031_v12 }
 0xa40   : > { %4747 = vmatpush3.bf16.msra.mxu1 %v7707_v17  ;;  %v3035_v52 = vadd.f32 %v2971_v53, %v7077_v42  ;;  %v2845_v62 = vmul.f32 %v7108_v24, %v7108_v24  ;;  %v7120_v25 = vadd.f32 %v2665_v35, %v7690_v51  ;;  %5160 = vtanh.f32 %v3089_v31  ;;  %v2673_v35 = vpop.f32.mrf.mxu1  ;;  %v2786_v17 = vpop.f32.mrf.mxu0 }
 0xa41   : > { %v3092_v9 = vmul.f32 0.7978846, %v3028_v0  ;;  %v3029_v63 = vadd.f32 %v2965_v18, %v7051_v16  ;;  %v2908_v2 = vmul.f32 %v2844_v39, %v7091_v4  ;;  %v3030_v56 = vadd.f32 %v2966_v50, %v7059_v20 }
 0xa42   : > { %v2969_v8 = vmul.f32 0.044715, %v2905_v58  ;;  %v2847_v21 = vmul.f32 %v7115_v11, %v7115_v11  ;;  %v2846_v44 = vmul.f32 %v7120_v25, %v7120_v25  ;;  %5162 = vtanh.f32 %v3090_v23 }
 0xa43   : > { %v3032_v10 = vadd.f32 %v2968_v37, %v7062_v33  ;;  %v3099_v40 = vmul.f32 0.7978846, %v3035_v52  ;;  %v2970_v47 = vmul.f32 0.044715, %v2906_v43  ;;  %5164 = vtanh.f32 %v3095_v46  ;;  %v2675_v46 = vpop.f32.mrf.mxu1 }
 0xa44   : > { %v2909_v55 = vmul.f32 %v2845_v62, %v7108_v24  ;;  %v2911_v30 = vmul.f32 %v2847_v21, %v7115_v11  ;;  %v7133_v36 = vadd.f32 %v2778_v49, %v6704_v7  ;;  %5166 = vtanh.f32 %v3092_v9 }
 0xa45   : > { %v3093_v45 = vmul.f32 0.7978846, %v3029_v63  ;;  %v2972_v61 = vmul.f32 0.044715, %v2908_v2  ;;  %v7136_v27 = vadd.f32 %v2669_v5, %v7688_v32  ;;  %v3094_v28 = vmul.f32 0.7978846, %v3030_v56 }
 0xa46   : > { %v5159_v60 = vpop.eup %5158  ;;  %v3033_v38 = vadd.f32 %v2969_v8, %v7074_v15  ;;  %v2975_v34 = vmul.f32 0.044715, %v2911_v30  ;;  %v2910_v26 = vmul.f32 %v2846_v44, %v7120_v25  ;;  %5168 = vtanh.f32 %v3099_v40 }
 0xa47   : > { %v2848_v57 = vmul.f32 %v7133_v36, %v7133_v36  ;;  %v7143_v3 = vadd.f32 %v2671_v22, %v7690_v51  ;;  %v7146_v13 = vadd.f32 %v2784_v29, %v6704_v7  ;;  %v3096_v0 = vmul.f32 0.7978846, %v3032_v10  ;;  %v2788_v29 = vpop.f32.mrf.mxu0 }
 0xa48   : > { %v3034_v12 = vadd.f32 %v2970_v47, %v7084_v54  ;;  %v2973_v53 = vmul.f32 0.044715, %v2909_v55  ;;  %v7150_v49 = vadd.f32 %v2782_v41, %v7687_v6  ;;  %v3219_v31 = vadd.f32 1.0, %v5159_v60 }
 0xa49   : > { %7708 = vst [vmem:[#allocation30_spill] sm:$0xff] %v7146_v13  ;;  %5170 = vtanh.f32 %v3093_v45  ;;  %v3036_v18 = vadd.f32 %v2972_v61, %v7091_v4  ;;  %v2849_v39 = vmul.f32 %v7136_v27, %v7136_v27  ;;  %v3097_v23 = vmul.f32 0.7978846, %v3033_v38  ;;  %v2679_v45 = vpop.f32.mrf.mxu1 }
 0xa4a   : > { %7709 = vst [vmem:[#allocation29_spill] sm:$0xff] %v7150_v49  ;;  %v3039_v50 = vadd.f32 %v2975_v34, %v7115_v11  ;;  %v2974_v58 = vmul.f32 0.044715, %v2910_v26  ;;  %v2850_v37 = vmul.f32 %v7143_v3, %v7143_v3  ;;  %5172 = vtanh.f32 %v3094_v28 }
 0xa4b   : > { %v2912_v52 = vmul.f32 %v2848_v57, %v7133_v36  ;;  %v2852_v43 = vmul.f32 %v7146_v13, %v7146_v13  ;;  %v7162_v5 = vadd.f32 %v2673_v35, %v7688_v32  ;;  %v3098_v62 = vmul.f32 0.7978846, %v3034_v12 }
 0xa4c   : > { %v3037_v41 = vadd.f32 %v2973_v53, %v7108_v24  ;;  %v2851_v9 = vmul.f32 %v7150_v49, %v7150_v49  ;;  %v7168_v63 = vadd.f32 %v2786_v17, %v7687_v6  ;;  %v3283_v2 = vmul.f32 0.5, %v3219_v31  ;;  %v2792_v17 = vpop.f32.mrf.mxu0 }
 0xa4d   : > { %5174 = vtanh.f32 %v3096_v0  ;;  %v3100_v56 = vmul.f32 0.7978846, %v3036_v18  ;;  %v2913_v8 = vmul.f32 %v2849_v39, %v7136_v27  ;;  %v7171_v21 = vpop.eup %5160  ;;  %v3103_v44 = vmul.f32 0.7978846, %v3039_v50 }
 0xa4e   : > { %7710 = vst [vmem:[#allocation34_spill] sm:$0xff] %v7168_v63  ;;  %v3038_v10 = vadd.f32 %v2974_v58, %v7120_v25  ;;  %v2914_v40 = vmul.f32 %v2850_v37, %v7143_v3  ;;  %v2853_v47 = vmul.f32 %v7162_v5, %v7162_v5  ;;  %5176 = vtanh.f32 %v3097_v23  ;;  %v2681_v23 = vpop.f32.mrf.mxu1 }
 0xa4f   : > { %v2976_v22 = vmul.f32 0.044715, %v2912_v52  ;;  %v2916_v55 = vmul.f32 %v2852_v43, %v7146_v13  ;;  %v2855_v30 = vmul.f32 %v7168_v63, %v7168_v63  ;;  %v7180_v61 = vpop.eup %5162  ;;  %5178 = vtanh.f32 %v3098_v62 }
 0xa50   : > { %v3101_v60 = vmul.f32 0.7978846, %v3037_v41  ;;  %v2915_v28 = vmul.f32 %v2851_v9, %v7150_v49  ;;  %v5165_v38 = vpop.eup %5164  ;;  %v7184_v34 = vmul.f32 %v3283_v2, %v7011_v48  ;;  %5180 = vtanh.f32 %v3100_v56 }
 0xa51   : > { %v2977_v26 = vmul.f32 0.044715, %v2913_v8  ;;  %v2917_v57 = vmul.f32 %v2853_v47, %v7162_v5  ;;  %v7187_v35 = vpop.eup %5166  ;;  %5182 = vtanh.f32 %v3103_v44  ;;  %v3102_v0 = vmul.f32 0.7978846, %v3038_v10 }
 0xa52   : > { %v2978_v12 = vmul.f32 0.044715, %v2914_v40  ;;  %v2919_v53 = vmul.f32 %v2855_v30, %v7168_v63  ;;  %v3040_v31 = vadd.f32 %v2976_v22, %v7133_v36  ;;  %v2980_v18 = vmul.f32 0.044715, %v2916_v55  ;;  %v2794_v22 = vpop.f32.mrf.mxu0 }
 0xa53   : > { %v7192_v39 = vadd.f32 %v2675_v46, %v7690_v51  ;;  %v7195_v48 = vadd.f32 %v2788_v29, %v6704_v7  ;;  %v5169_v50 = vpop.eup %5168  ;;  %v3223_v58 = vadd.f32 1.0, %v5165_v38  ;;  %5184 = vtanh.f32 %v3101_v60 }
 0xa54   : > { %v2979_v37 = vmul.f32 0.044715, %v2915_v28  ;;  %v7198_v52 = vadd.f32 %v2679_v45, %v7688_v32  ;;  %v3041_v43 = vadd.f32 %v2977_v26, %v7136_v27  ;;  %v2981_v62 = vmul.f32 0.044715, %v2917_v57 }
 0xa55   : > { %v2854_v41 = vmul.f32 %v7192_v39, %v7192_v39  ;;  %v2856_v46 = vmul.f32 %v7195_v48, %v7195_v48  ;;  %5186 = vtanh.f32 %v3102_v0  ;;  %v3042_v2 = vadd.f32 %v2978_v12, %v7143_v3  ;;  %v2683_v0 = vpop.f32.mrf.mxu1 }
 0xa56   : > { %v7205_v9 = vpop.eup %5170  ;;  %v2983_v56 = vmul.f32 0.044715, %v2919_v53  ;;  %v7209_v8 = vadd.f32 %v2681_v23, %v7690_v51  ;;  %v3227_v44 = vadd.f32 1.0, %v5169_v50  ;;  %v3104_v10 = vmul.f32 0.7978846, %v3040_v31 }
 0xa57   : > { %v3044_v40 = vadd.f32 %v2980_v18, %v7146_v13  ;;  %v2918_v47 = vmul.f32 %v2854_v41, %v7192_v39  ;;  %v7213_v55 = vpop.eup %5172  ;;  %v3043_v30 = vadd.f32 %v2979_v37, %v7150_v49  ;;  %v2920_v29 = vmul.f32 %v2856_v46, %v7195_v48 }
 0xa58   : > { %v2857_v45 = vmul.f32 %v7198_v52, %v7198_v52  ;;  %v2858_v60 = vmul.f32 %v7209_v8, %v7209_v8  ;;  %v3105_v28 = vmul.f32 0.7978846, %v3041_v43  ;;  %v3045_v38 = vadd.f32 %v2981_v62, %v7162_v5  ;;  %v2796_v43 = vpop.f32.mrf.mxu0 }
 0xa59   : > { %v2982_v26 = vmul.f32 0.044715, %v2918_v47  ;;  %v7223_v57 = vadd.f32 %v2792_v17, %v7687_v6  ;;  %v3287_v53 = vmul.f32 0.5, %v3223_v58  ;;  %v3106_v31 = vmul.f32 0.7978846, %v3042_v2 }
 0xa5a   : > { %v5175_v12 = vpop.eup %5174  ;;  %v3047_v18 = vadd.f32 %v2983_v56, %v7168_v63  ;;  %v2922_v23 = vmul.f32 %v2858_v60, %v7209_v8  ;;  %v3291_v50 = vmul.f32 0.5, %v3227_v44  ;;  %5188 = vtanh.f32 %v3104_v10 }
 0xa5b   : > { %v3108_v37 = vmul.f32 0.7978846, %v3044_v40  ;;  %v7228_v41 = vadd.f32 %v2794_v22, %v6704_v7  ;;  %v7230_v62 = vpop.eup %5176  ;;  %v2984_v46 = vmul.f32 0.044715, %v2920_v29  ;;  %v2921_v17 = vmul.f32 %v2857_v45, %v7198_v52 }
 0xa5c   : > { %v2986_v47 = vmul.f32 0.044715, %v2922_v23  ;;  %v7234_v58 = vadd.f32 %v2683_v0, %v7688_v32  ;;  %v7236_v2 = vpop.eup %5178  ;;  %5190 = vtanh.f32 %v3105_v28  ;;  %v3109_v56 = vmul.f32 0.7978846, %v3045_v38  ;;  %v2685_v32 = vpop.f32.mrf.mxu1 }
 0xa5d   : > { %v3046_v44 = vadd.f32 %v2982_v26, %v7192_v39  ;;  %v2859_v10 = vmul.f32 %v7223_v57, %v7223_v57  ;;  %v7241_v40 = vpop.eup %5180  ;;  %v7243_v22 = vmul.f32 0.7978846, %v3043_v30  ;;  %5192 = vtanh.f32 %v3106_v31  ;;  %v2798_v26 = vpop.f32.mrf.mxu0 }
 0xa5e   : > { %v3111_v29 = vmul.f32 0.7978846, %v3047_v18  ;;  %v2861_v45 = vmul.f32 %v7234_v58, %v7234_v58  ;;  %v5183_v60 = vpop.eup %5182  ;;  %v7248_v0 = vmul.f32 %v3287_v53, %v7056_v59  ;;  %5194 = vtanh.f32 %v3108_v37 }
 0xa5f   : > { %v3050_v28 = vadd.f32 %v2986_v47, %v7209_v8  ;;  %v2860_v38 = vmul.f32 %v7228_v41, %v7228_v41  ;;  %v7254_v30 = vmul.f32 %v3291_v50, %v7077_v42  ;;  %v3048_v31 = vadd.f32 %v2984_v46, %v7195_v48 }
 0xa60   : > { %v2985_v18 = vmul.f32 0.044715, %v2921_v17  ;;  %v2925_v23 = vmul.f32 %v2861_v45, %v7234_v58  ;;  %v7258_v49 = vpop.eup %5184  ;;  %5196 = vtanh.f32 %v3109_v56  ;;  %v3110_v59 = vmul.f32 0.7978846, %v3046_v44 }
 0xa61   : > { %v7261_v53 = vmul.f32 %v2859_v10, %v7223_v57  ;;  %v7264_v37 = vadd.f32 %v2685_v32, %v7690_v51  ;;  %v3231_v47 = vadd.f32 1.0, %v5183_v60  ;;  %5198 = vtanh.f32 %v3111_v29 }
 0xa62   : > { %v2989_v63 = vmul.f32 0.044715, %v2925_v23  ;;  %v7267_v42 = vadd.f32 %v2798_v26, %v6704_v7  ;;  %v5187_v50 = vpop.eup %5186  ;;  %v3114_v46 = vmul.f32 0.7978846, %v3050_v28  ;;  %v2924_v17 = vmul.f32 %v2860_v38, %v7228_v41 }
 0xa63   : > { %v2862_v56 = vmul.f32 %v7264_v37, %v7264_v37  ;;  %v3218_v44 = vadd.f32 1.0, %v7180_v61  ;;  %v3112_v10 = vmul.f32 0.7978846, %v3048_v31  ;;  %v3049_v45 = vadd.f32 %v2985_v18, %v7198_v52 }
 0xa64   : > { %v7275_v51 = vadd.f32 %v2796_v43, %v7687_v6  ;;  %v2864_v29 = vmul.f32 %v7267_v42, %v7267_v42  ;;  %5200 = vtanh.f32 %v3110_v59  ;;  %v3222_v32 = vadd.f32 1.0, %v7213_v55 }
 0xa65   : > { %v2926_v7 = vmul.f32 %v2862_v56, %v7264_v37  ;;  %v3282_v60 = vmul.f32 0.5, %v3218_v44  ;;  %v3053_v28 = vadd.f32 %v2989_v63, %v7234_v58  ;;  %v3220_v61 = vadd.f32 1.0, %v7187_v35 }
 0xa66   : > { %v2928_v38 = vmul.f32 %v2864_v29, %v7267_v42  ;;  %v3224_v26 = vadd.f32 1.0, %v5175_v12  ;;  %v3295_v31 = vmul.f32 0.5, %v3231_v47  ;;  %5202 = vtanh.f32 %v3114_v46 }
 0xa67   : > { %v2990_v6 = vmul.f32 0.044715, %v2926_v7  ;;  %v3286_v43 = vmul.f32 0.5, %v3222_v32  ;;  %v5189_v18 = vpop.eup %5188  ;;  %v3113_v23 = vmul.f32 0.7978846, %v3049_v45  ;;  %v2863_v59 = vmul.f32 %v7275_v51, %v7275_v51 }
 0xa68   : > { %v2988_v13 = vmul.f32 0.044715, %v2924_v17  ;;  %v3284_v56 = vmul.f32 0.5, %v3220_v61  ;;  %v3346_v63 = vmul.f32 %v3282_v60, %v7020_v19  ;;  %v3288_v29 = vmul.f32 0.5, %v3224_v26 }
 0xa69   : > { %v3054_v55 = vadd.f32 %v2990_v6, %v7264_v37  ;;  %v3350_v44 = vmul.f32 %v3286_v43, %v7059_v20  ;;  %v7289_v35 = vpop.eup %5190  ;;  %5204 = vtanh.f32 %v3112_v10  ;;  %v3117_v12 = vmul.f32 0.7978846, %v3053_v28 }
 0xa6a   : > { %v2992_v47 = vmul.f32 0.044715, %v2928_v38  ;;  %v3217_v46 = vadd.f32 1.0, %v7171_v21  ;;  %v5193_v45 = vpop.eup %5192  ;;  %v3348_v32 = vmul.f32 %v3284_v56, %v7029_v1  ;;  %v3352_v61 = vmul.f32 %v3288_v29, %v7062_v33 }
 0xa6b   : > { %v3118_v17 = vmul.f32 0.7978846, %v3054_v55  ;;  %v3394_v7 = vpack.c.bf16 %v3350_v44, %v3346_v63  ;;  %v7294_v6 = vpop.eup %5194  ;;  %5206 = vtanh.f32 %v3113_v23  ;;  %v3052_v19 = vadd.f32 %v2988_v13, %v7228_v41 }
 0xa6c   : > { %v3221_v20 = vadd.f32 1.0, %v7205_v9  ;;  %v3281_v60 = vmul.f32 0.5, %v3217_v46  ;;  %v2927_v10 = vmul.f32 %v2863_v59, %v7275_v51  ;;  %v3396_v21 = vpack.c.bf16 %v3352_v61, %v3348_v32 }
 0xa6d   : > { %5208 = vtanh.f32 %v3118_v17  ;;  %3736 = vmatprep.mubr.bf16.mxu1 %v3394_v7  ;;  %v3226_v28 = vadd.f32 1.0, %v7236_v2  ;;  %v5197_v38 = vpop.eup %5196  ;;  %v3056_v1 = vadd.f32 %v2992_v47, %v7267_v42  ;;  %v3395_v26 = vpack.c.bf16 %v7248_v0, %v7184_v34 }
 0xa6e   : > { %5210 = vtanh.f32 %v3117_v12  ;;  %v3285_v33 = vmul.f32 0.5, %v3221_v20  ;;  %v7303_v43 = vpop.eup %5198  ;;  %3833 = vmatprep.mubr.bf16.mxu0 %v3396_v21  ;;  %v3230_v13 = vadd.f32 1.0, %v5187_v50  ;;  %v3228_v23 = vadd.f32 1.0, %v7241_v40 }
 0xa6f   : > { %v3290_v9 = vmul.f32 0.5, %v3226_v28  ;;  %v3232_v59 = vadd.f32 1.0, %v5189_v18  ;;  %v3345_v56 = vmul.f32 %v3281_v60, %v7014_v14  ;;  %3834 = vmatmul.mubr.bf16.gmra.mxu0 %v3395_v26  ;;  %v3225_v55 = vadd.f32 1.0, %v7230_v62 }
 0xa70   : > { %v3349_v2 = vmul.f32 %v3285_v33, %v7051_v16  ;;  %v3229_v63 = vadd.f32 1.0, %v7258_v49  ;;  %v2991_v44 = vmul.f32 0.044715, %v2927_v10  ;;  %v3294_v29 = vmul.f32 0.5, %v3230_v13 }
 0xa71   : > { %v3292_v34 = vmul.f32 0.5, %v3228_v23  ;;  %v3296_v0 = vmul.f32 0.5, %v3232_v59  ;;  %v5201_v12 = vpop.eup %5200  ;;  %v3359_v50 = vmul.f32 %v3295_v31, %v7115_v11  ;;  %v3120_v47 = vmul.f32 0.7978846, %v3056_v1 }
 0xa72   : > { %v3393_v46 = vpack.c.bf16 %v3349_v2, %v3345_v56  ;;  %v3293_v40 = vmul.f32 0.5, %v3229_v63  ;;  %v3354_v18 = vmul.f32 %v3290_v9, %v7084_v54  ;;  %v3358_v14 = vmul.f32 %v3294_v29, %v7120_v25 }
 0xa73   : > { %v3356_v16 = vmul.f32 %v3292_v34, %v7091_v4  ;;  %v3360_v62 = vmul.f32 %v3296_v0, %v7133_v36  ;;  %v5203_v17 = vpop.eup %5202  ;;  %v2987_v49 = vmul.f32 0.044715, %v7261_v53  ;;  %v3116_v7 = vmul.f32 0.7978846, %v3052_v19 }
 0xa74   : > { %3737 = vmatmul.mubr.bf16.gmra.mxu1 %v3393_v46  ;;  %v3289_v32 = vmul.f32 0.5, %v3225_v55  ;;  %v3234_v61 = vadd.f32 1.0, %v5193_v45  ;;  %v3055_v11 = vadd.f32 %v2991_v44, %v7275_v51  ;;  %v3398_v31 = vpack.c.bf16 %v3358_v14, %v3354_v18 }
 0xa75   : > { %v3400_v20 = vpack.c.bf16 %v3360_v62, %v3356_v16  ;;  %v3238_v60 = vadd.f32 1.0, %v5201_v12  ;;  %v3357_v54 = vmul.f32 %v3293_v40, %v7108_v24  ;;  %v3399_v25 = vpack.c.bf16 %v3359_v50, %v7254_v30 }
 0xa76   : > { %v3298_v10 = vmul.f32 0.5, %v3234_v61  ;;  %v3237_v4 = vadd.f32 1.0, %v5197_v38  ;;  %v5205_v21 = vpop.eup %5204  ;;  %5212 = vtanh.f32 %v3120_v47  ;;  %3744 = vmatprep.mubr.bf16.mxu1 %v3398_v31  ;;  %v3242_v53 = vadd.f32 1.0, %v5203_v17  ;;  %v7711_v17 = vld [vmem:[#allocation30_spill] sm:$0xff] }
 0xa77   : > { %3841 = vmatprep.mubr.bf16.mxu0 %v3400_v20  ;;  %v3302_v36 = vmul.f32 0.5, %v3238_v60  ;;  %5214 = vtanh.f32 %v7243_v22  ;;  %v3051_v45 = vadd.f32 %v2987_v49, %v7223_v57  ;;  %v3353_v19 = vmul.f32 %v3289_v32, %v7074_v15 }
 0xa78   : > { %3842 = vmatmul.mubr.bf16.gmra.mxu0 %v3399_v25  ;;  %v3233_v28 = vadd.f32 1.0, %v7289_v35  ;;  %v5207_v24 = vpop.eup %5206  ;;  %5216 = vtanh.f32 %v3116_v7  ;;  %v3362_v30 = vmul.f32 %v3298_v10, %v7143_v3  ;;  %v3119_v33 = vmul.f32 0.7978846, %v3055_v11 }
 0xa79   : > { %v3366_v38 = vmul.f32 %v3302_v36, %v7192_v39  ;;  %v3397_v26 = vpack.c.bf16 %v3357_v54, %v3353_v19  ;;  %v3301_v13 = vmul.f32 0.5, %v3237_v4  ;;  %v3306_v59 = vmul.f32 0.5, %v3242_v53  ;;  %v7713_v4 = vld [vmem:[#allocation29_spill] sm:$0xff] }
 0xa7a   : > { %v5209_v1 = vpop.eup %5208  ;;  %v3115_v56 = vmul.f32 0.7978846, %v3051_v45  ;;  %v3297_v15 = vmul.f32 0.5, %v3233_v28  ;;  %5218 = vtanh.f32 %v3119_v33  ;;  %v3240_v63 = vadd.f32 1.0, %v5205_v21 }
 0xa7b   : > { %v5211_v9 = vpop.eup %5210  ;;  %v3402_v23 = vpack.c.bf16 %v3366_v38, %v3362_v30  ;;  %v3246_v22 = vadd.f32 1.0, %v5209_v1  ;;  %v3365_v35 = vmul.f32 %v3301_v13, %v7162_v5  ;;  %v3370_v3 = vmul.f32 %v3306_v59, %v7209_v8 }
 0xa7c   : > { %3745 = vmatmul.mubr.bf16.gmra.mxu1 %v3397_v26  ;;  %v3245_v55 = vadd.f32 1.0, %v5211_v9  ;;  %5220 = vtanh.f32 %v3115_v56  ;;  %v3361_v44 = vmul.f32 %v3297_v15, %v7136_v27  ;;  %v3241_v29 = vadd.f32 1.0, %v5207_v24 }
 0xa7d   : > { %3752 = vmatprep.mubr.bf16.mxu1 %v3402_v23  ;;  %v3310_v2 = vmul.f32 0.5, %v3246_v22  ;;  %v3236_v0 = vadd.f32 1.0, %v7294_v6  ;;  %v3304_v47 = vmul.f32 0.5, %v3240_v63 }
 0xa7e   : > { %v3401_v12 = vpack.c.bf16 %v3365_v35, %v3361_v44  ;;  %v3309_v50 = vmul.f32 0.5, %v3245_v55  ;;  %v3305_v40 = vmul.f32 0.5, %v3241_v29 }
 0xa7f   : > { %v3374_v39 = vmul.f32 %v3310_v2, %v7264_v37  ;;  %v3300_v18 = vmul.f32 0.5, %v3236_v0  ;;  %v3239_v37 = vadd.f32 1.0, %v7303_v43  ;;  %v3368_v27 = vmul.f32 %v3304_v47, %v7195_v48 }
 0xa80   : > { %v3373_v14 = vmul.f32 %v3309_v50, %v7234_v58  ;;  %v3369_v6 = vmul.f32 %v3305_v40, %v7198_v52  ;;  %v7712_v58 = vld [vmem:[#allocation34_spill] sm:$0xff]  ;;  %v7715_v40 = vld [vmem:[#allocation3_spill] sm:$0xff] }
 0xa81   : > { %v3406_v34 = vpack.c.bf16 %v3374_v39, %v3370_v3  ;;  %v3364_v49 = vmul.f32 %v3300_v18, %v7711_v17  ;;  %v3303_v32 = vmul.f32 0.5, %v3239_v37  ;;  %v7714_v39 = vld [vmem:[#allocation2_spill] sm:$0xff]  ;;  %v7716_v17 = vld [vmem:[#allocation5_spill] sm:$0xff] }
 0xa82   : > { %v3405_v61 = vpack.c.bf16 %v3373_v14, %v3369_v6 }
 0xa83   : > { %v5213_v46 = vpop.eup %5212  ;;  %v3404_v31 = vpack.c.bf16 %v3368_v27, %v3364_v49  ;;  %v3367_v25 = vmul.f32 %v3303_v32, %v7712_v58 }
 0xa84   : > { %3753 = vmatmul.mubr.bf16.gmra.mxu1 %v3401_v12  ;;  %v5215_v5 = vpop.eup %5214  ;;  %v3248_v16 = vadd.f32 1.0, %v5213_v46 }
 0xa85   : > { %3760 = vmatprep.mubr.bf16.mxu1 %v3406_v34  ;;  %v5217_v8 = vpop.eup %5216  ;;  %v3235_v62 = vadd.f32 1.0, %v5215_v5 }
 0xa86   : > { %v3244_v7 = vadd.f32 1.0, %v5217_v8  ;;  %v3312_v20 = vmul.f32 0.5, %v3248_v16 }
 0xa87   : > { %v5219_v11 = vpop.eup %5218  ;;  %v3299_v60 = vmul.f32 0.5, %v3235_v62 }
 0xa88   : > { %v3308_v43 = vmul.f32 0.5, %v3244_v7  ;;  %v3247_v48 = vadd.f32 1.0, %v5219_v11  ;;  %v3376_v10 = vmul.f32 %v3312_v20, %v7267_v42  ;;  %v7344_v42 = vld [vmem:[%s7601_s11] ss:$0 sm:$0xff] }
 0xa89   : > { %v5221_v54 = vpop.eup %5220  ;;  %v3363_v52 = vmul.f32 %v3299_v60, %v7713_v4 }
 0xa8a   : > { %v3243_v21 = vadd.f32 1.0, %v5221_v54  ;;  %v3372_v36 = vmul.f32 %v3308_v43, %v7228_v41  ;;  %v3311_v45 = vmul.f32 0.5, %v3247_v48  ;;  %v7717_v43 = vld [vmem:[#allocation4_spill] sm:$0xff] }
 0xa8b   : > { %v3403_v53 = vpack.c.bf16 %v3367_v25, %v3363_v52 }
 0xa8c   : > { %3761 = vmatmul.mubr.bf16.gmra.mxu1 %v3405_v61  ;;  %v3408_v19 = vpack.c.bf16 %v3376_v10, %v3372_v36  ;;  %v3307_v28 = vmul.f32 0.5, %v3243_v21  ;;  %v3375_v24 = vmul.f32 %v3311_v45, %v7275_v51  ;;  %v7718_v45 = vld [vmem:[#allocation7_spill] sm:$0xff] }
 0xa8d   : > { %3849 = vmatprep.mubr.bf16.mxu1 %v3404_v31 }
 0xa8e   : > { %v3371_v30 = vmul.f32 %v3307_v28, %v7223_v57 }
 0xa90   : > { %v3407_v38 = vpack.c.bf16 %v3375_v24, %v3371_v30 }
 0xa94   : > { %3850 = vmatmul.mubr.bf16.vlgmr.msra.gmra.mxu1 %v3403_v53 }
 0xa95   : > { %3857 = vmatprep.mubr.bf16.mxu1 %v3408_v19 }
 0xa9c   : > { %3858 = vmatmul.mubr.bf16.gmra.mxu1 %v3407_v38 }
 0xae3   : > { %v4428_v1 = vpop.f32.mrf.mxu1 }
 0xae5   : > { %v4492_v33 = vpop.f32.mrf.mxu0  ;;  %v4429_v41 = vpop.f32.mrf.mxu1 }
 0xae6   : > { %v4430_v26 = vadd.f32 %v4429_v41, %v4428_v1  ;;  %v7719_v41 = vld [vmem:[#allocation6_spill] sm:$0xff] }
 0xae7   : > { %v4493_v13 = vpop.f32.mrf.mxu0  ;;  %v4431_v9 = vpop.f32.mrf.mxu1 }
 0xae8   : > { %v3707_v23 = vadd.f32 %v4430_v26, %v7344_v42  ;;  %v4494_v22 = vadd.f32 %v4493_v13, %v4492_v33 }
 0xae9   : > { %v4495_v59 = vpop.f32.mrf.mxu0  ;;  %v4432_v51 = vpop.f32.mrf.mxu1 }
 0xaea   : > { %v3804_v56 = vadd.f32 %v4494_v22, %v3707_v23  ;;  %v4433_v57 = vadd.f32 %v4432_v51, %v4431_v9 }
 0xaeb   : > { %v4496_v15 = vpop.f32.mrf.mxu0  ;;  %v4434_v2 = vpop.f32.mrf.mxu1 }
 0xaec   : > { %v3710_v35 = vadd.f32 %v4433_v57, %v7344_v42  ;;  %v4497_v55 = vadd.f32 %v4496_v15, %v4495_v59  ;;  %v7349_v63 = vadd.f32 %v3804_v56, %v7714_v39  ;;  %v7720_v15 = vld [vmem:[#allocation9_spill] sm:$0xff] }
 0xaed   : > { %v4498_v3 = vpop.f32.mrf.mxu0  ;;  %v4435_v44 = vpop.f32.mrf.mxu1 }
 0xaee   : > { %v3807_v29 = vadd.f32 %v4497_v55, %v3710_v35  ;;  %v4436_v34 = vadd.f32 %v4435_v44, %v4434_v2  ;;  %3884 = vadd.xlane.f32.xlu0 %v7349_v63  ;;  %v7721_v55 = vld [vmem:[#allocation8_spill] sm:$0xff] }
 0xaef   : > { %v4499_v0 = vpop.f32.mrf.mxu0  ;;  %v4437_v12 = vpop.f32.mrf.mxu1 }
 0xaf0   : > { %v3715_v50 = vadd.f32 %v4436_v34, %v7344_v42  ;;  %v4500_v47 = vadd.f32 %v4499_v0, %v4498_v3  ;;  %v7354_v5 = vadd.f32 %v3807_v29, %v7715_v40 }
 0xaf1   : > { %v4501_v46 = vpop.f32.mrf.mxu0  ;;  %v4438_v18 = vpop.f32.mrf.mxu1 }
 0xaf2   : > { %v3812_v8 = vadd.f32 %v4500_v47, %v3715_v50  ;;  %v4439_v37 = vadd.f32 %v4438_v18, %v4437_v12  ;;  %3886 = vadd.xlane.f32.xlu1 %v7354_v5 }
 0xaf3   : > { %v4502_v14 = vpop.f32.mrf.mxu0  ;;  %v4440_v27 = vpop.f32.mrf.mxu1 }
 0xaf4   : > { %v3718_v16 = vadd.f32 %v4439_v37, %v7344_v42  ;;  %v4503_v62 = vadd.f32 %v4502_v14, %v4501_v46  ;;  %v7359_v49 = vadd.f32 %v3812_v8, %v7716_v17  ;;  %v7722_v17 = vld [vmem:[#allocation10_spill] sm:$0xff] }
 0xaf5   : > { %v4504_v6 = vpop.f32.mrf.mxu0  ;;  %v4441_v7 = vpop.f32.mrf.mxu1 }
 0xaf6   : > { %v3815_v32 = vadd.f32 %v4503_v62, %v3718_v16  ;;  %v4442_v61 = vadd.f32 %v4441_v7, %v4440_v27  ;;  %3888 = vadd.xlane.f32.xlu0 %v7359_v49 }
 0xaf7   : > { %v4505_v11 = vpop.f32.mrf.mxu0  ;;  %v4443_v31 = vpop.f32.mrf.mxu1 }
 0xaf8   : > { %v3723_v20 = vadd.f32 %v4442_v61, %v7344_v42  ;;  %v4506_v60 = vadd.f32 %v4505_v11, %v4504_v6  ;;  %v7364_v58 = vadd.f32 %v3815_v32, %v7717_v43  ;;  %v7723_v43 = vld [vmem:[#allocation11_spill] sm:$0xff] }
 0xaf9   : > { %v4507_v54 = vpop.f32.mrf.mxu0  ;;  %v4444_v25 = vpop.f32.mrf.mxu1 }
 0xafa   : > { %v3820_v48 = vadd.f32 %v4506_v60, %v3723_v20  ;;  %v4445_v10 = vadd.f32 %v4444_v25, %v4443_v31  ;;  %3890 = vadd.xlane.f32.xlu1 %v7364_v58 }
 0xafb   : > { %v4508_v4 = vpop.f32.mrf.mxu0  ;;  %v4446_v36 = vpop.f32.mrf.mxu1 }
 0xafc   : > { %v3726_v52 = vadd.f32 %v4445_v10, %v7344_v42  ;;  %v4509_v21 = vadd.f32 %v4508_v4, %v4507_v54  ;;  %v7369_v19 = vadd.f32 %v3820_v48, %v7718_v45  ;;  %v7724_v45 = vld [vmem:[#allocation13_spill] sm:$0xff] }
 0xafd   : > { %v4510_v53 = vpop.f32.mrf.mxu0  ;;  %v4447_v24 = vpop.f32.mrf.mxu1 }
 0xafe   : > { %v3823_v28 = vadd.f32 %v4509_v21, %v3726_v52  ;;  %3892 = vadd.xlane.f32.xlu0 %v7369_v19  ;;  %v4448_v38 = vadd.f32 %v4447_v24, %v4446_v36 }
 0xaff   : > { %v4511_v30 = vpop.f32.mrf.mxu0  ;;  %v4449_v1 = vpop.f32.mrf.mxu1 }
 0xb00   : > { %v7373_v26 = vadd.f32 %v3823_v28, %v7719_v41  ;;  %v3731_v13 = vadd.f32 %v4448_v38, %v7344_v42  ;;  %v4512_v9 = vadd.f32 %v4511_v30, %v4510_v53 }
 0xb01   : > { %v4513_v33 = vpop.f32.mrf.mxu0  ;;  %v4450_v23 = vpop.f32.mrf.mxu1 }
 0xb02   : > { %3894 = vadd.xlane.f32.xlu1 %v7373_v26  ;;  %v3828_v59 = vadd.f32 %v4512_v9, %v3731_v13  ;;  %v4451_v51 = vadd.f32 %v4450_v23, %v4449_v1  ;;  %v7725_v1 = vld [vmem:[#allocation12_spill] sm:$0xff] }
 0xb03   : > { %v4514_v22 = vpop.f32.mrf.mxu0 }
 0xb04   : > { %v3734_v56 = vadd.f32 %v4451_v51, %v7344_v42  ;;  %v4515_v57 = vadd.f32 %v4514_v22, %v4513_v33  ;;  %v7379_v2 = vadd.f32 %v3828_v59, %v7720_v15 }
 0xb06   : > { %v3831_v35 = vadd.f32 %v4515_v57, %v3734_v56  ;;  %3896 = vadd.xlane.f32.xlu0 %v7379_v2 }
 0xb08   : > { %v7383_v3 = vadd.f32 %v3831_v35, %v7721_v55 }
 0xb0a   : > { %3898 = vadd.xlane.f32.xlu1 %v7383_v3 }
 0xb2f   : > { %v4516_v39 = vpop.f32.mrf.mxu0 }
 0xb31   : > { %v4517_v44 = vpop.f32.mrf.mxu0 }
 0xb32   : > { %v4518_v18 = vadd.f32 %v4517_v44, %v4516_v39 }
 0xb33   : > { %v4519_v34 = vpop.f32.mrf.mxu0 }
 0xb34   : > { %v4452_v29 = vpop.f32.mrf.mxu1 }
 0xb35   : > { %v4520_v12 = vpop.f32.mrf.mxu0 }
 0xb36   : > { %v4453_v0 = vpop.f32.mrf.mxu1  ;;  %v4521_v6 = vadd.f32 %v4520_v12, %v4519_v34  ;;  %v7726_v12 = vld [vmem:[#allocation15_spill] sm:$0xff] }
 0xb37   : > { %v4454_v50 = vadd.f32 %v4453_v0, %v4452_v29 }
 0xb38   : > { %v4455_v47 = vpop.f32.mrf.mxu1  ;;  %v4522_v46 = vpop.f32.mrf.mxu0 }
 0xb39   : > { %v3739_v40 = vadd.f32 %v4454_v50, %v7344_v42 }
 0xb3a   : > { %v4456_v8 = vpop.f32.mrf.mxu1  ;;  %v4523_v37 = vpop.f32.mrf.mxu0 }
 0xb3b   : > { %v3836_v14 = vadd.f32 %v4518_v18, %v3739_v40  ;;  %v4457_v27 = vadd.f32 %v4456_v8, %v4455_v47  ;;  %v4524_v54 = vadd.f32 %v4523_v37, %v4522_v46 }
 0xb3c   : > { %v4458_v16 = vpop.f32.mrf.mxu1  ;;  %v4525_v61 = vpop.f32.mrf.mxu0 }
 0xb3d   : > { %v3742_v62 = vadd.f32 %v4457_v27, %v7344_v42  ;;  %v7389_v7 = vadd.f32 %v3836_v14, %v7722_v17  ;;  %v7727_v14 = vld [vmem:[#allocation14_spill] sm:$0xff] }
 0xb3e   : > { %v4459_v32 = vpop.f32.mrf.mxu1  ;;  %v4526_v10 = vpop.f32.mrf.mxu0 }
 0xb3f   : > { %v3839_v11 = vadd.f32 %v4521_v6, %v3742_v62  ;;  %v4460_v31 = vadd.f32 %v4459_v32, %v4458_v16  ;;  %3900 = vadd.xlane.f32.xlu0 %v7389_v7  ;;  %v4527_v53 = vadd.f32 %v4526_v10, %v4525_v61  ;;  %v7728_v61 = vld [vmem:[#allocation17_spill] sm:$0xff] }
 0xb40   : > { %v4461_v20 = vpop.f32.mrf.mxu1 }
 0xb41   : > { %v3747_v60 = vadd.f32 %v4460_v31, %v7344_v42  ;;  %v7394_v25 = vadd.f32 %v3839_v11, %v7723_v43 }
 0xb42   : > { %v4462_v48 = vpop.f32.mrf.mxu1 }
 0xb43   : > { %v3844_v4 = vadd.f32 %v4524_v54, %v3747_v60  ;;  %v4463_v52 = vadd.f32 %v4462_v48, %v4461_v20  ;;  %3902 = vadd.xlane.f32.xlu1 %v7394_v25  ;;  %v7729_v20 = vld [vmem:[#allocation16_spill] sm:$0xff] }
 0xb44   : > { %v4464_v21 = vpop.f32.mrf.mxu1 }
 0xb45   : > { %v3750_v36 = vadd.f32 %v4463_v52, %v7344_v42  ;;  %v7399_v28 = vadd.f32 %v3844_v4, %v7724_v45 }
 0xb46   : > { %v4465_v24 = vpop.f32.mrf.mxu1 }
 0xb47   : > { %v3847_v30 = vadd.f32 %v4527_v53, %v3750_v36  ;;  %3904 = vadd.xlane.f32.xlu0 %v7399_v28  ;;  %v4466_v59 = vadd.f32 %v4465_v24, %v4464_v21 }
 0xb48   : > { %v4467_v38 = vpop.f32.mrf.mxu1 }
 0xb49   : > { %v7403_v33 = vadd.f32 %v3847_v30, %v7725_v1  ;;  %v3755_v57 = vadd.f32 %v4466_v59, %v7344_v42 }
 0xb4a   : > { %v4468_v41 = vpop.f32.mrf.mxu1 }
 0xb4b   : > { %3906 = vadd.xlane.f32.xlu1 %v7403_v33  ;;  %v4469_v15 = vadd.f32 %v4468_v41, %v4467_v38 }
 0xb4c   : > { %v4470_v13 = vpop.f32.mrf.mxu1 }
 0xb4d   : > { %v3758_v29 = vadd.f32 %v4469_v15, %v7344_v42 }
 0xb4e   : > { %v4471_v9 = vpop.f32.mrf.mxu1 }
 0xb4f   : > { %v4472_v34 = vadd.f32 %v4471_v9, %v4470_v13 }
 0xb50   : > { %v4473_v23 = vpop.f32.mrf.mxu1 }
 0xb51   : > { %v3763_v18 = vadd.f32 %v4472_v34, %v7344_v42 }
 0xb52   : > { %v4474_v22 = vpop.f32.mrf.mxu1 }
 0xb53   : > { %v4475_v8 = vadd.f32 %v4474_v22, %v4473_v23 }
 0xb54   : > { %v4528_v51 = vpop.f32.mrf.mxu1 }
 0xb55   : > { %v3766_v17 = vadd.f32 %v4475_v8, %v7344_v42 }
 0xb56   : > { %v4529_v56 = vpop.f32.mrf.mxu1 }
 0xb57   : > { %v4530_v35 = vadd.f32 %v4529_v56, %v4528_v51 }
 0xb58   : > { %v4531_v55 = vpop.f32.mrf.mxu1 }
 0xb59   : > { %v3852_v39 = vadd.f32 %v4530_v35, %v3755_v57 }
 0xb5a   : > { %v4532_v44 = vpop.f32.mrf.mxu1 }
 0xb5b   : > { %v4533_v0 = vadd.f32 %v4532_v44, %v4531_v55  ;;  %v7409_v50 = vadd.f32 %v3852_v39, %v7726_v12 }
 0xb5c   : > { %v4534_v47 = vpop.f32.mrf.mxu1 }
 0xb5d   : > { %v3855_v46 = vadd.f32 %v4533_v0, %v3758_v29  ;;  %3908 = vadd.xlane.f32.xlu0 %v7409_v50 }
 0xb5e   : > { %v4535_v40 = vpop.f32.mrf.mxu1 }
 0xb5f   : > { %v4536_v37 = vadd.f32 %v4535_v40, %v4534_v47  ;;  %v7414_v27 = vadd.f32 %v3855_v46, %v7727_v14 }
 0xb60   : > { %v4537_v16 = vpop.f32.mrf.mxu1 }
 0xb61   : > { %v3860_v62 = vadd.f32 %v4536_v37, %v3763_v18  ;;  %3910 = vadd.xlane.f32.xlu1 %v7414_v27 }
 0xb62   : > { %v4538_v6 = vpop.f32.mrf.mxu1 }
 0xb63   : > { %v4539_v32 = vadd.f32 %v4538_v6, %v4537_v16  ;;  %v7419_v11 = vadd.f32 %v3860_v62, %v7728_v61 }
 0xb65   : > { %v3863_v31 = vadd.f32 %v4539_v32, %v3766_v17  ;;  %3912 = vadd.xlane.f32.xlu0 %v7419_v11 }
 0xb67   : > { %v7423_v60 = vadd.f32 %v3863_v31, %v7729_v20 }
 0xb69   : > { %3914 = vadd.xlane.f32.xlu1 %v7423_v60 }
 0xb77   : > { %v3885_v54 = vpop.xlane.xlu0 %3884 }
 0xb78   : > { %v3916_v43 = vmul.f32 0.0078125, %v3885_v54 }
 0xb7a   : > { %v7427_v48 = vsub.f32 %v7349_v63, %v3916_v43 }
 0xb7b   : > { %v3887_v10 = vpop.xlane.xlu1 %3886 }
 0xb7c   : > { %v3917_v4 = vmul.f32 0.0078125, %v3887_v10  ;;  %v3948_v42 = vmul.f32 %v7427_v48, %v7427_v48 }
 0xb7e   : > { %v7432_v52 = vsub.f32 %v7354_v5, %v3917_v4  ;;  %3964 = vadd.xlane.f32.xlu0 %v3948_v42 }
 0xb7f   : > { %v3889_v21 = vpop.xlane.xlu0 %3888 }
 0xb80   : > { %v3918_v36 = vmul.f32 0.0078125, %v3889_v21  ;;  %v3949_v53 = vmul.f32 %v7432_v52, %v7432_v52 }
 0xb82   : > { %v7437_v45 = vsub.f32 %v7359_v49, %v3918_v36  ;;  %3966 = vadd.xlane.f32.xlu1 %v3949_v53 }
 0xb83   : > { %v3891_v63 = vpop.xlane.xlu1 %3890 }
 0xb84   : > { %v3919_v24 = vmul.f32 0.0078125, %v3891_v63  ;;  %v3950_v30 = vmul.f32 %v7437_v45, %v7437_v45 }
 0xb86   : > { %v7442_v38 = vsub.f32 %v7364_v58, %v3919_v24  ;;  %3968 = vadd.xlane.f32.xlu0 %v3950_v30 }
 0xb87   : > { %v3893_v5 = vpop.xlane.xlu0 %3892 }
 0xb88   : > { %v3920_v1 = vmul.f32 0.0078125, %v3893_v5  ;;  %v3951_v41 = vmul.f32 %v7442_v38, %v7442_v38 }
 0xb8a   : > { %v7447_v13 = vsub.f32 %v7369_v19, %v3920_v1  ;;  %3970 = vadd.xlane.f32.xlu1 %v3951_v41 }
 0xb8b   : > { %v3895_v49 = vpop.xlane.xlu1 %3894 }
 0xb8c   : > { %v3921_v9 = vmul.f32 0.0078125, %v3895_v49  ;;  %v3952_v23 = vmul.f32 %v7447_v13, %v7447_v13 }
 0xb8e   : > { %v7452_v22 = vsub.f32 %v7373_v26, %v3921_v9  ;;  %3972 = vadd.xlane.f32.xlu0 %v3952_v23  ;;  %v7509_v9 = vld [vmem:[%s7602_s12] ss:$0 sm:$0xff] }
 0xb8f   : > { %v3897_v58 = vpop.xlane.xlu0 %3896 }
 0xb90   : > { %v3953_v59 = vmul.f32 %v7452_v22, %v7452_v22  ;;  %v3922_v51 = vmul.f32 0.0078125, %v3897_v58 }
 0xb92   : > { %3974 = vadd.xlane.f32.xlu1 %v3953_v59  ;;  %v7457_v56 = vsub.f32 %v7379_v2, %v3922_v51  ;;  %v7515_v59 = vld [vmem:[%s7603_s13] ss:$0 sm:$0xff] }
 0xb93   : > { %v3899_v19 = vpop.xlane.xlu1 %3898 }
 0xb94   : > { %v3923_v57 = vmul.f32 0.0078125, %v3899_v19  ;;  %v3954_v15 = vmul.f32 %v7457_v56, %v7457_v56 }
 0xb96   : > { %v7462_v35 = vsub.f32 %v7383_v3, %v3923_v57  ;;  %3976 = vadd.xlane.f32.xlu0 %v3954_v15 }
 0xb98   : > { %v3955_v26 = vmul.f32 %v7462_v35, %v7462_v35 }
 0xb9a   : > { %3978 = vadd.xlane.f32.xlu1 %v3955_v26 }
 0xbc8   : > { %v3901_v55 = vpop.xlane.xlu0 %3900 }
 0xbc9   : > { %v3924_v39 = vmul.f32 0.0078125, %v3901_v55 }
 0xbcb   : > { %v7467_v44 = vsub.f32 %v7389_v7, %v3924_v39 }
 0xbcc   : > { %v3903_v2 = vpop.xlane.xlu1 %3902 }
 0xbcd   : > { %v3925_v29 = vmul.f32 0.0078125, %v3903_v2  ;;  %v3956_v34 = vmul.f32 %v7467_v44, %v7467_v44 }
 0xbcf   : > { %v7472_v0 = vsub.f32 %v7394_v25, %v3925_v29  ;;  %3980 = vadd.xlane.f32.xlu0 %v3956_v34 }
 0xbd0   : > { %v3905_v3 = vpop.xlane.xlu0 %3904 }
 0xbd1   : > { %v3926_v12 = vmul.f32 0.0078125, %v3905_v3  ;;  %v3957_v47 = vmul.f32 %v7472_v0, %v7472_v0 }
 0xbd3   : > { %v7477_v46 = vsub.f32 %v7399_v28, %v3926_v12  ;;  %3982 = vadd.xlane.f32.xlu1 %v3957_v47 }
 0xbd4   : > { %v3907_v7 = vpop.xlane.xlu1 %3906 }
 0xbd5   : > { %v3927_v40 = vmul.f32 0.0078125, %v3907_v7  ;;  %v3958_v18 = vmul.f32 %v7477_v46, %v7477_v46 }
 0xbd7   : > { %v7482_v8 = vsub.f32 %v7403_v33, %v3927_v40  ;;  %3984 = vadd.xlane.f32.xlu0 %v3958_v18 }
 0xbd9   : > { %v3959_v25 = vmul.f32 %v7482_v8, %v7482_v8 }
 0xbdb   : > { %3986 = vadd.xlane.f32.xlu1 %v3959_v25 }
 0xbe6   : > { %v3909_v37 = vpop.xlane.xlu0 %3908 }
 0xbe7   : > { %v3928_v14 = vmul.f32 0.0078125, %v3909_v37 }
 0xbe9   : > { %v7487_v16 = vsub.f32 %v7409_v50, %v3928_v14 }
 0xbea   : > { %v3911_v28 = vpop.xlane.xlu1 %3910 }
 0xbeb   : > { %v3929_v62 = vmul.f32 0.0078125, %v3911_v28  ;;  %v3960_v6 = vmul.f32 %v7487_v16, %v7487_v16 }
 0xbed   : > { %v7492_v17 = vsub.f32 %v7414_v27, %v3929_v62  ;;  %3988 = vadd.xlane.f32.xlu0 %v3960_v6 }
 0xbee   : > { %v3913_v33 = vpop.xlane.xlu0 %3912 }
 0xbef   : > { %v3930_v32 = vmul.f32 0.0078125, %v3913_v33  ;;  %v3961_v61 = vmul.f32 %v7492_v17, %v7492_v17 }
 0xbf1   : > { %v7497_v31 = vsub.f32 %v7419_v11, %v3930_v32  ;;  %3990 = vadd.xlane.f32.xlu1 %v3961_v61 }
 0xbf2   : > { %v3915_v50 = vpop.xlane.xlu1 %3914 }
 0xbf3   : > { %v3931_v20 = vmul.f32 0.0078125, %v3915_v50  ;;  %v3962_v54 = vmul.f32 %v7497_v31, %v7497_v31 }
 0xbf5   : > { %v7502_v43 = vsub.f32 %v7423_v60, %v3931_v20  ;;  %3992 = vadd.xlane.f32.xlu0 %v3962_v54 }
 0xbf7   : > { %v3963_v27 = vmul.f32 %v7502_v43, %v7502_v43 }
 0xbf9   : > { %3994 = vadd.xlane.f32.xlu1 %v3963_v27 }
 0xc07   : > { %v3965_v10 = vpop.xlane.xlu0 %3964 }
 0xc08   : > { %v3996_v4 = vmul.f32 0.0078125, %v3965_v10 }
 0xc0a   : > { %v4012_v42 = vadd.f32 1e-12, %v3996_v4 }
 0xc0b   : > { %v3967_v21 = vpop.xlane.xlu1 %3966 }
 0xc0c   : > { %5222 = vrsqrt.f32 %v4012_v42  ;;  %v3997_v11 = vmul.f32 0.0078125, %v3967_v21 }
 0xc0e   : > { %v4013_v36 = vadd.f32 1e-12, %v3997_v11 }
 0xc0f   : > { %v3969_v53 = vpop.xlane.xlu0 %3968 }
 0xc10   : > { %5224 = vrsqrt.f32 %v4013_v36  ;;  %v3998_v63 = vmul.f32 0.0078125, %v3969_v53 }
 0xc12   : > { %v4014_v24 = vadd.f32 1e-12, %v3998_v63 }
 0xc13   : > { %v3971_v30 = vpop.xlane.xlu1 %3970 }
 0xc14   : > { %5226 = vrsqrt.f32 %v4014_v24  ;;  %v3999_v60 = vmul.f32 0.0078125, %v3971_v30 }
 0xc16   : > { %v4015_v5 = vadd.f32 1e-12, %v3999_v60 }
 0xc17   : > { %v3973_v1 = vpop.xlane.xlu0 %3972 }
 0xc18   : > { %5228 = vrsqrt.f32 %v4015_v5  ;;  %v4000_v41 = vmul.f32 0.0078125, %v3973_v1 }
 0xc19   : > { %v5223_v49 = vpop.eup %5222 }
 0xc1a   : > { %v4044_v23 = vmul.f32 %v5223_v49, %v7427_v48  ;;  %v4016_v58 = vadd.f32 1e-12, %v4000_v41 }
 0xc1b   : > { %v3975_v51 = vpop.xlane.xlu1 %3974 }
 0xc1c   : > { %v4066_v19 = vmul.f32 %v7509_v9, %v4044_v23  ;;  %5230 = vrsqrt.f32 %v4016_v58  ;;  %v4001_v57 = vmul.f32 0.0078125, %v3975_v51 }
 0xc1d   : > { %v5225_v15 = vpop.eup %5224 }
 0xc1e   : > { %v4088_v48 = vadd.f32 %v7515_v59, %v4066_v19  ;;  %v4045_v26 = vmul.f32 %v5225_v15, %v7432_v52  ;;  %v4017_v55 = vadd.f32 1e-12, %v4001_v57 }
 0xc1f   : > { %v3977_v2 = vpop.xlane.xlu0 %3976 }
 0xc20   : > { %4104 = vst [vmem:[%s7523_s15] sm:$0xff] %v4088_v48  ;;  %v4067_v39 = vmul.f32 %v7509_v9, %v4045_v26  ;;  %5232 = vrsqrt.f32 %v4017_v55  ;;  %v4002_v34 = vmul.f32 0.0078125, %v3977_v2 }
 0xc21   : > { %v5227_v29 = vpop.eup %5226 }
 0xc22   : > { %v4089_v3 = vadd.f32 %v7515_v59, %v4067_v39  ;;  %v4046_v12 = vmul.f32 %v5227_v29, %v7437_v45  ;;  %v4018_v47 = vadd.f32 1e-12, %v4002_v34 }
 0xc23   : > { %v3979_v40 = vpop.xlane.xlu1 %3978 }
 0xc24   : > { %4105 = vst [vmem:[%s7523_s15 + $0x8] sm:$0xff] %v4089_v3  ;;  %v4068_v7 = vmul.f32 %v7509_v9, %v4046_v12  ;;  %5234 = vrsqrt.f32 %v4018_v47  ;;  %v4003_v18 = vmul.f32 0.0078125, %v3979_v40 }
 0xc25   : > { %v5229_v52 = vpop.eup %5228 }
 0xc26   : > { %v4090_v25 = vadd.f32 %v7515_v59, %v4068_v7  ;;  %v4047_v37 = vmul.f32 %v5229_v52, %v7442_v38  ;;  %v4019_v14 = vadd.f32 1e-12, %v4003_v18 }
 0xc28   : > { %4106 = vst [vmem:[%s7523_s15 + $0x10] sm:$0xff] %v4090_v25  ;;  %v4069_v28 = vmul.f32 %v7509_v9, %v4047_v37  ;;  %5236 = vrsqrt.f32 %v4019_v14 }
 0xc29   : > { %v5231_v45 = vpop.eup %5230 }
 0xc2a   : > { %v4091_v62 = vadd.f32 %v7515_v59, %v4069_v28  ;;  %v4048_v6 = vmul.f32 %v5231_v45, %v7447_v13 }
 0xc2c   : > { %4107 = vst [vmem:[%s7523_s15 + $0x18] sm:$0xff] %v4091_v62  ;;  %v4070_v33 = vmul.f32 %v7509_v9, %v4048_v6 }
 0xc2d   : > { %v5233_v32 = vpop.eup %5232 }
 0xc2e   : > { %v4092_v61 = vadd.f32 %v7515_v59, %v4070_v33  ;;  %v4049_v38 = vmul.f32 %v5233_v32, %v7452_v22 }
 0xc30   : > { %4108 = vst [vmem:[%s7523_s15 + $0x20] sm:$0xff] %v4092_v61  ;;  %v4071_v50 = vmul.f32 %v7509_v9, %v4049_v38 }
 0xc31   : > { %v5235_v20 = vpop.eup %5234 }
 0xc32   : > { %v4093_v54 = vadd.f32 %v7515_v59, %v4071_v50  ;;  %v4050_v27 = vmul.f32 %v5235_v20, %v7457_v56 }
 0xc34   : > { %4109 = vst [vmem:[%s7523_s15 + $0x28] sm:$0xff] %v4093_v54  ;;  %v4072_v13 = vmul.f32 %v7509_v9, %v4050_v27 }
 0xc35   : > { %v5237_v10 = vpop.eup %5236 }
 0xc36   : > { %v4094_v4 = vadd.f32 %v7515_v59, %v4072_v13  ;;  %v4051_v42 = vmul.f32 %v5237_v10, %v7462_v35 }
 0xc38   : > { %4110 = vst [vmem:[%s7523_s15 + $0x30] sm:$0xff] %v4094_v4  ;;  %v4073_v21 = vmul.f32 %v7509_v9, %v4051_v42 }
 0xc3a   : > { %v4095_v22 = vadd.f32 %v7515_v59, %v4073_v21 }
 0xc3c   : > { %4111 = vst [vmem:[%s7523_s15 + $0x38] sm:$0xff] %v4095_v22 }
 0xc58   : > { %v3981_v11 = vpop.xlane.xlu0 %3980 }
 0xc59   : > { %v4004_v36 = vmul.f32 0.0078125, %v3981_v11 }
 0xc5b   : > { %v4020_v53 = vadd.f32 1e-12, %v4004_v36 }
 0xc5c   : > { %v3983_v63 = vpop.xlane.xlu1 %3982 }
 0xc5d   : > { %5238 = vrsqrt.f32 %v4020_v53  ;;  %v4005_v56 = vmul.f32 0.0078125, %v3983_v63 }
 0xc5f   : > { %v4021_v24 = vadd.f32 1e-12, %v4005_v56 }
 0xc60   : > { %v3985_v30 = vpop.xlane.xlu0 %3984 }
 0xc61   : > { %5240 = vrsqrt.f32 %v4021_v24  ;;  %v4006_v60 = vmul.f32 0.0078125, %v3985_v30 }
 0xc63   : > { %v4022_v5 = vadd.f32 1e-12, %v4006_v60 }
 0xc64   : > { %v3987_v1 = vpop.xlane.xlu1 %3986 }
 0xc65   : > { %5242 = vrsqrt.f32 %v4022_v5  ;;  %v4007_v35 = vmul.f32 0.0078125, %v3987_v1 }
 0xc67   : > { %v4023_v41 = vadd.f32 1e-12, %v4007_v35 }
 0xc69   : > { %5244 = vrsqrt.f32 %v4023_v41 }
 0xc6a   : > { %v5239_v49 = vpop.eup %5238 }
 0xc6b   : > { %v4052_v23 = vmul.f32 %v5239_v49, %v7467_v44 }
 0xc6d   : > { %v4074_v58 = vmul.f32 %v7509_v9, %v4052_v23 }
 0xc6e   : > { %v5241_v51 = vpop.eup %5240 }
 0xc6f   : > { %v4096_v19 = vadd.f32 %v7515_v59, %v4074_v58  ;;  %v4053_v57 = vmul.f32 %v5241_v51, %v7472_v0 }
 0xc71   : > { %4112 = vst [vmem:[%s7523_s15 + $0x40] sm:$0xff] %v4096_v19  ;;  %v4075_v15 = vmul.f32 %v7509_v9, %v4053_v57 }
 0xc72   : > { %v5243_v48 = vpop.eup %5242 }
 0xc73   : > { %v4097_v26 = vadd.f32 %v7515_v59, %v4075_v15  ;;  %v4054_v55 = vmul.f32 %v5243_v48, %v7477_v46 }
 0xc75   : > { %4113 = vst [vmem:[%s7523_s15 + $0x48] sm:$0xff] %v4097_v26  ;;  %v4076_v44 = vmul.f32 %v7509_v9, %v4054_v55 }
 0xc76   : > { %v5245_v39 = vpop.eup %5244  ;;  %v3989_v2 = vpop.xlane.xlu0 %3988 }
 0xc77   : > { %v4098_v29 = vadd.f32 %v7515_v59, %v4076_v44  ;;  %v4055_v34 = vmul.f32 %v5245_v39, %v7482_v8  ;;  %v4008_v3 = vmul.f32 0.0078125, %v3989_v2 }
 0xc79   : > { %4114 = vst [vmem:[%s7523_s15 + $0x50] sm:$0xff] %v4098_v29  ;;  %v4077_v0 = vmul.f32 %v7509_v9, %v4055_v34  ;;  %v4024_v12 = vadd.f32 1e-12, %v4008_v3 }
 0xc7a   : > { %v3991_v47 = vpop.xlane.xlu1 %3990 }
 0xc7b   : > { %v4099_v7 = vadd.f32 %v7515_v59, %v4077_v0  ;;  %5246 = vrsqrt.f32 %v4024_v12  ;;  %v4009_v40 = vmul.f32 0.0078125, %v3991_v47 }
 0xc7d   : > { %4115 = vst [vmem:[%s7523_s15 + $0x58] sm:$0xff] %v4099_v7  ;;  %v4025_v46 = vadd.f32 1e-12, %v4009_v40 }
 0xc7e   : > { %v3993_v52 = vpop.xlane.xlu0 %3992 }
 0xc7f   : > { %5248 = vrsqrt.f32 %v4025_v46  ;;  %v4010_v18 = vmul.f32 0.0078125, %v3993_v52 }
 0xc81   : > { %v4026_v25 = vadd.f32 1e-12, %v4010_v18 }
 0xc82   : > { %v3995_v37 = vpop.xlane.xlu1 %3994 }
 0xc83   : > { %5250 = vrsqrt.f32 %v4026_v25  ;;  %v4011_v8 = vmul.f32 0.0078125, %v3995_v37 }
 0xc85   : > { %v4027_v14 = vadd.f32 1e-12, %v4011_v8 }
 0xc87   : > { %5252 = vrsqrt.f32 %v4027_v14 }
 0xc88   : > { %v5247_v28 = vpop.eup %5246 }
 0xc89   : > { %v4056_v45 = vmul.f32 %v5247_v28, %v7487_v16 }
 0xc8b   : > { %v4078_v62 = vmul.f32 %v7509_v9, %v4056_v45 }
 0xc8c   : > { %v5249_v6 = vpop.eup %5248 }
 0xc8d   : > { %v4100_v33 = vadd.f32 %v7515_v59, %v4078_v62  ;;  %v4057_v32 = vmul.f32 %v5249_v6, %v7492_v17 }
 0xc8f   : > { %4116 = vst [vmem:[%s7523_s15 + $0x60] sm:$0xff] %v4100_v33  ;;  %v4079_v61 = vmul.f32 %v7509_v9, %v4057_v32 }
 0xc90   : > { %v5251_v38 = vpop.eup %5250 }
 0xc91   : > { %v4101_v50 = vadd.f32 %v7515_v59, %v4079_v61  ;;  %v4058_v20 = vmul.f32 %v5251_v38, %v7497_v31 }
 0xc93   : > { %4117 = vst [vmem:[%s7523_s15 + $0x68] sm:$0xff] %v4101_v50  ;;  %v4080_v54 = vmul.f32 %v7509_v9, %v4058_v20 }
 0xc94   : > { %v5253_v16 = vpop.eup %5252 }
 0xc95   : > { %v4102_v27 = vadd.f32 %v7515_v59, %v4080_v54  ;;  %v4059_v13 = vmul.f32 %v5253_v16, %v7502_v43 }
 0xc97   : > { %4118 = vst [vmem:[%s7523_s15 + $0x70] sm:$0xff] %v4102_v27  ;;  %v4081_v10 = vmul.f32 %v7509_v9, %v4059_v13 }
 0xc99   : > { %v4103_v17 = vadd.f32 %v7515_v59, %v4081_v10 }
 0xc9b   : > { %4119 = vst [vmem:[%s7523_s15 + $0x78] sm:$0xff] %v4103_v17 }
 0xc9c PF: > { %s24_s29 = sadd.s32 1, %s5276_s29  }
 0xc9d   : > { %p21_p4 = scmp.ge.s32.totalorder %s24_s29, 4  }
 0xc9f   :  { %23 = sbr.rel (!%p21_p4) target bundleno = 1 (0x1), region = 109 }

</bundles_post_ra>
